<compile_context>
chip_gen: v5e
topology: v5e:2x2
jax: 0.10.0
libtpu: 0.0.40
codegen_flags: <defaults>
</compile_context>

<pallas_src>
import functools

import jax
import jax.numpy as jnp
from jax.experimental import pallas as pl
from jax.experimental.pallas import tpu as pltpu


_VMEM_LIMIT = 48 * 1024 * 1024          # <= v7x physical 64 MiB, well under v5e/v6e 128 MiB
_QKV_RESIDENT_BYTES = 12 * 1024 * 1024  # keep the (D,3D) QKV weight VMEM-resident if <= this
_MLP_RESIDENT_BYTES = 18 * 1024 * 1024  # keep fc+proj weights resident if <= this
_LN_EPS = 1e-5


def _round_up(x, m):
    return ((x + m - 1) // m) * m


def _largest_divisor_tile(dim, max_tile, gran=128):
    """Largest multiple of `gran` that divides `dim` and is <= max(max_tile, gran)."""
    assert dim % gran == 0, (dim, gran)
    t = max(gran, (min(dim, max_tile) // gran) * gran)
    while dim % t:
        t -= gran
    return t


# ----------------------------------------------------------------------------
# Generic tiled matmul (patch embedding, classifier head)
# ----------------------------------------------------------------------------

def _matmul_kernel(x_ref, w_ref, b_ref, o_ref, acc_ref):
    k = pl.program_id(2)

    @pl.when(k == 0)
    def _():
        acc_ref[...] = jnp.zeros_like(acc_ref)

    acc_ref[...] += jnp.dot(x_ref[...], w_ref[...],
                            preferred_element_type=jnp.float32)

    @pl.when(k == pl.num_programs(2) - 1)
    def _():
        o_ref[...] = (acc_ref[...] + b_ref[...]).astype(o_ref.dtype)


def pallas_matmul(x, w, b=None, out_dtype=jnp.bfloat16, tm=512, tn=512, max_tk=1024):
    """x:(M,K) @ w:(K,N) + b.  bf16 MXU operands, f32 accumulator, K padded to 128
    (not to tk) and tk chosen as a divisor of Kp -> no over-padded K traffic."""
    M, K = x.shape
    N = w.shape[1]
    tm = min(tm, _round_up(M, 16))
    Mp = _round_up(M, tm)
    Kp = _round_up(K, 128)
    tk = _largest_divisor_tile(Kp, max_tk)
    Np = _round_up(N, 128)
    tn = _largest_divisor_tile(Np, tn)

    xb = jnp.pad(x.astype(jnp.bfloat16), ((0, Mp - M), (0, Kp - K)))
    wb = jnp.pad(w.astype(jnp.bfloat16), ((0, Kp - K), (0, Np - N)))
    if b is None:
        bb = jnp.zeros((1, Np), jnp.float32)
    else:
        bb = jnp.pad(b.astype(jnp.float32), (0, Np - N)).reshape(1, Np)

    out = pl.pallas_call(
        _matmul_kernel,
        out_shape=jax.ShapeDtypeStruct((Mp, Np), out_dtype),
        grid=(Mp // tm, Np // tn, Kp // tk),
        in_specs=[
            pl.BlockSpec((tm, tk), lambda i, j, k: (i, k)),
            pl.BlockSpec((tk, tn), lambda i, j, k: (k, j)),
            pl.BlockSpec((1, tn), lambda i, j, k: (0, j)),
        ],
        out_specs=pl.BlockSpec((tm, tn), lambda i, j, k: (i, j)),
        scratch_shapes=[pltpu.VMEM((tm, tn), jnp.float32)],
        compiler_params=pltpu.CompilerParams(
            dimension_semantics=("parallel", "parallel", "arbitrary"),
            vmem_limit_bytes=_VMEM_LIMIT),
    )(xb, wb, bb)
    return out[:M, :N]


# ----------------------------------------------------------------------------
# ln_pre fused with the positional-embedding add: LN(x + pos)
# ----------------------------------------------------------------------------

def _add_pos_ln_kernel(x_ref, pos_ref, g_ref, b_ref, o_ref, *, eps):
    x = x_ref[...].astype(jnp.float32) + pos_ref[...].astype(jnp.float32)
    mu = jnp.mean(x, axis=-1, keepdims=True)
    xc = x - mu
    var = jnp.mean(xc * xc, axis=-1, keepdims=True)
    y = xc * jax.lax.rsqrt(var + eps) * g_ref[...] + b_ref[...]
    o_ref[...] = y.astype(o_ref.dtype)


def pallas_add_pos_layernorm(x, pos, g, b, out_dtype=jnp.bfloat16):
    B, S, D = x.shape
    return pl.pallas_call(
        functools.partial(_add_pos_ln_kernel, eps=_LN_EPS),
        out_shape=jax.ShapeDtypeStruct((B, S, D), out_dtype),
        grid=(B,),
        in_specs=[
            pl.BlockSpec((None, S, D), lambda bi: (bi, 0, 0)),
            pl.BlockSpec((S, D), lambda bi: (0, 0)),
            pl.BlockSpec((1, D), lambda bi: (0, 0)),
            pl.BlockSpec((1, D), lambda bi: (0, 0)),
        ],
        out_specs=pl.BlockSpec((None, S, D), lambda bi: (bi, 0, 0)),
        compiler_params=pltpu.CompilerParams(
            dimension_semantics=("parallel",),
            vmem_limit_bytes=_VMEM_LIMIT),
    )(x, pos, g.reshape(1, D), b.reshape(1, D))


# ----------------------------------------------------------------------------
# Fused LN1 + QKV projection: LayerNorm(x) @ w_qkv + b_qkv -> packed (B,S,3D)
# LN is computed once per image into a VMEM scratch and reused across N tiles.
# ----------------------------------------------------------------------------

def _ln_matmul_tok_kernel(x_ref, g_ref, bln_ref, w_ref, b_ref, o_ref, xn_ref, *, eps):
    @pl.when(pl.program_id(1) == 0)
    def _():
        x = x_ref[...].astype(jnp.float32)
        mu = jnp.mean(x, axis=-1, keepdims=True)
        xc = x - mu
        var = jnp.mean(xc * xc, axis=-1, keepdims=True)
        xn = xc * jax.lax.rsqrt(var + eps) * g_ref[...] + bln_ref[...]
        xn_ref[...] = xn.astype(xn_ref.dtype)

    y = jnp.dot(xn_ref[...], w_ref[...], preferred_element_type=jnp.float32)
    o_ref[...] = (y + b_ref[...]).astype(o_ref.dtype)


def pallas_ln_matmul_tokens(x, g, bln, w, b, out_dtype=jnp.bfloat16,
                            resident_bytes=_QKV_RESIDENT_BYTES, max_tn=2048):
    """x:(B,S,D), w:(D,N) -> (B,S,N).  Whole weight VMEM-resident (read once) when it
    fits; otherwise the N axis is tiled over an 'arbitrary' inner grid axis."""
    B, S, D = x.shape
    N = w.shape[1]
    assert D % 128 == 0 and N % 128 == 0, "CLIP widths are multiples of 128"
    if w.size * 2 <= resident_bytes:
        tn = N
    else:
        # TODO(synk): in tiled mode the weight is re-streamed once per image.
        tn = _largest_divisor_tile(N, max_tn)
    nj = N // tn

    return pl.pallas_call(
        functools.partial(_ln_matmul_tok_kernel, eps=_LN_EPS),
        out_shape=jax.ShapeDtypeStruct((B, S, N), out_dtype),
        grid=(B, nj),
        in_specs=[
            pl.BlockSpec((None, S, D), lambda bi, j: (bi, 0, 0)),
            pl.BlockSpec((1, D), lambda bi, j: (0, 0)),
            pl.BlockSpec((1, D), lambda bi, j: (0, 0)),
            pl.BlockSpec((D, tn), lambda bi, j: (0, j)),
            pl.BlockSpec((1, tn), lambda bi, j: (0, j)),
        ],
        out_specs=pl.BlockSpec((None, S, tn), lambda bi, j: (bi, 0, j)),
        scratch_shapes=[pltpu.VMEM((S, D), jnp.bfloat16)],
        compiler_params=pltpu.CompilerParams(
            dimension_semantics=("parallel", "arbitrary"),
            vmem_limit_bytes=_VMEM_LIMIT),
    )(x, g.reshape(1, D), bln.reshape(1, D), w, b.reshape(1, N))


# ----------------------------------------------------------------------------
# Attention: one grid step per image, all heads, whole-sequence single-pass softmax.
# Reads per-head slices straight from the packed QKV buffer and writes the output
# head-concatenated into (B, S, D) -> no q/k/v or output transposes in XLA.
# ----------------------------------------------------------------------------

def _attention_kernel(qkv_ref, o_ref, *, heads, dh, scale):
    D = heads * dh
    for h in range(heads):                                  # static unroll
        q = qkv_ref[:, h * dh:(h + 1) * dh]
        k = qkv_ref[:, D + h * dh:D + (h + 1) * dh]
        v = qkv_ref[:, 2 * D + h * dh:2 * D + (h + 1) * dh]
        s = jnp.einsum("qd,kd->qk", q, k,
                       preferred_element_type=jnp.float32) * scale
        s = s - jnp.max(s, axis=-1, keepdims=True)
        p = jnp.exp(s)
        l = jnp.sum(p, axis=-1, keepdims=True)
        o = jnp.dot(p.astype(jnp.bfloat16), v, preferred_element_type=jnp.float32)
        o_ref[:, h * dh:(h + 1) * dh] = (o / l).astype(o_ref.dtype)


def pallas_attention(qkv, heads, scale, out_dtype=jnp.bfloat16):
    B, S, threeD = qkv.shape
    D = threeD // 3
    dh = D // heads
    return pl.pallas_call(
        functools.partial(_attention_kernel, heads=heads, dh=dh, scale=scale),
        out_shape=jax.ShapeDtypeStruct((B, S, D), out_dtype),
        grid=(B,),
        in_specs=[pl.BlockSpec((None, S, threeD), lambda bi: (bi, 0, 0))],
        out_specs=pl.BlockSpec((None, S, D), lambda bi: (bi, 0, 0)),
        compiler_params=pltpu.CompilerParams(
            dimension_semantics=("parallel",),
            vmem_limit_bytes=_VMEM_LIMIT),
    )(qkv)


# ----------------------------------------------------------------------------
# Attention out-projection + bias + residual (output aliased onto the residual)
# ----------------------------------------------------------------------------

def _proj_residual_kernel(x_ref, w_ref, b_ref, res_ref, o_ref):
    y = jnp.dot(x_ref[...], w_ref[...], preferred_element_type=jnp.float32)
    y = y + b_ref[...] + res_ref[...].astype(jnp.float32)
    o_ref[...] = y.astype(o_ref.dtype)


def pallas_proj_residual(x, w, b, residual, out_dtype=jnp.bfloat16):
    B, S, D = x.shape
    N = w.shape[1]
    return pl.pallas_call(
        _proj_residual_kernel,
        out_shape=jax.ShapeDtypeStruct((B, S, N), out_dtype),
        grid=(B,),
        in_specs=[
            pl.BlockSpec((None, S, D), lambda bi: (bi, 0, 0)),
            pl.BlockSpec((D, N), lambda bi: (0, 0)),
            pl.BlockSpec((1, N), lambda bi: (0, 0)),
            pl.BlockSpec((None, S, N), lambda bi: (bi, 0, 0)),
        ],
        out_specs=pl.BlockSpec((None, S, N), lambda bi: (bi, 0, 0)),
        input_output_aliases={3: 0},
        compiler_params=pltpu.CompilerParams(
            dimension_semantics=("parallel",),
            vmem_limit_bytes=_VMEM_LIMIT),
    )(x, w, b.reshape(1, N), residual)


# ----------------------------------------------------------------------------
# Fused MLP block: LN2 -> fc -> QuickGELU -> proj -> + residual
# Hidden dim is streamed over an "arbitrary" grid axis with an (S, D) f32
# accumulator when the weights are too large to hold resident (v7x 64 MiB case).
# ----------------------------------------------------------------------------

def _ln_mlp_kernel(x_ref, g_ref, bln_ref, wfc_ref, bfc_ref, wpr_ref, bpr_ref,
                   o_ref, xn_ref, acc_ref, *, eps):
    j = pl.program_id(1)

    @pl.when(j == 0)
    def _():
        x = x_ref[...].astype(jnp.float32)
        mu = jnp.mean(x, axis=-1, keepdims=True)
        xc = x - mu
        var = jnp.mean(xc * xc, axis=-1, keepdims=True)
        xn = xc * jax.lax.rsqrt(var + eps) * g_ref[...] + bln_ref[...]
        xn_ref[...] = xn.astype(xn_ref.dtype)
        acc_ref[...] = jnp.zeros_like(acc_ref)

    h = jnp.dot(xn_ref[...], wfc_ref[...], preferred_element_type=jnp.float32)
    h = h + bfc_ref[...]
    h = h * jax.nn.sigmoid(1.702 * h)                       # QuickGELU
    acc_ref[...] += jnp.dot(h.astype(jnp.bfloat16), wpr_ref[...],
                            preferred_element_type=jnp.float32)

    @pl.when(j == pl.num_programs(1) - 1)
    def _():
        y = acc_ref[...] + bpr_ref[...] + x_ref[...].astype(jnp.float32)
        o_ref[...] = y.astype(o_ref.dtype)


def pallas_ln_mlp(x, g, bln, w_fc, b_fc, w_proj, b_proj, out_dtype=jnp.bfloat16,
                  resident_bytes=_MLP_RESIDENT_BYTES, max_th=2048):
    B, S, D = x.shape
    H = w_fc.shape[1]
    assert D % 128 == 0 and H % 128 == 0
    if (w_fc.size + w_proj.size) * 2 <= resident_bytes:
        th = H                                   # weights resident, read once
    else:
        # TODO(synk): in tiled mode the weights are re-streamed once per image.
        th = _largest_divisor_tile(H, max_th)
    nh = H // th

    return pl.pallas_call(
        functools.partial(_ln_mlp_kernel, eps=_LN_EPS),
        out_shape=jax.ShapeDtypeStruct((B, S, D), out_dtype),
        grid=(B, nh),
        in_specs=[
            pl.BlockSpec((None, S, D), lambda bi, j: (bi, 0, 0)),
            pl.BlockSpec((1, D), lambda bi, j: (0, 0)),
            pl.BlockSpec((1, D), lambda bi, j: (0, 0)),
            pl.BlockSpec((D, th), lambda bi, j: (0, j)),
            pl.BlockSpec((1, th), lambda bi, j: (0, j)),
            pl.BlockSpec((th, D), lambda bi, j: (j, 0)),
            pl.BlockSpec((1, D), lambda bi, j: (0, 0)),
        ],
        out_specs=pl.BlockSpec((None, S, D), lambda bi, j: (bi, 0, 0)),
        scratch_shapes=[pltpu.VMEM((S, D), jnp.bfloat16),
                        pltpu.VMEM((S, D), jnp.float32)],
        input_output_aliases={0: 0},
        compiler_params=pltpu.CompilerParams(
            dimension_semantics=("parallel", "arbitrary"),
            vmem_limit_bytes=_VMEM_LIMIT),
    )(x, g.reshape(1, D), bln.reshape(1, D), w_fc, b_fc.reshape(1, H),
      w_proj, b_proj.reshape(1, D))


# ----------------------------------------------------------------------------
# ln_post (CLS token) + visual projection, fused (tiny -> single grid step)
# ----------------------------------------------------------------------------

def _ln_proj_kernel(x_ref, g_ref, b_ref, w_ref, o_ref, *, eps):
    x = x_ref[...].astype(jnp.float32)
    mu = jnp.mean(x, axis=-1, keepdims=True)
    xc = x - mu
    var = jnp.mean(xc * xc, axis=-1, keepdims=True)
    xn = xc * jax.lax.rsqrt(var + eps) * g_ref[...] + b_ref[...]
    o_ref[...] = jnp.dot(xn.astype(jnp.bfloat16), w_ref[...],
                         preferred_element_type=jnp.float32).astype(o_ref.dtype)


def pallas_ln_proj(x, g, b, w, out_dtype=jnp.float32):
    M, D = x.shape
    E = w.shape[1]
    return pl.pallas_call(
        functools.partial(_ln_proj_kernel, eps=_LN_EPS),
        out_shape=jax.ShapeDtypeStruct((M, E), out_dtype),
        grid=(1,),
        in_specs=[
            pl.BlockSpec((M, D), lambda i: (0, 0)),
            pl.BlockSpec((1, D), lambda i: (0, 0)),
            pl.BlockSpec((1, D), lambda i: (0, 0)),
            pl.BlockSpec((D, E), lambda i: (0, 0)),
        ],
        out_specs=pl.BlockSpec((M, E), lambda i: (0, 0)),
        compiler_params=pltpu.CompilerParams(vmem_limit_bytes=_VMEM_LIMIT),
    )(x, g.reshape(1, D), b.reshape(1, D), w)


# ----------------------------------------------------------------------------
# Synthetic CLIP ViT parameters (deterministic; no checkpoint loading).
# Matmul weights are stored in bf16 (half the parameter HBM reads, no per-call casts).
# ----------------------------------------------------------------------------

def init_params(cfg):
    width, patch, in_ch = cfg["width"], cfg["patch"], cfg["in_ch"]
    embed_dim, num_output = cfg["embed_dim"], cfg["num_output"]
    n_tok = (cfg["image_size"] // patch) ** 2 + 1

    keys = iter(jax.random.split(jax.random.PRNGKey(42), 8 + 4 * cfg["layers"]))

    def nrm(shape, std=0.02, dtype=jnp.bfloat16):
        return (std * jax.random.normal(next(keys), shape, jnp.float32)).astype(dtype)

    params = {
        # conv1 weight (width, C, P, P) pre-reshaped to (C*P*P, width) == weight.reshape(width,-1).T
        "conv_w": nrm((in_ch * patch * patch, width)),
        "class_emb": nrm((width,), dtype=jnp.float32),
        "pos_emb": nrm((n_tok, width), dtype=jnp.float32),
        "ln_pre_g": jnp.ones((width,), jnp.float32),
        "ln_pre_b": jnp.zeros((width,), jnp.float32),
        "ln_post_g": jnp.ones((width,), jnp.float32),
        "ln_post_b": jnp.zeros((width,), jnp.float32),
        "vis_proj": nrm((width, embed_dim)),
        "cls_w": nrm((embed_dim, max(num_output, 1)), dtype=jnp.float32),
        "cls_b": jnp.zeros((max(num_output, 1),), jnp.float32),
        "blocks": [],
    }
    for _ in range(cfg["layers"]):
        params["blocks"].append({
            "ln1_g": jnp.ones((width,), jnp.float32),
            "ln1_b": jnp.zeros((width,), jnp.float32),
            "w_qkv": nrm((width, 3 * width)),
            "b_qkv": jnp.zeros((3 * width,), jnp.float32),
            "w_out": nrm((width, width)),
            "b_out": jnp.zeros((width,), jnp.float32),
            "ln2_g": jnp.ones((width,), jnp.float32),
            "ln2_b": jnp.zeros((width,), jnp.float32),
            "w_fc": nrm((width, 4 * width)),
            "b_fc": jnp.zeros((4 * width,), jnp.float32),
            "w_proj": nrm((4 * width, width)),
            "b_proj": jnp.zeros((width,), jnp.float32),
        })
    return params


# ----------------------------------------------------------------------------
# Forward pass (== CLIPVisionOnly.forward)
# ----------------------------------------------------------------------------

def clip_vision_only_forward(params, imgs, cfg, ret_features=False, ret_emb=False,
                             freeze=False):
    # `freeze` only toggles torch.no_grad() in PyTorch; forward values are unchanged.
    B, C, Himg, Wimg = imgs.shape
    P, width, heads = cfg["patch"], cfg["width"], cfg["heads"]
    gh, gw = Himg // P, Wimg // P

    # --- patch embedding (conv2d stride=P, no bias) lowered to matmul -------
    patches = imgs.reshape(B, C, gh, P, gw, P).transpose(0, 2, 4, 1, 3, 5)
    patches = patches.reshape(B * gh * gw, C * P * P)
    x = pallas_matmul(patches, params["conv_w"])             # (B*N, width) bf16
    x = x.reshape(B, gh * gw, width).astype(jnp.float32)

    # --- class token, then LN(x + pos_emb) fused in one kernel --------------
    cls = jnp.broadcast_to(params["class_emb"].reshape(1, 1, width), (B, 1, width))
    x = jnp.concatenate([cls, x], axis=1)                    # (B, S, width) f32
    x2 = pallas_add_pos_layernorm(x, params["pos_emb"],
                                  params["ln_pre_g"], params["ln_pre_b"])

    dh = width // heads
    scale = 1.0 / (dh ** 0.5)
    for blk in params["blocks"]:
        qkv = pallas_ln_matmul_tokens(x2, blk["ln1_g"], blk["ln1_b"],
                                      blk["w_qkv"], blk["b_qkv"])    # (B,S,3*width)
        attn = pallas_attention(qkv, heads, scale)                   # (B,S,width)
        x2 = pallas_proj_residual(attn, blk["w_out"], blk["b_out"], x2)
        x2 = pallas_ln_mlp(x2, blk["ln2_g"], blk["ln2_b"],
                           blk["w_fc"], blk["b_fc"], blk["w_proj"], blk["b_proj"])

    # --- ln_post on CLS token + visual projection, fused (f32 features) -----
    cls_tok = x2[:, 0, :]                                     # (B, width)
    features = pallas_ln_proj(cls_tok, params["ln_post_g"], params["ln_post_b"],
                              params["vis_proj"])             # (B, embed_dim) f32

    # --- classifier head -----------------------------------------------------
    if cfg["num_output"] > 0:
        logits = pallas_matmul(features, params["cls_w"], params["cls_b"],
                               out_dtype=jnp.float32)
    else:
        logits = features                                     # nn.Identity()

    if ret_features or ret_emb:
        # PyTorch returns (classifier(features), features) for both flags.
        return logits, features
    return logits


# ----------------------------------------------------------------------------

if __name__ == "__main__":
    cfg = dict(
        image_size=32,   # small synthetic config (CLIP-like: dh=64, width%128==0)
        patch=16,
        in_ch=3,
        width=128,
        layers=2,
        heads=2,
        embed_dim=128,
        num_output=10,
    )
    params = init_params(cfg)
    imgs = jax.random.normal(jax.random.PRNGKey(0), (2, 3, 32, 32), jnp.float32)

    fwd = jax.jit(lambda p, im: clip_vision_only_forward(p, im, cfg))
    logits = jax.block_until_ready(fwd(params, imgs))
    assert logits.shape == (2, cfg["num_output"])
    assert bool(jnp.all(jnp.isfinite(logits)))

    fwd_emb = jax.jit(lambda p, im: clip_vision_only_forward(p, im, cfg, ret_emb=True))
    logits2, feats = jax.block_until_ready(fwd_emb(params, imgs))
    assert logits2.shape == (2, cfg["num_output"])
    assert feats.shape == (2, cfg["embed_dim"])
    assert bool(jnp.all(jnp.isfinite(feats)))

    print("KERNEL_OK")
</pallas_src>

<mosaic_0001>
module attributes {stable_mosaic.version = 11 : i64} {
  func.func @_matmul_kernel(%arg0: i32, %arg1: i32, %arg2: i32, %arg3: memref<16x768xbf16, #tpu.memory_space<vmem>>, %arg4: memref<768x128xbf16, #tpu.memory_space<vmem>>, %arg5: memref<1x128xf32, #tpu.memory_space<vmem>>, %arg6: memref<16x128xbf16, #tpu.memory_space<vmem>>, %arg7: memref<16x128xf32, #tpu.memory_space<vmem>>) attributes {dimension_semantics = [#tpu.dimension_semantics<parallel>, #tpu.dimension_semantics<parallel>, #tpu.dimension_semantics<arbitrary>], iteration_bounds = array<i64: 1, 1, 1>, scalar_prefetch = 0 : i64, scratch_operands = 1 : i64, tpu.core_type = #tpu.core_type<tc>, window_params = [{transform_indices = @transform_0, window_bounds = array<i64: 16, 768>}, {transform_indices = @transform_1, window_bounds = array<i64: 768, 128>}, {transform_indices = @transform_2, window_bounds = array<i64: 1, 128>}, {transform_indices = @transform_3, window_bounds = array<i64: 16, 128>}]} {
    %c0_i32 = arith.constant 0 : i32
    %0 = arith.cmpi eq, %arg2, %c0_i32 : i32
    %1 = arith.extui %0 : i1 to i32
    %c0_i32_0 = arith.constant 0 : i32
    %2 = arith.cmpi ne, %1, %c0_i32_0 : i32
    scf.if %2 {
      %cst_10 = arith.constant 0.000000e+00 : f32
      %12 = vector.broadcast %cst_10 : f32 to vector<16x128xf32>
      %c0_11 = arith.constant 0 : index
      %c0_12 = arith.constant 0 : index
      %13 = vector.load %arg7[%c0_11, %c0_12] : memref<16x128xf32, #tpu.memory_space<vmem>>, vector<16x128xf32>
      tpu.vector_store %arg7[%c0_11, %c0_12], %12 {strides = array<i32>} : memref<16x128xf32, #tpu.memory_space<vmem>>, vector<16x128xf32>,
    } else {
    }
    %c0 = arith.constant 0 : index
    %c0_1 = arith.constant 0 : index
    %3 = vector.load %arg7[%c0, %c0_1] : memref<16x128xf32, #tpu.memory_space<vmem>>, vector<16x128xf32>
    %c0_2 = arith.constant 0 : index
    %c0_3 = arith.constant 0 : index
    %4 = vector.load %arg3[%c0_2, %c0_3] : memref<16x768xbf16, #tpu.memory_space<vmem>>, vector<16x768xbf16>
    %c0_4 = arith.constant 0 : index
    %c0_5 = arith.constant 0 : index
    %5 = vector.load %arg4[%c0_4, %c0_5] : memref<768x128xbf16, #tpu.memory_space<vmem>>, vector<768x128xbf16>
    %cst = arith.constant dense<0.000000e+00> : vector<16x128xf32>
    %6 = tpu.matmul %4, %5, %cst {dimension_numbers = #tpu.dot_dimension_numbers<[1], [0], [0], [1], [0, 0, 1, 1], [], []>} : vector<16x768xbf16>, vector<768x128xbf16>, vector<16x128xf32> -> vector<16x128xf32>
    %7 = arith.addf %3, %6 : vector<16x128xf32>
    %c0_6 = arith.constant 0 : index
    %c0_7 = arith.constant 0 : index
    %8 = vector.load %arg7[%c0_6, %c0_7] : memref<16x128xf32, #tpu.memory_space<vmem>>, vector<16x128xf32>
    tpu.vector_store %arg7[%c0_6, %c0_7], %7 {strides = array<i32>} : memref<16x128xf32, #tpu.memory_space<vmem>>, vector<16x128xf32>,
    %c0_i32_8 = arith.constant 0 : i32
    %9 = arith.cmpi eq, %arg2, %c0_i32_8 : i32
    %10 = arith.extui %9 : i1 to i32
    %c0_i32_9 = arith.constant 0 : i32
    %11 = arith.cmpi ne, %10, %c0_i32_9 : i32
    scf.if %11 {
      %c0_10 = arith.constant 0 : index
      %c0_11 = arith.constant 0 : index
      %12 = vector.load %arg7[%c0_10, %c0_11] : memref<16x128xf32, #tpu.memory_space<vmem>>, vector<16x128xf32>
      %c0_12 = arith.constant 0 : index
      %c0_13 = arith.constant 0 : index
      %13 = vector.load %arg5[%c0_12, %c0_13] : memref<1x128xf32, #tpu.memory_space<vmem>>, vector<1x128xf32>
      %14 = vector.broadcast %13 : vector<1x128xf32> to vector<16x128xf32>
      %15 = arith.addf %12, %14 : vector<16x128xf32>
      %16 = arith.truncf %15 : vector<16x128xf32> to vector<16x128xbf16>
      %c0_14 = arith.constant 0 : index
      %c0_15 = arith.constant 0 : index
      %17 = vector.load %arg6[%c0_14, %c0_15] : memref<16x128xbf16, #tpu.memory_space<vmem>>, vector<16x128xbf16>
      tpu.vector_store %arg6[%c0_14, %c0_15], %16 {strides = array<i32>} : memref<16x128xbf16, #tpu.memory_space<vmem>>, vector<16x128xbf16>,
    } else {
    }
    return
  }
  func.func @transform_0(%arg0: i32, %arg1: i32, %arg2: i32) -> (i32, i32) {
    %c0_i32 = arith.constant 0 : i32
    return %arg0, %arg2 : i32, i32
  }
  func.func @transform_1(%arg0: i32, %arg1: i32, %arg2: i32) -> (i32, i32) {
    %c0_i32 = arith.constant 0 : i32
    return %arg2, %arg1 : i32, i32
  }
  func.func @transform_2(%arg0: i32, %arg1: i32, %arg2: i32) -> (i32, i32) {
    %c0_i32 = arith.constant 0 : i32
    %c0_i32_0 = arith.constant 0 : i32
    return %c0_i32, %arg1 : i32, i32
  }
  func.func @transform_3(%arg0: i32, %arg1: i32, %arg2: i32) -> (i32, i32) {
    %c0_i32 = arith.constant 0 : i32
    return %arg0, %arg1 : i32, i32
  }
}

module attributes {stable_mosaic.version = 11 : i64} {
  func.func @_attention_kernel(%arg0: i32, %arg1: memref<1x5x384xbf16, #tpu.memory_space<vmem>>, %arg2: memref<1x5x128xbf16, #tpu.memory_space<vmem>>) attributes {dimension_semantics = [#tpu.dimension_semantics<parallel>], iteration_bounds = array<i64: 2>, scalar_prefetch = 0 : i64, scratch_operands = 0 : i64, tpu.core_type = #tpu.core_type<tc>, window_params = [{transform_indices = @transform_0, window_bounds = array<i64: 1, 5, 384>}, {transform_indices = @transform_1, window_bounds = array<i64: 1, 5, 128>}]} {
    %c0 = arith.constant 0 : index
    %c0_0 = arith.constant 0 : index
    %c0_1 = arith.constant 0 : index
    %0 = vector.load %arg1[%c0, %c0_0, %c0_1] : memref<1x5x384xbf16, #tpu.memory_space<vmem>>, vector<1x5x64xbf16>
    %1 = vector.shape_cast %0 : vector<1x5x64xbf16> to vector<5x64xbf16>
    %c0_2 = arith.constant 0 : index
    %c0_3 = arith.constant 0 : index
    %c128 = arith.constant 128 : index
    %2 = vector.load %arg1[%c0_2, %c0_3, %c128] : memref<1x5x384xbf16, #tpu.memory_space<vmem>>, vector<1x5x64xbf16>
    %3 = vector.shape_cast %2 : vector<1x5x64xbf16> to vector<5x64xbf16>
    %c0_4 = arith.constant 0 : index
    %c0_5 = arith.constant 0 : index
    %c256 = arith.constant 256 : index
    %4 = vector.load %arg1[%c0_4, %c0_5, %c256] : memref<1x5x384xbf16, #tpu.memory_space<vmem>>, vector<1x5x64xbf16>
    %5 = vector.shape_cast %4 : vector<1x5x64xbf16> to vector<5x64xbf16>
    "tpu.trace_start"() <{level = 10 : i32, message = "qd,kd->qk"}> : () -> ()
    %cst = arith.constant dense<0.000000e+00> : vector<5x5xf32>
    %6 = tpu.matmul %1, %3, %cst {dimension_numbers = #tpu.dot_dimension_numbers<[1], [1], [0], [0], [0, 0, 1, 0], [], []>} : vector<5x64xbf16>, vector<5x64xbf16>, vector<5x5xf32> -> vector<5x5xf32>
    "tpu.trace_stop"() : () -> ()
    %cst_6 = arith.constant 1.250000e-01 : f32
    %7 = vector.broadcast %cst_6 : f32 to vector<5x5xf32>
    %8 = arith.mulf %6, %7 : vector<5x5xf32>
    %cst_7 = arith.constant dense<0xFF800000> : vector<5xf32>
    %9 = vector.multi_reduction <maximumf>, %8, %cst_7 [1] : vector<5x5xf32> to vector<5xf32>
    %10 = vector.shape_cast %9 : vector<5xf32> to vector<5x1xf32>
    %11 = vector.broadcast %10 : vector<5x1xf32> to vector<5x5xf32>
    %12 = arith.subf %8, %11 : vector<5x5xf32>
    %13 = math.exp %12 : vector<5x5xf32>
    %cst_8 = arith.constant dense<0.000000e+00> : vector<5xf32>
    %14 = vector.multi_reduction <add>, %13, %cst_8 [1] : vector<5x5xf32> to vector<5xf32>
    %15 = vector.shape_cast %14 : vector<5xf32> to vector<5x1xf32>
    %16 = arith.truncf %13 : vector<5x5xf32> to vector<5x5xbf16>
    %cst_9 = arith.constant dense<0.000000e+00> : vector<5x64xf32>
    %17 = tpu.matmul %16, %5, %cst_9 {dimension_numbers = #tpu.dot_dimension_numbers<[1], [0], [0], [1], [0, 0, 1, 1], [], []>} : vector<5x5xbf16>, vector<5x64xbf16>, vector<5x64xf32> -> vector<5x64xf32>
    %18 = vector.broadcast %15 : vector<5x1xf32> to vector<5x64xf32>
    %19 = arith.divf %17, %18 : vector<5x64xf32>
    %20 = arith.truncf %19 : vector<5x64xf32> to vector<5x64xbf16>
    %c0_10 = arith.constant 0 : index
    %c0_11 = arith.constant 0 : index
    %c0_12 = arith.constant 0 : index
    %21 = vector.load %arg2[%c0_10, %c0_11, %c0_12] : memref<1x5x128xbf16, #tpu.memory_space<vmem>>, vector<1x5x64xbf16>
    %22 = vector.shape_cast %21 : vector<1x5x64xbf16> to vector<5x64xbf16>
    %23 = vector.shape_cast %20 : vector<5x64xbf16> to vector<1x5x64xbf16>
    tpu.vector_store %arg2[%c0_10, %c0_11, %c0_12], %23 {strides = array<i32>} : memref<1x5x128xbf16, #tpu.memory_space<vmem>>, vector<1x5x64xbf16>,
    %c0_13 = arith.constant 0 : index
    %c0_14 = arith.constant 0 : index
    %c64 = arith.constant 64 : index
    %24 = vector.load %arg1[%c0_13, %c0_14, %c64] : memref<1x5x384xbf16, #tpu.memory_space<vmem>>, vector<1x5x64xbf16>
    %25 = vector.shape_cast %24 : vector<1x5x64xbf16> to vector<5x64xbf16>
    %c0_15 = arith.constant 0 : index
    %c0_16 = arith.constant 0 : index
    %c192 = arith.constant 192 : index
    %26 = vector.load %arg1[%c0_15, %c0_16, %c192] : memref<1x5x384xbf16, #tpu.memory_space<vmem>>, vector<1x5x64xbf16>
    %27 = vector.shape_cast %26 : vector<1x5x64xbf16> to vector<5x64xbf16>
    %c0_17 = arith.constant 0 : index
    %c0_18 = arith.constant 0 : index
    %c320 = arith.constant 320 : index
    %28 = vector.load %arg1[%c0_17, %c0_18, %c320] : memref<1x5x384xbf16, #tpu.memory_space<vmem>>, vector<1x5x64xbf16>
    %29 = vector.shape_cast %28 : vector<1x5x64xbf16> to vector<5x64xbf16>
    "tpu.trace_start"() <{level = 10 : i32, message = "qd,kd->qk"}> : () -> ()
    %cst_19 = arith.constant dense<0.000000e+00> : vector<5x5xf32>
    %30 = tpu.matmul %25, %27, %cst_19 {dimension_numbers = #tpu.dot_dimension_numbers<[1], [1], [0], [0], [0, 0, 1, 0], [], []>} : vector<5x64xbf16>, vector<5x64xbf16>, vector<5x5xf32> -> vector<5x5xf32>
    "tpu.trace_stop"() : () -> ()
    %cst_20 = arith.constant 1.250000e-01 : f32
    %31 = vector.broadcast %cst_20 : f32 to vector<5x5xf32>
    %32 = arith.mulf %30, %31 : vector<5x5xf32>
    %cst_21 = arith.constant dense<0xFF800000> : vector<5xf32>
    %33 = vector.multi_reduction <maximumf>, %32, %cst_21 [1] : vector<5x5xf32> to vector<5xf32>
    %34 = vector.shape_cast %33 : vector<5xf32> to vector<5x1xf32>
    %35 = vector.broadcast %34 : vector<5x1xf32> to vector<5x5xf32>
    %36 = arith.subf %32, %35 : vector<5x5xf32>
    %37 = math.exp %36 : vector<5x5xf32>
    %cst_22 = arith.constant dense<0.000000e+00> : vector<5xf32>
    %38 = vector.multi_reduction <add>, %37, %cst_22 [1] : vector<5x5xf32> to vector<5xf32>
    %39 = vector.shape_cast %38 : vector<5xf32> to vector<5x1xf32>
    %40 = arith.truncf %37 : vector<5x5xf32> to vector<5x5xbf16>
    %cst_23 = arith.constant dense<0.000000e+00> : vector<5x64xf32>
    %41 = tpu.matmul %40, %29, %cst_23 {dimension_numbers = #tpu.dot_dimension_numbers<[1], [0], [0], [1], [0, 0, 1, 1], [], []>} : vector<5x5xbf16>, vector<5x64xbf16>, vector<5x64xf32> -> vector<5x64xf32>
    %42 = vector.broadcast %39 : vector<5x1xf32> to vector<5x64xf32>
    %43 = arith.divf %41, %42 : vector<5x64xf32>
    %44 = arith.truncf %43 : vector<5x64xf32> to vector<5x64xbf16>
    %c0_24 = arith.constant 0 : index
    %c0_25 = arith.constant 0 : index
    %c64_26 = arith.constant 64 : index
    %45 = vector.load %arg2[%c0_24, %c0_25, %c64_26] : memref<1x5x128xbf16, #tpu.memory_space<vmem>>, vector<1x5x64xbf16>
    %46 = vector.shape_cast %45 : vector<1x5x64xbf16> to vector<5x64xbf16>
    %47 = vector.shape_cast %44 : vector<5x64xbf16> to vector<1x5x64xbf16>
    tpu.vector_store %arg2[%c0_24, %c0_25, %c64_26], %47 {strides = array<i32>} : memref<1x5x128xbf16, #tpu.memory_space<vmem>>, vector<1x5x64xbf16>,
    return
  }
  func.func @transform_0(%arg0: i32) -> (i32, i32, i32) {
    %c0_i32 = arith.constant 0 : i32
    %c0_i32_0 = arith.constant 0 : i32
    %c0_i32_1 = arith.constant 0 : i32
    return %arg0, %c0_i32, %c0_i32_0 : i32, i32, i32
  }
  func.func @transform_1(%arg0: i32) -> (i32, i32, i32) {
    %c0_i32 = arith.constant 0 : i32
    %c0_i32_0 = arith.constant 0 : i32
    %c0_i32_1 = arith.constant 0 : i32
    return %arg0, %c0_i32, %c0_i32_0 : i32, i32, i32
  }
}

module attributes {stable_mosaic.version = 11 : i64} {
  func.func @_ln_matmul_tok_kernel(%arg0: i32, %arg1: i32, %arg2: memref<1x5x128xbf16, #tpu.memory_space<vmem>>, %arg3: memref<1x128xf32, #tpu.memory_space<vmem>>, %arg4: memref<1x128xf32, #tpu.memory_space<vmem>>, %arg5: memref<128x384xbf16, #tpu.memory_space<vmem>>, %arg6: memref<1x384xf32, #tpu.memory_space<vmem>>, %arg7: memref<1x5x384xbf16, #tpu.memory_space<vmem>>, %arg8: memref<5x128xbf16, #tpu.memory_space<vmem>>) attributes {dimension_semantics = [#tpu.dimension_semantics<parallel>, #tpu.dimension_semantics<arbitrary>], iteration_bounds = array<i64: 2, 1>, scalar_prefetch = 0 : i64, scratch_operands = 1 : i64, tpu.core_type = #tpu.core_type<tc>, window_params = [{transform_indices = @transform_0, window_bounds = array<i64: 1, 5, 128>}, {pipeline_mode = #tpu.pipeline_mode<synchronous>, transform_indices = @transform_1, window_bounds = array<i64: 1, 128>}, {pipeline_mode = #tpu.pipeline_mode<synchronous>, transform_indices = @transform_2, window_bounds = array<i64: 1, 128>}, {transform_indices = @transform_3, window_bounds = array<i64: 128, 384>}, {transform_indices = @transform_4, window_bounds = array<i64: 1, 384>}, {transform_indices = @transform_5, window_bounds = array<i64: 1, 5, 384>}]} {
    %c0_i32 = arith.constant 0 : i32
    %0 = arith.cmpi eq, %arg1, %c0_i32 : i32
    %1 = arith.extui %0 : i1 to i32
    %c0_i32_0 = arith.constant 0 : i32
    %2 = arith.cmpi ne, %1, %c0_i32_0 : i32
    scf.if %2 {
      %c0_9 = arith.constant 0 : index
      %c0_10 = arith.constant 0 : index
      %c0_11 = arith.constant 0 : index
      %13 = vector.load %arg2[%c0_9, %c0_10, %c0_11] : memref<1x5x128xbf16, #tpu.memory_space<vmem>>, vector<1x5x128xbf16>
      %14 = vector.shape_cast %13 : vector<1x5x128xbf16> to vector<5x128xbf16>
      %15 = arith.extf %14 : vector<5x128xbf16> to vector<5x128xf32>
      %cst_12 = arith.constant dense<0.000000e+00> : vector<5xf32>
      %16 = vector.multi_reduction <add>, %15, %cst_12 [1] : vector<5x128xf32> to vector<5xf32>
      %17 = vector.shape_cast %16 : vector<5xf32> to vector<5x1xf32>
      %cst_13 = arith.constant 1.280000e+02 : f32
      %18 = vector.broadcast %cst_13 : f32 to vector<5x1xf32>
      %19 = arith.divf %17, %18 : vector<5x1xf32>
      %20 = vector.broadcast %19 : vector<5x1xf32> to vector<5x128xf32>
      %21 = arith.subf %15, %20 : vector<5x128xf32>
      %22 = arith.mulf %21, %21 : vector<5x128xf32>
      %cst_14 = arith.constant dense<0.000000e+00> : vector<5xf32>
      %23 = vector.multi_reduction <add>, %22, %cst_14 [1] : vector<5x128xf32> to vector<5xf32>
      %24 = vector.shape_cast %23 : vector<5xf32> to vector<5x1xf32>
      %cst_15 = arith.constant 1.280000e+02 : f32
      %25 = vector.broadcast %cst_15 : f32 to vector<5x1xf32>
      %26 = arith.divf %24, %25 : vector<5x1xf32>
      %cst_16 = arith.constant 9.99999974E-6 : f32
      %27 = vector.broadcast %cst_16 : f32 to vector<5x1xf32>
      %28 = arith.addf %26, %27 : vector<5x1xf32>
      %29 = math.rsqrt %28 : vector<5x1xf32>
      %30 = vector.broadcast %29 : vector<5x1xf32> to vector<5x128xf32>
      %31 = arith.mulf %21, %30 : vector<5x128xf32>
      %c0_17 = arith.constant 0 : index
      %c0_18 = arith.constant 0 : index
      %32 = vector.load %arg3[%c0_17, %c0_18] : memref<1x128xf32, #tpu.memory_space<vmem>>, vector<1x128xf32>
      %33 = vector.broadcast %32 : vector<1x128xf32> to vector<5x128xf32>
      %34 = arith.mulf %31, %33 : vector<5x128xf32>
      %c0_19 = arith.constant 0 : index
      %c0_20 = arith.constant 0 : index
      %35 = vector.load %arg4[%c0_19, %c0_20] : memref<1x128xf32, #tpu.memory_space<vmem>>, vector<1x128xf32>
      %36 = vector.broadcast %35 : vector<1x128xf32> to vector<5x128xf32>
      %37 = arith.addf %34, %36 : vector<5x128xf32>
      %38 = arith.truncf %37 : vector<5x128xf32> to vector<5x128xbf16>
      %c0_21 = arith.constant 0 : index
      %c0_22 = arith.constant 0 : index
      %39 = vector.load %arg8[%c0_21, %c0_22] : memref<5x128xbf16, #tpu.memory_space<vmem>>, vector<5x128xbf16>
      tpu.vector_store %arg8[%c0_21, %c0_22], %38 {strides = array<i32>} : memref<5x128xbf16, #tpu.memory_space<vmem>>, vector<5x128xbf16>,
    } else {
    }
    %c0 = arith.constant 0 : index
    %c0_1 = arith.constant 0 : index
    %3 = vector.load %arg8[%c0, %c0_1] : memref<5x128xbf16, #tpu.memory_space<vmem>>, vector<5x128xbf16>
    %c0_2 = arith.constant 0 : index
    %c0_3 = arith.constant 0 : index
    %4 = vector.load %arg5[%c0_2, %c0_3] : memref<128x384xbf16, #tpu.memory_space<vmem>>, vector<128x384xbf16>
    %cst = arith.constant dense<0.000000e+00> : vector<5x384xf32>
    %5 = tpu.matmul %3, %4, %cst {dimension_numbers = #tpu.dot_dimension_numbers<[1], [0], [0], [1], [0, 0, 1, 1], [], []>} : vector<5x128xbf16>, vector<128x384xbf16>, vector<5x384xf32> -> vector<5x384xf32>
    %c0_4 = arith.constant 0 : index
    %c0_5 = arith.constant 0 : index
    %6 = vector.load %arg6[%c0_4, %c0_5] : memref<1x384xf32, #tpu.memory_space<vmem>>, vector<1x384xf32>
    %7 = vector.broadcast %6 : vector<1x384xf32> to vector<5x384xf32>
    %8 = arith.addf %5, %7 : vector<5x384xf32>
    %9 = arith.truncf %8 : vector<5x384xf32> to vector<5x384xbf16>
    %c0_6 = arith.constant 0 : index
    %c0_7 = arith.constant 0 : index
    %c0_8 = arith.constant 0 : index
    %10 = vector.load %arg7[%c0_6, %c0_7, %c0_8] : memref<1x5x384xbf16, #tpu.memory_space<vmem>>, vector<1x5x384xbf16>
    %11 = vector.shape_cast %10 : vector<1x5x384xbf16> to vector<5x384xbf16>
    %12 = vector.shape_cast %9 : vector<5x384xbf16> to vector<1x5x384xbf16>
    tpu.vector_store %arg7[%c0_6, %c0_7, %c0_8], %12 {strides = array<i32>} : memref<1x5x384xbf16, #tpu.memory_space<vmem>>, vector<1x5x384xbf16>,
    return
  }
  func.func @transform_0(%arg0: i32, %arg1: i32) -> (i32, i32, i32) {
    %c0_i32 = arith.constant 0 : i32
    %c0_i32_0 = arith.constant 0 : i32
    %c0_i32_1 = arith.constant 0 : i32
    return %arg0, %c0_i32, %c0_i32_0 : i32, i32, i32
  }
  func.func @transform_1(%arg0: i32, %arg1: i32) -> (i32, i32) {
    %c0_i32 = arith.constant 0 : i32
    %c0_i32_0 = arith.constant 0 : i32
    %c0_i32_1 = arith.constant 0 : i32
    return %c0_i32, %c0_i32_0 : i32, i32
  }
  func.func @transform_2(%arg0: i32, %arg1: i32) -> (i32, i32) {
    %c0_i32 = arith.constant 0 : i32
    %c0_i32_0 = arith.constant 0 : i32
    %c0_i32_1 = arith.constant 0 : i32
    return %c0_i32, %c0_i32_0 : i32, i32
  }
  func.func @transform_3(%arg0: i32, %arg1: i32) -> (i32, i32) {
    %c0_i32 = arith.constant 0 : i32
    %c0_i32_0 = arith.constant 0 : i32
    return %c0_i32, %arg1 : i32, i32
  }
  func.func @transform_4(%arg0: i32, %arg1: i32) -> (i32, i32) {
    %c0_i32 = arith.constant 0 : i32
    %c0_i32_0 = arith.constant 0 : i32
    return %c0_i32, %arg1 : i32, i32
  }
  func.func @transform_5(%arg0: i32, %arg1: i32) -> (i32, i32, i32) {
    %c0_i32 = arith.constant 0 : i32
    %c0_i32_0 = arith.constant 0 : i32
    return %arg0, %c0_i32, %arg1 : i32, i32, i32
  }
}

module attributes {stable_mosaic.version = 11 : i64} {
  func.func @_add_pos_ln_kernel(%arg0: i32, %arg1: memref<1x5x128xf32, #tpu.memory_space<vmem>>, %arg2: memref<5x128xf32, #tpu.memory_space<vmem>>, %arg3: memref<1x128xf32, #tpu.memory_space<vmem>>, %arg4: memref<1x128xf32, #tpu.memory_space<vmem>>, %arg5: memref<1x5x128xbf16, #tpu.memory_space<vmem>>) attributes {dimension_semantics = [#tpu.dimension_semantics<parallel>], iteration_bounds = array<i64: 2>, scalar_prefetch = 0 : i64, scratch_operands = 0 : i64, tpu.core_type = #tpu.core_type<tc>, window_params = [{transform_indices = @transform_0, window_bounds = array<i64: 1, 5, 128>}, {pipeline_mode = #tpu.pipeline_mode<synchronous>, transform_indices = @transform_1, window_bounds = array<i64: 5, 128>}, {pipeline_mode = #tpu.pipeline_mode<synchronous>, transform_indices = @transform_2, window_bounds = array<i64: 1, 128>}, {pipeline_mode = #tpu.pipeline_mode<synchronous>, transform_indices = @transform_3, window_bounds = array<i64: 1, 128>}, {transform_indices = @transform_4, window_bounds = array<i64: 1, 5, 128>}]} {
    %c0 = arith.constant 0 : index
    %c0_0 = arith.constant 0 : index
    %c0_1 = arith.constant 0 : index
    %0 = vector.load %arg1[%c0, %c0_0, %c0_1] : memref<1x5x128xf32, #tpu.memory_space<vmem>>, vector<1x5x128xf32>
    %1 = vector.shape_cast %0 : vector<1x5x128xf32> to vector<5x128xf32>
    %c0_2 = arith.constant 0 : index
    %c0_3 = arith.constant 0 : index
    %2 = vector.load %arg2[%c0_2, %c0_3] : memref<5x128xf32, #tpu.memory_space<vmem>>, vector<5x128xf32>
    %3 = arith.addf %1, %2 : vector<5x128xf32>
    %cst = arith.constant dense<0.000000e+00> : vector<5xf32>
    %4 = vector.multi_reduction <add>, %3, %cst [1] : vector<5x128xf32> to vector<5xf32>
    %5 = vector.shape_cast %4 : vector<5xf32> to vector<5x1xf32>
    %cst_4 = arith.constant 1.280000e+02 : f32
    %6 = vector.broadcast %cst_4 : f32 to vector<5x1xf32>
    %7 = arith.divf %5, %6 : vector<5x1xf32>
    %8 = vector.broadcast %7 : vector<5x1xf32> to vector<5x128xf32>
    %9 = arith.subf %3, %8 : vector<5x128xf32>
    %10 = arith.mulf %9, %9 : vector<5x128xf32>
    %cst_5 = arith.constant dense<0.000000e+00> : vector<5xf32>
    %11 = vector.multi_reduction <add>, %10, %cst_5 [1] : vector<5x128xf32> to vector<5xf32>
    %12 = vector.shape_cast %11 : vector<5xf32> to vector<5x1xf32>
    %cst_6 = arith.constant 1.280000e+02 : f32
    %13 = vector.broadcast %cst_6 : f32 to vector<5x1xf32>
    %14 = arith.divf %12, %13 : vector<5x1xf32>
    %cst_7 = arith.constant 9.99999974E-6 : f32
    %15 = vector.broadcast %cst_7 : f32 to vector<5x1xf32>
    %16 = arith.addf %14, %15 : vector<5x1xf32>
    %17 = math.rsqrt %16 : vector<5x1xf32>
    %18 = vector.broadcast %17 : vector<5x1xf32> to vector<5x128xf32>
    %19 = arith.mulf %9, %18 : vector<5x128xf32>
    %c0_8 = arith.constant 0 : index
    %c0_9 = arith.constant 0 : index
    %20 = vector.load %arg3[%c0_8, %c0_9] : memref<1x128xf32, #tpu.memory_space<vmem>>, vector<1x128xf32>
    %21 = vector.broadcast %20 : vector<1x128xf32> to vector<5x128xf32>
    %22 = arith.mulf %19, %21 : vector<5x128xf32>
    %c0_10 = arith.constant 0 : index
    %c0_11 = arith.constant 0 : index
    %23 = vector.load %arg4[%c0_10, %c0_11] : memref<1x128xf32, #tpu.memory_space<vmem>>, vector<1x128xf32>
    %24 = vector.broadcast %23 : vector<1x128xf32> to vector<5x128xf32>
    %25 = arith.addf %22, %24 : vector<5x128xf32>
    %26 = arith.truncf %25 : vector<5x128xf32> to vector<5x128xbf16>
    %c0_12 = arith.constant 0 : index
    %c0_13 = arith.constant 0 : index
    %c0_14 = arith.constant 0 : index
    %27 = vector.load %arg5[%c0_12, %c0_13, %c0_14] : memref<1x5x128xbf16, #tpu.memory_space<vmem>>, vector<1x5x128xbf16>
    %28 = vector.shape_cast %27 : vector<1x5x128xbf16> to vector<5x128xbf16>
    %29 = vector.shape_cast %26 : vector<5x128xbf16> to vector<1x5x128xbf16>
    tpu.vector_store %arg5[%c0_12, %c0_13, %c0_14], %29 {strides = array<i32>} : memref<1x5x128xbf16, #tpu.memory_space<vmem>>, vector<1x5x128xbf16>,
    return
  }
  func.func @transform_0(%arg0: i32) -> (i32, i32, i32) {
    %c0_i32 = arith.constant 0 : i32
    %c0_i32_0 = arith.constant 0 : i32
    %c0_i32_1 = arith.constant 0 : i32
    return %arg0, %c0_i32, %c0_i32_0 : i32, i32, i32
  }
  func.func @transform_1(%arg0: i32) -> (i32, i32) {
    %c0_i32 = arith.constant 0 : i32
    %c0_i32_0 = arith.constant 0 : i32
    %c0_i32_1 = arith.constant 0 : i32
    return %c0_i32, %c0_i32_0 : i32, i32
  }
  func.func @transform_2(%arg0: i32) -> (i32, i32) {
    %c0_i32 = arith.constant 0 : i32
    %c0_i32_0 = arith.constant 0 : i32
    %c0_i32_1 = arith.constant 0 : i32
    return %c0_i32, %c0_i32_0 : i32, i32
  }
  func.func @transform_3(%arg0: i32) -> (i32, i32) {
    %c0_i32 = arith.constant 0 : i32
    %c0_i32_0 = arith.constant 0 : i32
    %c0_i32_1 = arith.constant 0 : i32
    return %c0_i32, %c0_i32_0 : i32, i32
  }
  func.func @transform_4(%arg0: i32) -> (i32, i32, i32) {
    %c0_i32 = arith.constant 0 : i32
    %c0_i32_0 = arith.constant 0 : i32
    %c0_i32_1 = arith.constant 0 : i32
    return %arg0, %c0_i32, %c0_i32_0 : i32, i32, i32
  }
}

module attributes {stable_mosaic.version = 11 : i64} {
  func.func @_proj_residual_kernel(%arg0: i32, %arg1: memref<1x5x128xbf16, #tpu.memory_space<vmem>>, %arg2: memref<128x128xbf16, #tpu.memory_space<vmem>>, %arg3: memref<1x128xf32, #tpu.memory_space<vmem>>, %arg4: memref<1x5x128xbf16, #tpu.memory_space<vmem>>, %arg5: memref<1x5x128xbf16, #tpu.memory_space<vmem>>) attributes {dimension_semantics = [#tpu.dimension_semantics<parallel>], iteration_bounds = array<i64: 2>, scalar_prefetch = 0 : i64, scratch_operands = 0 : i64, tpu.core_type = #tpu.core_type<tc>, window_params = [{transform_indices = @transform_0, window_bounds = array<i64: 1, 5, 128>}, {pipeline_mode = #tpu.pipeline_mode<synchronous>, transform_indices = @transform_1, window_bounds = array<i64: 128, 128>}, {pipeline_mode = #tpu.pipeline_mode<synchronous>, transform_indices = @transform_2, window_bounds = array<i64: 1, 128>}, {transform_indices = @transform_3, window_bounds = array<i64: 1, 5, 128>}, {transform_indices = @transform_4, window_bounds = array<i64: 1, 5, 128>}]} {
    %c0 = arith.constant 0 : index
    %c0_0 = arith.constant 0 : index
    %c0_1 = arith.constant 0 : index
    %0 = vector.load %arg1[%c0, %c0_0, %c0_1] : memref<1x5x128xbf16, #tpu.memory_space<vmem>>, vector<1x5x128xbf16>
    %1 = vector.shape_cast %0 : vector<1x5x128xbf16> to vector<5x128xbf16>
    %c0_2 = arith.constant 0 : index
    %c0_3 = arith.constant 0 : index
    %2 = vector.load %arg2[%c0_2, %c0_3] : memref<128x128xbf16, #tpu.memory_space<vmem>>, vector<128x128xbf16>
    %cst = arith.constant dense<0.000000e+00> : vector<5x128xf32>
    %3 = tpu.matmul %1, %2, %cst {dimension_numbers = #tpu.dot_dimension_numbers<[1], [0], [0], [1], [0, 0, 1, 1], [], []>} : vector<5x128xbf16>, vector<128x128xbf16>, vector<5x128xf32> -> vector<5x128xf32>
    %c0_4 = arith.constant 0 : index
    %c0_5 = arith.constant 0 : index
    %4 = vector.load %arg3[%c0_4, %c0_5] : memref<1x128xf32, #tpu.memory_space<vmem>>, vector<1x128xf32>
    %5 = vector.broadcast %4 : vector<1x128xf32> to vector<5x128xf32>
    %6 = arith.addf %3, %5 : vector<5x128xf32>
    %c0_6 = arith.constant 0 : index
    %c0_7 = arith.constant 0 : index
    %c0_8 = arith.constant 0 : index
    %7 = vector.load %arg4[%c0_6, %c0_7, %c0_8] : memref<1x5x128xbf16, #tpu.memory_space<vmem>>, vector<1x5x128xbf16>
    %8 = vector.shape_cast %7 : vector<1x5x128xbf16> to vector<5x128xbf16>
    %9 = arith.extf %8 : vector<5x128xbf16> to vector<5x128xf32>
    %10 = arith.addf %6, %9 : vector<5x128xf32>
    %11 = arith.truncf %10 : vector<5x128xf32> to vector<5x128xbf16>
    %c0_9 = arith.constant 0 : index
    %c0_10 = arith.constant 0 : index
    %c0_11 = arith.constant 0 : index
    %12 = vector.load %arg5[%c0_9, %c0_10, %c0_11] : memref<1x5x128xbf16, #tpu.memory_space<vmem>>, vector<1x5x128xbf16>
    %13 = vector.shape_cast %12 : vector<1x5x128xbf16> to vector<5x128xbf16>
    %14 = vector.shape_cast %11 : vector<5x128xbf16> to vector<1x5x128xbf16>
    tpu.vector_store %arg5[%c0_9, %c0_10, %c0_11], %14 {strides = array<i32>} : memref<1x5x128xbf16, #tpu.memory_space<vmem>>, vector<1x5x128xbf16>,
    return
  }
  func.func @transform_0(%arg0: i32) -> (i32, i32, i32) {
    %c0_i32 = arith.constant 0 : i32
    %c0_i32_0 = arith.constant 0 : i32
    %c0_i32_1 = arith.constant 0 : i32
    return %arg0, %c0_i32, %c0_i32_0 : i32, i32, i32
  }
  func.func @transform_1(%arg0: i32) -> (i32, i32) {
    %c0_i32 = arith.constant 0 : i32
    %c0_i32_0 = arith.constant 0 : i32
    %c0_i32_1 = arith.constant 0 : i32
    return %c0_i32, %c0_i32_0 : i32, i32
  }
  func.func @transform_2(%arg0: i32) -> (i32, i32) {
    %c0_i32 = arith.constant 0 : i32
    %c0_i32_0 = arith.constant 0 : i32
    %c0_i32_1 = arith.constant 0 : i32
    return %c0_i32, %c0_i32_0 : i32, i32
  }
  func.func @transform_3(%arg0: i32) -> (i32, i32, i32) {
    %c0_i32 = arith.constant 0 : i32
    %c0_i32_0 = arith.constant 0 : i32
    %c0_i32_1 = arith.constant 0 : i32
    return %arg0, %c0_i32, %c0_i32_0 : i32, i32, i32
  }
  func.func @transform_4(%arg0: i32) -> (i32, i32, i32) {
    %c0_i32 = arith.constant 0 : i32
    %c0_i32_0 = arith.constant 0 : i32
    %c0_i32_1 = arith.constant 0 : i32
    return %arg0, %c0_i32, %c0_i32_0 : i32, i32, i32
  }
}

module attributes {stable_mosaic.version = 11 : i64} {
  func.func @_ln_mlp_kernel(%arg0: i32, %arg1: i32, %arg2: memref<1x5x128xbf16, #tpu.memory_space<vmem>>, %arg3: memref<1x128xf32, #tpu.memory_space<vmem>>, %arg4: memref<1x128xf32, #tpu.memory_space<vmem>>, %arg5: memref<128x512xbf16, #tpu.memory_space<vmem>>, %arg6: memref<1x512xf32, #tpu.memory_space<vmem>>, %arg7: memref<512x128xbf16, #tpu.memory_space<vmem>>, %arg8: memref<1x128xf32, #tpu.memory_space<vmem>>, %arg9: memref<1x5x128xbf16, #tpu.memory_space<vmem>>, %arg10: memref<5x128xbf16, #tpu.memory_space<vmem>>, %arg11: memref<5x128xf32, #tpu.memory_space<vmem>>) attributes {dimension_semantics = [#tpu.dimension_semantics<parallel>, #tpu.dimension_semantics<arbitrary>], iteration_bounds = array<i64: 2, 1>, scalar_prefetch = 0 : i64, scratch_operands = 2 : i64, tpu.core_type = #tpu.core_type<tc>, window_params = [{transform_indices = @transform_0, window_bounds = array<i64: 1, 5, 128>}, {pipeline_mode = #tpu.pipeline_mode<synchronous>, transform_indices = @transform_1, window_bounds = array<i64: 1, 128>}, {pipeline_mode = #tpu.pipeline_mode<synchronous>, transform_indices = @transform_2, window_bounds = array<i64: 1, 128>}, {transform_indices = @transform_3, window_bounds = array<i64: 128, 512>}, {transform_indices = @transform_4, window_bounds = array<i64: 1, 512>}, {transform_indices = @transform_5, window_bounds = array<i64: 512, 128>}, {pipeline_mode = #tpu.pipeline_mode<synchronous>, transform_indices = @transform_6, window_bounds = array<i64: 1, 128>}, {transform_indices = @transform_7, window_bounds = array<i64: 1, 5, 128>}]} {
    %c0_i32 = arith.constant 0 : i32
    %0 = arith.cmpi eq, %arg1, %c0_i32 : i32
    %1 = arith.extui %0 : i1 to i32
    %c0_i32_0 = arith.constant 0 : i32
    %2 = arith.cmpi ne, %1, %c0_i32_0 : i32
    scf.if %2 {
      %c0_17 = arith.constant 0 : index
      %c0_18 = arith.constant 0 : index
      %c0_19 = arith.constant 0 : index
      %26 = vector.load %arg2[%c0_17, %c0_18, %c0_19] : memref<1x5x128xbf16, #tpu.memory_space<vmem>>, vector<1x5x128xbf16>
      %27 = vector.shape_cast %26 : vector<1x5x128xbf16> to vector<5x128xbf16>
      %28 = arith.extf %27 : vector<5x128xbf16> to vector<5x128xf32>
      %cst_20 = arith.constant dense<0.000000e+00> : vector<5xf32>
      %29 = vector.multi_reduction <add>, %28, %cst_20 [1] : vector<5x128xf32> to vector<5xf32>
      %30 = vector.shape_cast %29 : vector<5xf32> to vector<5x1xf32>
      %cst_21 = arith.constant 1.280000e+02 : f32
      %31 = vector.broadcast %cst_21 : f32 to vector<5x1xf32>
      %32 = arith.divf %30, %31 : vector<5x1xf32>
      %33 = vector.broadcast %32 : vector<5x1xf32> to vector<5x128xf32>
      %34 = arith.subf %28, %33 : vector<5x128xf32>
      %35 = arith.mulf %34, %34 : vector<5x128xf32>
      %cst_22 = arith.constant dense<0.000000e+00> : vector<5xf32>
      %36 = vector.multi_reduction <add>, %35, %cst_22 [1] : vector<5x128xf32> to vector<5xf32>
      %37 = vector.shape_cast %36 : vector<5xf32> to vector<5x1xf32>
      %cst_23 = arith.constant 1.280000e+02 : f32
      %38 = vector.broadcast %cst_23 : f32 to vector<5x1xf32>
      %39 = arith.divf %37, %38 : vector<5x1xf32>
      %cst_24 = arith.constant 9.99999974E-6 : f32
      %40 = vector.broadcast %cst_24 : f32 to vector<5x1xf32>
      %41 = arith.addf %39, %40 : vector<5x1xf32>
      %42 = math.rsqrt %41 : vector<5x1xf32>
      %43 = vector.broadcast %42 : vector<5x1xf32> to vector<5x128xf32>
      %44 = arith.mulf %34, %43 : vector<5x128xf32>
      %c0_25 = arith.constant 0 : index
      %c0_26 = arith.constant 0 : index
      %45 = vector.load %arg3[%c0_25, %c0_26] : memref<1x128xf32, #tpu.memory_space<vmem>>, vector<1x128xf32>
      %46 = vector.broadcast %45 : vector<1x128xf32> to vector<5x128xf32>
      %47 = arith.mulf %44, %46 : vector<5x128xf32>
      %c0_27 = arith.constant 0 : index
      %c0_28 = arith.constant 0 : index
      %48 = vector.load %arg4[%c0_27, %c0_28] : memref<1x128xf32, #tpu.memory_space<vmem>>, vector<1x128xf32>
      %49 = vector.broadcast %48 : vector<1x128xf32> to vector<5x128xf32>
      %50 = arith.addf %47, %49 : vector<5x128xf32>
      %51 = arith.truncf %50 : vector<5x128xf32> to vector<5x128xbf16>
      %c0_29 = arith.constant 0 : index
      %c0_30 = arith.constant 0 : index
      %52 = vector.load %arg10[%c0_29, %c0_30] : memref<5x128xbf16, #tpu.memory_space<vmem>>, vector<5x128xbf16>
      tpu.vector_store %arg10[%c0_29, %c0_30], %51 {strides = array<i32>} : memref<5x128xbf16, #tpu.memory_space<vmem>>, vector<5x128xbf16>,
      %cst_31 = arith.constant 0.000000e+00 : f32
      %53 = vector.broadcast %cst_31 : f32 to vector<5x128xf32>
      %c0_32 = arith.constant 0 : index
      %c0_33 = arith.constant 0 : index
      %54 = vector.load %arg11[%c0_32, %c0_33] : memref<5x128xf32, #tpu.memory_space<vmem>>, vector<5x128xf32>
      tpu.vector_store %arg11[%c0_32, %c0_33], %53 {strides = array<i32>} : memref<5x128xf32, #tpu.memory_space<vmem>>, vector<5x128xf32>,
    } else {
    }
    %c0 = arith.constant 0 : index
    %c0_1 = arith.constant 0 : index
    %3 = vector.load %arg10[%c0, %c0_1] : memref<5x128xbf16, #tpu.memory_space<vmem>>, vector<5x128xbf16>
    %c0_2 = arith.constant 0 : index
    %c0_3 = arith.constant 0 : index
    %4 = vector.load %arg5[%c0_2, %c0_3] : memref<128x512xbf16, #tpu.memory_space<vmem>>, vector<128x512xbf16>
    %cst = arith.constant dense<0.000000e+00> : vector<5x512xf32>
    %5 = tpu.matmul %3, %4, %cst {dimension_numbers = #tpu.dot_dimension_numbers<[1], [0], [0], [1], [0, 0, 1, 1], [], []>} : vector<5x128xbf16>, vector<128x512xbf16>, vector<5x512xf32> -> vector<5x512xf32>
    %c0_4 = arith.constant 0 : index
    %c0_5 = arith.constant 0 : index
    %6 = vector.load %arg6[%c0_4, %c0_5] : memref<1x512xf32, #tpu.memory_space<vmem>>, vector<1x512xf32>
    %7 = vector.broadcast %6 : vector<1x512xf32> to vector<5x512xf32>
    %8 = arith.addf %5, %7 : vector<5x512xf32>
    %cst_6 = arith.constant 1.702000e+00 : f32
    %9 = vector.broadcast %cst_6 : f32 to vector<5x512xf32>
    %10 = arith.mulf %9, %8 : vector<5x512xf32>
    %11 = arith.negf %10 : vector<5x512xf32>
    %12 = math.exp %11 : vector<5x512xf32>
    %cst_7 = arith.constant 1.000000e+00 : f32
    %13 = vector.broadcast %cst_7 : f32 to vector<5x512xf32>
    %14 = arith.addf %13, %12 : vector<5x512xf32>
    %15 = arith.divf %13, %14 : vector<5x512xf32>
    %16 = arith.mulf %8, %15 : vector<5x512xf32>
    %c0_8 = arith.constant 0 : index
    %c0_9 = arith.constant 0 : index
    %17 = vector.load %arg11[%c0_8, %c0_9] : memref<5x128xf32, #tpu.memory_space<vmem>>, vector<5x128xf32>
    %18 = arith.truncf %16 : vector<5x512xf32> to vector<5x512xbf16>
    %c0_10 = arith.constant 0 : index
    %c0_11 = arith.constant 0 : index
    %19 = vector.load %arg7[%c0_10, %c0_11] : memref<512x128xbf16, #tpu.memory_space<vmem>>, vector<512x128xbf16>
    %cst_12 = arith.constant dense<0.000000e+00> : vector<5x128xf32>
    %20 = tpu.matmul %18, %19, %cst_12 {dimension_numbers = #tpu.dot_dimension_numbers<[1], [0], [0], [1], [0, 0, 1, 1], [], []>} : vector<5x512xbf16>, vector<512x128xbf16>, vector<5x128xf32> -> vector<5x128xf32>
    %21 = arith.addf %17, %20 : vector<5x128xf32>
    %c0_13 = arith.constant 0 : index
    %c0_14 = arith.constant 0 : index
    %22 = vector.load %arg11[%c0_13, %c0_14] : memref<5x128xf32, #tpu.memory_space<vmem>>, vector<5x128xf32>
    tpu.vector_store %arg11[%c0_13, %c0_14], %21 {strides = array<i32>} : memref<5x128xf32, #tpu.memory_space<vmem>>, vector<5x128xf32>,
    %c0_i32_15 = arith.constant 0 : i32
    %23 = arith.cmpi eq, %arg1, %c0_i32_15 : i32
    %24 = arith.extui %23 : i1 to i32
    %c0_i32_16 = arith.constant 0 : i32
    %25 = arith.cmpi ne, %24, %c0_i32_16 : i32
    scf.if %25 {
      %c0_17 = arith.constant 0 : index
      %c0_18 = arith.constant 0 : index
      %26 = vector.load %arg11[%c0_17, %c0_18] : memref<5x128xf32, #tpu.memory_space<vmem>>, vector<5x128xf32>
      %c0_19 = arith.constant 0 : index
      %c0_20 = arith.constant 0 : index
      %27 = vector.load %arg8[%c0_19, %c0_20] : memref<1x128xf32, #tpu.memory_space<vmem>>, vector<1x128xf32>
      %28 = vector.broadcast %27 : vector<1x128xf32> to vector<5x128xf32>
      %29 = arith.addf %26, %28 : vector<5x128xf32>
      %c0_21 = arith.constant 0 : index
      %c0_22 = arith.constant 0 : index
      %c0_23 = arith.constant 0 : index
      %30 = vector.load %arg2[%c0_21, %c0_22, %c0_23] : memref<1x5x128xbf16, #tpu.memory_space<vmem>>, vector<1x5x128xbf16>
      %31 = vector.shape_cast %30 : vector<1x5x128xbf16> to vector<5x128xbf16>
      %32 = arith.extf %31 : vector<5x128xbf16> to vector<5x128xf32>
      %33 = arith.addf %29, %32 : vector<5x128xf32>
      %34 = arith.truncf %33 : vector<5x128xf32> to vector<5x128xbf16>
      %c0_24 = arith.constant 0 : index
      %c0_25 = arith.constant 0 : index
      %c0_26 = arith.constant 0 : index
      %35 = vector.load %arg9[%c0_24, %c0_25, %c0_26] : memref<1x5x128xbf16, #tpu.memory_space<vmem>>, vector<1x5x128xbf16>
      %36 = vector.shape_cast %35 : vector<1x5x128xbf16> to vector<5x128xbf16>
      %37 = vector.shape_cast %34 : vector<5x128xbf16> to vector<1x5x128xbf16>
      tpu.vector_store %arg9[%c0_24, %c0_25, %c0_26], %37 {strides = array<i32>} : memref<1x5x128xbf16, #tpu.memory_space<vmem>>, vector<1x5x128xbf16>,
    } else {
    }
    return
  }
  func.func @transform_0(%arg0: i32, %arg1: i32) -> (i32, i32, i32) {
    %c0_i32 = arith.constant 0 : i32
    %c0_i32_0 = arith.constant 0 : i32
    %c0_i32_1 = arith.constant 0 : i32
    return %arg0, %c0_i32, %c0_i32_0 : i32, i32, i32
  }
  func.func @transform_1(%arg0: i32, %arg1: i32) -> (i32, i32) {
    %c0_i32 = arith.constant 0 : i32
    %c0_i32_0 = arith.constant 0 : i32
    %c0_i32_1 = arith.constant 0 : i32
    return %c0_i32, %c0_i32_0 : i32, i32
  }
  func.func @transform_2(%arg0: i32, %arg1: i32) -> (i32, i32) {
    %c0_i32 = arith.constant 0 : i32
    %c0_i32_0 = arith.constant 0 : i32
    %c0_i32_1 = arith.constant 0 : i32
    return %c0_i32, %c0_i32_0 : i32, i32
  }
  func.func @transform_3(%arg0: i32, %arg1: i32) -> (i32, i32) {
    %c0_i32 = arith.constant 0 : i32
    %c0_i32_0 = arith.constant 0 : i32
    return %c0_i32, %arg1 : i32, i32
  }
  func.func @transform_4(%arg0: i32, %arg1: i32) -> (i32, i32) {
    %c0_i32 = arith.constant 0 : i32
    %c0_i32_0 = arith.constant 0 : i32
    return %c0_i32, %arg1 : i32, i32
  }
  func.func @transform_5(%arg0: i32, %arg1: i32) -> (i32, i32) {
    %c0_i32 = arith.constant 0 : i32
    %c0_i32_0 = arith.constant 0 : i32
    return %arg1, %c0_i32 : i32, i32
  }
  func.func @transform_6(%arg0: i32, %arg1: i32) -> (i32, i32) {
    %c0_i32 = arith.constant 0 : i32
    %c0_i32_0 = arith.constant 0 : i32
    %c0_i32_1 = arith.constant 0 : i32
    return %c0_i32, %c0_i32_0 : i32, i32
  }
  func.func @transform_7(%arg0: i32, %arg1: i32) -> (i32, i32, i32) {
    %c0_i32 = arith.constant 0 : i32
    %c0_i32_0 = arith.constant 0 : i32
    %c0_i32_1 = arith.constant 0 : i32
    return %arg0, %c0_i32, %c0_i32_0 : i32, i32, i32
  }
}

module attributes {stable_mosaic.version = 11 : i64} {
  func.func @_proj_residual_kernel(%arg0: i32, %arg1: memref<1x5x128xbf16, #tpu.memory_space<vmem>>, %arg2: memref<128x128xbf16, #tpu.memory_space<vmem>>, %arg3: memref<1x128xf32, #tpu.memory_space<vmem>>, %arg4: memref<1x5x128xbf16, #tpu.memory_space<vmem>>, %arg5: memref<1x5x128xbf16, #tpu.memory_space<vmem>>) attributes {dimension_semantics = [#tpu.dimension_semantics<parallel>], iteration_bounds = array<i64: 2>, scalar_prefetch = 0 : i64, scratch_operands = 0 : i64, tpu.core_type = #tpu.core_type<tc>, window_params = [{transform_indices = @transform_0, window_bounds = array<i64: 1, 5, 128>}, {pipeline_mode = #tpu.pipeline_mode<synchronous>, transform_indices = @transform_1, window_bounds = array<i64: 128, 128>}, {pipeline_mode = #tpu.pipeline_mode<synchronous>, transform_indices = @transform_2, window_bounds = array<i64: 1, 128>}, {transform_indices = @transform_3, window_bounds = array<i64: 1, 5, 128>}, {transform_indices = @transform_4, window_bounds = array<i64: 1, 5, 128>}]} {
    %c0 = arith.constant 0 : index
    %c0_0 = arith.constant 0 : index
    %c0_1 = arith.constant 0 : index
    %0 = vector.load %arg1[%c0, %c0_0, %c0_1] : memref<1x5x128xbf16, #tpu.memory_space<vmem>>, vector<1x5x128xbf16>
    %1 = vector.shape_cast %0 : vector<1x5x128xbf16> to vector<5x128xbf16>
    %c0_2 = arith.constant 0 : index
    %c0_3 = arith.constant 0 : index
    %2 = vector.load %arg2[%c0_2, %c0_3] : memref<128x128xbf16, #tpu.memory_space<vmem>>, vector<128x128xbf16>
    %cst = arith.constant dense<0.000000e+00> : vector<5x128xf32>
    %3 = tpu.matmul %1, %2, %cst {dimension_numbers = #tpu.dot_dimension_numbers<[1], [0], [0], [1], [0, 0, 1, 1], [], []>} : vector<5x128xbf16>, vector<128x128xbf16>, vector<5x128xf32> -> vector<5x128xf32>
    %c0_4 = arith.constant 0 : index
    %c0_5 = arith.constant 0 : index
    %4 = vector.load %arg3[%c0_4, %c0_5] : memref<1x128xf32, #tpu.memory_space<vmem>>, vector<1x128xf32>
    %5 = vector.broadcast %4 : vector<1x128xf32> to vector<5x128xf32>
    %6 = arith.addf %3, %5 : vector<5x128xf32>
    %c0_6 = arith.constant 0 : index
    %c0_7 = arith.constant 0 : index
    %c0_8 = arith.constant 0 : index
    %7 = vector.load %arg4[%c0_6, %c0_7, %c0_8] : memref<1x5x128xbf16, #tpu.memory_space<vmem>>, vector<1x5x128xbf16>
    %8 = vector.shape_cast %7 : vector<1x5x128xbf16> to vector<5x128xbf16>
    %9 = arith.extf %8 : vector<5x128xbf16> to vector<5x128xf32>
    %10 = arith.addf %6, %9 : vector<5x128xf32>
    %11 = arith.truncf %10 : vector<5x128xf32> to vector<5x128xbf16>
    %c0_9 = arith.constant 0 : index
    %c0_10 = arith.constant 0 : index
    %c0_11 = arith.constant 0 : index
    %12 = vector.load %arg5[%c0_9, %c0_10, %c0_11] : memref<1x5x128xbf16, #tpu.memory_space<vmem>>, vector<1x5x128xbf16>
    %13 = vector.shape_cast %12 : vector<1x5x128xbf16> to vector<5x128xbf16>
    %14 = vector.shape_cast %11 : vector<5x128xbf16> to vector<1x5x128xbf16>
    tpu.vector_store %arg5[%c0_9, %c0_10, %c0_11], %14 {strides = array<i32>} : memref<1x5x128xbf16, #tpu.memory_space<vmem>>, vector<1x5x128xbf16>,
    return
  }
  func.func @transform_0(%arg0: i32) -> (i32, i32, i32) {
    %c0_i32 = arith.constant 0 : i32
    %c0_i32_0 = arith.constant 0 : i32
    %c0_i32_1 = arith.constant 0 : i32
    return %arg0, %c0_i32, %c0_i32_0 : i32, i32, i32
  }
  func.func @transform_1(%arg0: i32) -> (i32, i32) {
    %c0_i32 = arith.constant 0 : i32
    %c0_i32_0 = arith.constant 0 : i32
    %c0_i32_1 = arith.constant 0 : i32
    return %c0_i32, %c0_i32_0 : i32, i32
  }
  func.func @transform_2(%arg0: i32) -> (i32, i32) {
    %c0_i32 = arith.constant 0 : i32
    %c0_i32_0 = arith.constant 0 : i32
    %c0_i32_1 = arith.constant 0 : i32
    return %c0_i32, %c0_i32_0 : i32, i32
  }
  func.func @transform_3(%arg0: i32) -> (i32, i32, i32) {
    %c0_i32 = arith.constant 0 : i32
    %c0_i32_0 = arith.constant 0 : i32
    %c0_i32_1 = arith.constant 0 : i32
    return %arg0, %c0_i32, %c0_i32_0 : i32, i32, i32
  }
  func.func @transform_4(%arg0: i32) -> (i32, i32, i32) {
    %c0_i32 = arith.constant 0 : i32
    %c0_i32_0 = arith.constant 0 : i32
    %c0_i32_1 = arith.constant 0 : i32
    return %arg0, %c0_i32, %c0_i32_0 : i32, i32, i32
  }
}

module attributes {stable_mosaic.version = 11 : i64} {
  func.func @_ln_mlp_kernel(%arg0: i32, %arg1: i32, %arg2: memref<1x5x128xbf16, #tpu.memory_space<vmem>>, %arg3: memref<1x128xf32, #tpu.memory_space<vmem>>, %arg4: memref<1x128xf32, #tpu.memory_space<vmem>>, %arg5: memref<128x512xbf16, #tpu.memory_space<vmem>>, %arg6: memref<1x512xf32, #tpu.memory_space<vmem>>, %arg7: memref<512x128xbf16, #tpu.memory_space<vmem>>, %arg8: memref<1x128xf32, #tpu.memory_space<vmem>>, %arg9: memref<1x5x128xbf16, #tpu.memory_space<vmem>>, %arg10: memref<5x128xbf16, #tpu.memory_space<vmem>>, %arg11: memref<5x128xf32, #tpu.memory_space<vmem>>) attributes {dimension_semantics = [#tpu.dimension_semantics<parallel>, #tpu.dimension_semantics<arbitrary>], iteration_bounds = array<i64: 2, 1>, scalar_prefetch = 0 : i64, scratch_operands = 2 : i64, tpu.core_type = #tpu.core_type<tc>, window_params = [{transform_indices = @transform_0, window_bounds = array<i64: 1, 5, 128>}, {pipeline_mode = #tpu.pipeline_mode<synchronous>, transform_indices = @transform_1, window_bounds = array<i64: 1, 128>}, {pipeline_mode = #tpu.pipeline_mode<synchronous>, transform_indices = @transform_2, window_bounds = array<i64: 1, 128>}, {transform_indices = @transform_3, window_bounds = array<i64: 128, 512>}, {transform_indices = @transform_4, window_bounds = array<i64: 1, 512>}, {transform_indices = @transform_5, window_bounds = array<i64: 512, 128>}, {pipeline_mode = #tpu.pipeline_mode<synchronous>, transform_indices = @transform_6, window_bounds = array<i64: 1, 128>}, {transform_indices = @transform_7, window_bounds = array<i64: 1, 5, 128>}]} {
    %c0_i32 = arith.constant 0 : i32
    %0 = arith.cmpi eq, %arg1, %c0_i32 : i32
    %1 = arith.extui %0 : i1 to i32
    %c0_i32_0 = arith.constant 0 : i32
    %2 = arith.cmpi ne, %1, %c0_i32_0 : i32
    scf.if %2 {
      %c0_17 = arith.constant 0 : index
      %c0_18 = arith.constant 0 : index
      %c0_19 = arith.constant 0 : index
      %26 = vector.load %arg2[%c0_17, %c0_18, %c0_19] : memref<1x5x128xbf16, #tpu.memory_space<vmem>>, vector<1x5x128xbf16>
      %27 = vector.shape_cast %26 : vector<1x5x128xbf16> to vector<5x128xbf16>
      %28 = arith.extf %27 : vector<5x128xbf16> to vector<5x128xf32>
      %cst_20 = arith.constant dense<0.000000e+00> : vector<5xf32>
      %29 = vector.multi_reduction <add>, %28, %cst_20 [1] : vector<5x128xf32> to vector<5xf32>
      %30 = vector.shape_cast %29 : vector<5xf32> to vector<5x1xf32>
      %cst_21 = arith.constant 1.280000e+02 : f32
      %31 = vector.broadcast %cst_21 : f32 to vector<5x1xf32>
      %32 = arith.divf %30, %31 : vector<5x1xf32>
      %33 = vector.broadcast %32 : vector<5x1xf32> to vector<5x128xf32>
      %34 = arith.subf %28, %33 : vector<5x128xf32>
      %35 = arith.mulf %34, %34 : vector<5x128xf32>
      %cst_22 = arith.constant dense<0.000000e+00> : vector<5xf32>
      %36 = vector.multi_reduction <add>, %35, %cst_22 [1] : vector<5x128xf32> to vector<5xf32>
      %37 = vector.shape_cast %36 : vector<5xf32> to vector<5x1xf32>
      %cst_23 = arith.constant 1.280000e+02 : f32
      %38 = vector.broadcast %cst_23 : f32 to vector<5x1xf32>
      %39 = arith.divf %37, %38 : vector<5x1xf32>
      %cst_24 = arith.constant 9.99999974E-6 : f32
      %40 = vector.broadcast %cst_24 : f32 to vector<5x1xf32>
      %41 = arith.addf %39, %40 : vector<5x1xf32>
      %42 = math.rsqrt %41 : vector<5x1xf32>
      %43 = vector.broadcast %42 : vector<5x1xf32> to vector<5x128xf32>
      %44 = arith.mulf %34, %43 : vector<5x128xf32>
      %c0_25 = arith.constant 0 : index
      %c0_26 = arith.constant 0 : index
      %45 = vector.load %arg3[%c0_25, %c0_26] : memref<1x128xf32, #tpu.memory_space<vmem>>, vector<1x128xf32>
      %46 = vector.broadcast %45 : vector<1x128xf32> to vector<5x128xf32>
      %47 = arith.mulf %44, %46 : vector<5x128xf32>
      %c0_27 = arith.constant 0 : index
      %c0_28 = arith.constant 0 : index
      %48 = vector.load %arg4[%c0_27, %c0_28] : memref<1x128xf32, #tpu.memory_space<vmem>>, vector<1x128xf32>
      %49 = vector.broadcast %48 : vector<1x128xf32> to vector<5x128xf32>
      %50 = arith.addf %47, %49 : vector<5x128xf32>
      %51 = arith.truncf %50 : vector<5x128xf32> to vector<5x128xbf16>
      %c0_29 = arith.constant 0 : index
      %c0_30 = arith.constant 0 : index
      %52 = vector.load %arg10[%c0_29, %c0_30] : memref<5x128xbf16, #tpu.memory_space<vmem>>, vector<5x128xbf16>
      tpu.vector_store %arg10[%c0_29, %c0_30], %51 {strides = array<i32>} : memref<5x128xbf16, #tpu.memory_space<vmem>>, vector<5x128xbf16>,
      %cst_31 = arith.constant 0.000000e+00 : f32
      %53 = vector.broadcast %cst_31 : f32 to vector<5x128xf32>
      %c0_32 = arith.constant 0 : index
      %c0_33 = arith.constant 0 : index
      %54 = vector.load %arg11[%c0_32, %c0_33] : memref<5x128xf32, #tpu.memory_space<vmem>>, vector<5x128xf32>
      tpu.vector_store %arg11[%c0_32, %c0_33], %53 {strides = array<i32>} : memref<5x128xf32, #tpu.memory_space<vmem>>, vector<5x128xf32>,
    } else {
    }
    %c0 = arith.constant 0 : index
    %c0_1 = arith.constant 0 : index
    %3 = vector.load %arg10[%c0, %c0_1] : memref<5x128xbf16, #tpu.memory_space<vmem>>, vector<5x128xbf16>
    %c0_2 = arith.constant 0 : index
    %c0_3 = arith.constant 0 : index
    %4 = vector.load %arg5[%c0_2, %c0_3] : memref<128x512xbf16, #tpu.memory_space<vmem>>, vector<128x512xbf16>
    %cst = arith.constant dense<0.000000e+00> : vector<5x512xf32>
    %5 = tpu.matmul %3, %4, %cst {dimension_numbers = #tpu.dot_dimension_numbers<[1], [0], [0], [1], [0, 0, 1, 1], [], []>} : vector<5x128xbf16>, vector<128x512xbf16>, vector<5x512xf32> -> vector<5x512xf32>
    %c0_4 = arith.constant 0 : index
    %c0_5 = arith.constant 0 : index
    %6 = vector.load %arg6[%c0_4, %c0_5] : memref<1x512xf32, #tpu.memory_space<vmem>>, vector<1x512xf32>
    %7 = vector.broadcast %6 : vector<1x512xf32> to vector<5x512xf32>
    %8 = arith.addf %5, %7 : vector<5x512xf32>
    %cst_6 = arith.constant 1.702000e+00 : f32
    %9 = vector.broadcast %cst_6 : f32 to vector<5x512xf32>
    %10 = arith.mulf %9, %8 : vector<5x512xf32>
    %11 = arith.negf %10 : vector<5x512xf32>
    %12 = math.exp %11 : vector<5x512xf32>
    %cst_7 = arith.constant 1.000000e+00 : f32
    %13 = vector.broadcast %cst_7 : f32 to vector<5x512xf32>
    %14 = arith.addf %13, %12 : vector<5x512xf32>
    %15 = arith.divf %13, %14 : vector<5x512xf32>
    %16 = arith.mulf %8, %15 : vector<5x512xf32>
    %c0_8 = arith.constant 0 : index
    %c0_9 = arith.constant 0 : index
    %17 = vector.load %arg11[%c0_8, %c0_9] : memref<5x128xf32, #tpu.memory_space<vmem>>, vector<5x128xf32>
    %18 = arith.truncf %16 : vector<5x512xf32> to vector<5x512xbf16>
    %c0_10 = arith.constant 0 : index
    %c0_11 = arith.constant 0 : index
    %19 = vector.load %arg7[%c0_10, %c0_11] : memref<512x128xbf16, #tpu.memory_space<vmem>>, vector<512x128xbf16>
    %cst_12 = arith.constant dense<0.000000e+00> : vector<5x128xf32>
    %20 = tpu.matmul %18, %19, %cst_12 {dimension_numbers = #tpu.dot_dimension_numbers<[1], [0], [0], [1], [0, 0, 1, 1], [], []>} : vector<5x512xbf16>, vector<512x128xbf16>, vector<5x128xf32> -> vector<5x128xf32>
    %21 = arith.addf %17, %20 : vector<5x128xf32>
    %c0_13 = arith.constant 0 : index
    %c0_14 = arith.constant 0 : index
    %22 = vector.load %arg11[%c0_13, %c0_14] : memref<5x128xf32, #tpu.memory_space<vmem>>, vector<5x128xf32>
    tpu.vector_store %arg11[%c0_13, %c0_14], %21 {strides = array<i32>} : memref<5x128xf32, #tpu.memory_space<vmem>>, vector<5x128xf32>,
    %c0_i32_15 = arith.constant 0 : i32
    %23 = arith.cmpi eq, %arg1, %c0_i32_15 : i32
    %24 = arith.extui %23 : i1 to i32
    %c0_i32_16 = arith.constant 0 : i32
    %25 = arith.cmpi ne, %24, %c0_i32_16 : i32
    scf.if %25 {
      %c0_17 = arith.constant 0 : index
      %c0_18 = arith.constant 0 : index
      %26 = vector.load %arg11[%c0_17, %c0_18] : memref<5x128xf32, #tpu.memory_space<vmem>>, vector<5x128xf32>
      %c0_19 = arith.constant 0 : index
      %c0_20 = arith.constant 0 : index
      %27 = vector.load %arg8[%c0_19, %c0_20] : memref<1x128xf32, #tpu.memory_space<vmem>>, vector<1x128xf32>
      %28 = vector.broadcast %27 : vector<1x128xf32> to vector<5x128xf32>
      %29 = arith.addf %26, %28 : vector<5x128xf32>
      %c0_21 = arith.constant 0 : index
      %c0_22 = arith.constant 0 : index
      %c0_23 = arith.constant 0 : index
      %30 = vector.load %arg2[%c0_21, %c0_22, %c0_23] : memref<1x5x128xbf16, #tpu.memory_space<vmem>>, vector<1x5x128xbf16>
      %31 = vector.shape_cast %30 : vector<1x5x128xbf16> to vector<5x128xbf16>
      %32 = arith.extf %31 : vector<5x128xbf16> to vector<5x128xf32>
      %33 = arith.addf %29, %32 : vector<5x128xf32>
      %34 = arith.truncf %33 : vector<5x128xf32> to vector<5x128xbf16>
      %c0_24 = arith.constant 0 : index
      %c0_25 = arith.constant 0 : index
      %c0_26 = arith.constant 0 : index
      %35 = vector.load %arg9[%c0_24, %c0_25, %c0_26] : memref<1x5x128xbf16, #tpu.memory_space<vmem>>, vector<1x5x128xbf16>
      %36 = vector.shape_cast %35 : vector<1x5x128xbf16> to vector<5x128xbf16>
      %37 = vector.shape_cast %34 : vector<5x128xbf16> to vector<1x5x128xbf16>
      tpu.vector_store %arg9[%c0_24, %c0_25, %c0_26], %37 {strides = array<i32>} : memref<1x5x128xbf16, #tpu.memory_space<vmem>>, vector<1x5x128xbf16>,
    } else {
    }
    return
  }
  func.func @transform_0(%arg0: i32, %arg1: i32) -> (i32, i32, i32) {
    %c0_i32 = arith.constant 0 : i32
    %c0_i32_0 = arith.constant 0 : i32
    %c0_i32_1 = arith.constant 0 : i32
    return %arg0, %c0_i32, %c0_i32_0 : i32, i32, i32
  }
  func.func @transform_1(%arg0: i32, %arg1: i32) -> (i32, i32) {
    %c0_i32 = arith.constant 0 : i32
    %c0_i32_0 = arith.constant 0 : i32
    %c0_i32_1 = arith.constant 0 : i32
    return %c0_i32, %c0_i32_0 : i32, i32
  }
  func.func @transform_2(%arg0: i32, %arg1: i32) -> (i32, i32) {
    %c0_i32 = arith.constant 0 : i32
    %c0_i32_0 = arith.constant 0 : i32
    %c0_i32_1 = arith.constant 0 : i32
    return %c0_i32, %c0_i32_0 : i32, i32
  }
  func.func @transform_3(%arg0: i32, %arg1: i32) -> (i32, i32) {
    %c0_i32 = arith.constant 0 : i32
    %c0_i32_0 = arith.constant 0 : i32
    return %c0_i32, %arg1 : i32, i32
  }
  func.func @transform_4(%arg0: i32, %arg1: i32) -> (i32, i32) {
    %c0_i32 = arith.constant 0 : i32
    %c0_i32_0 = arith.constant 0 : i32
    return %c0_i32, %arg1 : i32, i32
  }
  func.func @transform_5(%arg0: i32, %arg1: i32) -> (i32, i32) {
    %c0_i32 = arith.constant 0 : i32
    %c0_i32_0 = arith.constant 0 : i32
    return %arg1, %c0_i32 : i32, i32
  }
  func.func @transform_6(%arg0: i32, %arg1: i32) -> (i32, i32) {
    %c0_i32 = arith.constant 0 : i32
    %c0_i32_0 = arith.constant 0 : i32
    %c0_i32_1 = arith.constant 0 : i32
    return %c0_i32, %c0_i32_0 : i32, i32
  }
  func.func @transform_7(%arg0: i32, %arg1: i32) -> (i32, i32, i32) {
    %c0_i32 = arith.constant 0 : i32
    %c0_i32_0 = arith.constant 0 : i32
    %c0_i32_1 = arith.constant 0 : i32
    return %arg0, %c0_i32, %c0_i32_0 : i32, i32, i32
  }
}

module attributes {stable_mosaic.version = 11 : i64} {
  func.func @_ln_proj_kernel(%arg0: i32, %arg1: memref<2x128xbf16, #tpu.memory_space<vmem>>, %arg2: memref<1x128xf32, #tpu.memory_space<vmem>>, %arg3: memref<1x128xf32, #tpu.memory_space<vmem>>, %arg4: memref<128x128xbf16, #tpu.memory_space<vmem>>, %arg5: memref<2x128xf32, #tpu.memory_space<vmem>>) attributes {dimension_semantics = [#tpu.dimension_semantics<arbitrary>], iteration_bounds = array<i64: 1>, scalar_prefetch = 0 : i64, scratch_operands = 0 : i64, tpu.core_type = #tpu.core_type<tc>, window_params = [{pipeline_mode = #tpu.pipeline_mode<synchronous>, transform_indices = @transform_0, window_bounds = array<i64: 2, 128>}, {pipeline_mode = #tpu.pipeline_mode<synchronous>, transform_indices = @transform_1, window_bounds = array<i64: 1, 128>}, {pipeline_mode = #tpu.pipeline_mode<synchronous>, transform_indices = @transform_2, window_bounds = array<i64: 1, 128>}, {pipeline_mode = #tpu.pipeline_mode<synchronous>, transform_indices = @transform_3, window_bounds = array<i64: 128, 128>}, {pipeline_mode = #tpu.pipeline_mode<synchronous>, transform_indices = @transform_4, window_bounds = array<i64: 2, 128>}]} {
    %c0 = arith.constant 0 : index
    %c0_0 = arith.constant 0 : index
    %0 = vector.load %arg1[%c0, %c0_0] : memref<2x128xbf16, #tpu.memory_space<vmem>>, vector<2x128xbf16>
    %1 = arith.extf %0 : vector<2x128xbf16> to vector<2x128xf32>
    %cst = arith.constant dense<0.000000e+00> : vector<2xf32>
    %2 = vector.multi_reduction <add>, %1, %cst [1] : vector<2x128xf32> to vector<2xf32>
    %3 = vector.shape_cast %2 : vector<2xf32> to vector<2x1xf32>
    %cst_1 = arith.constant 1.280000e+02 : f32
    %4 = vector.broadcast %cst_1 : f32 to vector<2x1xf32>
    %5 = arith.divf %3, %4 : vector<2x1xf32>
    %6 = vector.broadcast %5 : vector<2x1xf32> to vector<2x128xf32>
    %7 = arith.subf %1, %6 : vector<2x128xf32>
    %8 = arith.mulf %7, %7 : vector<2x128xf32>
    %cst_2 = arith.constant dense<0.000000e+00> : vector<2xf32>
    %9 = vector.multi_reduction <add>, %8, %cst_2 [1] : vector<2x128xf32> to vector<2xf32>
    %10 = vector.shape_cast %9 : vector<2xf32> to vector<2x1xf32>
    %cst_3 = arith.constant 1.280000e+02 : f32
    %11 = vector.broadcast %cst_3 : f32 to vector<2x1xf32>
    %12 = arith.divf %10, %11 : vector<2x1xf32>
    %cst_4 = arith.constant 9.99999974E-6 : f32
    %13 = vector.broadcast %cst_4 : f32 to vector<2x1xf32>
    %14 = arith.addf %12, %13 : vector<2x1xf32>
    %15 = math.rsqrt %14 : vector<2x1xf32>
    %16 = vector.broadcast %15 : vector<2x1xf32> to vector<2x128xf32>
    %17 = arith.mulf %7, %16 : vector<2x128xf32>
    %c0_5 = arith.constant 0 : index
    %c0_6 = arith.constant 0 : index
    %18 = vector.load %arg2[%c0_5, %c0_6] : memref<1x128xf32, #tpu.memory_space<vmem>>, vector<1x128xf32>
    %19 = vector.broadcast %18 : vector<1x128xf32> to vector<2x128xf32>
    %20 = arith.mulf %17, %19 : vector<2x128xf32>
    %c0_7 = arith.constant 0 : index
    %c0_8 = arith.constant 0 : index
    %21 = vector.load %arg3[%c0_7, %c0_8] : memref<1x128xf32, #tpu.memory_space<vmem>>, vector<1x128xf32>
    %22 = vector.broadcast %21 : vector<1x128xf32> to vector<2x128xf32>
    %23 = arith.addf %20, %22 : vector<2x128xf32>
    %24 = arith.truncf %23 : vector<2x128xf32> to vector<2x128xbf16>
    %c0_9 = arith.constant 0 : index
    %c0_10 = arith.constant 0 : index
    %25 = vector.load %arg4[%c0_9, %c0_10] : memref<128x128xbf16, #tpu.memory_space<vmem>>, vector<128x128xbf16>
    %cst_11 = arith.constant dense<0.000000e+00> : vector<2x128xf32>
    %26 = tpu.matmul %24, %25, %cst_11 {dimension_numbers = #tpu.dot_dimension_numbers<[1], [0], [0], [1], [0, 0, 1, 1], [], []>} : vector<2x128xbf16>, vector<128x128xbf16>, vector<2x128xf32> -> vector<2x128xf32>
    %c0_12 = arith.constant 0 : index
    %c0_13 = arith.constant 0 : index
    %27 = vector.load %arg5[%c0_12, %c0_13] : memref<2x128xf32, #tpu.memory_space<vmem>>, vector<2x128xf32>
    tpu.vector_store %arg5[%c0_12, %c0_13], %26 {strides = array<i32>} : memref<2x128xf32, #tpu.memory_space<vmem>>, vector<2x128xf32>,
    return
  }
  func.func @transform_0(%arg0: i32) -> (i32, i32) {
    %c0_i32 = arith.constant 0 : i32
    %c0_i32_0 = arith.constant 0 : i32
    %c0_i32_1 = arith.constant 0 : i32
    return %c0_i32, %c0_i32_0 : i32, i32
  }
  func.func @transform_1(%arg0: i32) -> (i32, i32) {
    %c0_i32 = arith.constant 0 : i32
    %c0_i32_0 = arith.constant 0 : i32
    %c0_i32_1 = arith.constant 0 : i32
    return %c0_i32, %c0_i32_0 : i32, i32
  }
  func.func @transform_2(%arg0: i32) -> (i32, i32) {
    %c0_i32 = arith.constant 0 : i32
    %c0_i32_0 = arith.constant 0 : i32
    %c0_i32_1 = arith.constant 0 : i32
    return %c0_i32, %c0_i32_0 : i32, i32
  }
  func.func @transform_3(%arg0: i32) -> (i32, i32) {
    %c0_i32 = arith.constant 0 : i32
    %c0_i32_0 = arith.constant 0 : i32
    %c0_i32_1 = arith.constant 0 : i32
    return %c0_i32, %c0_i32_0 : i32, i32
  }
  func.func @transform_4(%arg0: i32) -> (i32, i32) {
    %c0_i32 = arith.constant 0 : i32
    %c0_i32_0 = arith.constant 0 : i32
    %c0_i32_1 = arith.constant 0 : i32
    return %c0_i32, %c0_i32_0 : i32, i32
  }
}

module attributes {stable_mosaic.version = 11 : i64} {
  func.func @_matmul_kernel(%arg0: i32, %arg1: i32, %arg2: i32, %arg3: memref<16x128xbf16, #tpu.memory_space<vmem>>, %arg4: memref<128x128xbf16, #tpu.memory_space<vmem>>, %arg5: memref<1x128xf32, #tpu.memory_space<vmem>>, %arg6: memref<16x128xf32, #tpu.memory_space<vmem>>, %arg7: memref<16x128xf32, #tpu.memory_space<vmem>>) attributes {dimension_semantics = [#tpu.dimension_semantics<parallel>, #tpu.dimension_semantics<parallel>, #tpu.dimension_semantics<arbitrary>], iteration_bounds = array<i64: 1, 1, 1>, scalar_prefetch = 0 : i64, scratch_operands = 1 : i64, tpu.core_type = #tpu.core_type<tc>, window_params = [{transform_indices = @transform_0, window_bounds = array<i64: 16, 128>}, {transform_indices = @transform_1, window_bounds = array<i64: 128, 128>}, {transform_indices = @transform_2, window_bounds = array<i64: 1, 128>}, {transform_indices = @transform_3, window_bounds = array<i64: 16, 128>}]} {
    %c0_i32 = arith.constant 0 : i32
    %0 = arith.cmpi eq, %arg2, %c0_i32 : i32
    %1 = arith.extui %0 : i1 to i32
    %c0_i32_0 = arith.constant 0 : i32
    %2 = arith.cmpi ne, %1, %c0_i32_0 : i32
    scf.if %2 {
      %cst_10 = arith.constant 0.000000e+00 : f32
      %12 = vector.broadcast %cst_10 : f32 to vector<16x128xf32>
      %c0_11 = arith.constant 0 : index
      %c0_12 = arith.constant 0 : index
      %13 = vector.load %arg7[%c0_11, %c0_12] : memref<16x128xf32, #tpu.memory_space<vmem>>, vector<16x128xf32>
      tpu.vector_store %arg7[%c0_11, %c0_12], %12 {strides = array<i32>} : memref<16x128xf32, #tpu.memory_space<vmem>>, vector<16x128xf32>,
    } else {
    }
    %c0 = arith.constant 0 : index
    %c0_1 = arith.constant 0 : index
    %3 = vector.load %arg7[%c0, %c0_1] : memref<16x128xf32, #tpu.memory_space<vmem>>, vector<16x128xf32>
    %c0_2 = arith.constant 0 : index
    %c0_3 = arith.constant 0 : index
    %4 = vector.load %arg3[%c0_2, %c0_3] : memref<16x128xbf16, #tpu.memory_space<vmem>>, vector<16x128xbf16>
    %c0_4 = arith.constant 0 : index
    %c0_5 = arith.constant 0 : index
    %5 = vector.load %arg4[%c0_4, %c0_5] : memref<128x128xbf16, #tpu.memory_space<vmem>>, vector<128x128xbf16>
    %cst = arith.constant dense<0.000000e+00> : vector<16x128xf32>
    %6 = tpu.matmul %4, %5, %cst {dimension_numbers = #tpu.dot_dimension_numbers<[1], [0], [0], [1], [0, 0, 1, 1], [], []>} : vector<16x128xbf16>, vector<128x128xbf16>, vector<16x128xf32> -> vector<16x128xf32>
    %7 = arith.addf %3, %6 : vector<16x128xf32>
    %c0_6 = arith.constant 0 : index
    %c0_7 = arith.constant 0 : index
    %8 = vector.load %arg7[%c0_6, %c0_7] : memref<16x128xf32, #tpu.memory_space<vmem>>, vector<16x128xf32>
    tpu.vector_store %arg7[%c0_6, %c0_7], %7 {strides = array<i32>} : memref<16x128xf32, #tpu.memory_space<vmem>>, vector<16x128xf32>,
    %c0_i32_8 = arith.constant 0 : i32
    %9 = arith.cmpi eq, %arg2, %c0_i32_8 : i32
    %10 = arith.extui %9 : i1 to i32
    %c0_i32_9 = arith.constant 0 : i32
    %11 = arith.cmpi ne, %10, %c0_i32_9 : i32
    scf.if %11 {
      %c0_10 = arith.constant 0 : index
      %c0_11 = arith.constant 0 : index
      %12 = vector.load %arg7[%c0_10, %c0_11] : memref<16x128xf32, #tpu.memory_space<vmem>>, vector<16x128xf32>
      %c0_12 = arith.constant 0 : index
      %c0_13 = arith.constant 0 : index
      %13 = vector.load %arg5[%c0_12, %c0_13] : memref<1x128xf32, #tpu.memory_space<vmem>>, vector<1x128xf32>
      %14 = vector.broadcast %13 : vector<1x128xf32> to vector<16x128xf32>
      %15 = arith.addf %12, %14 : vector<16x128xf32>
      %c0_14 = arith.constant 0 : index
      %c0_15 = arith.constant 0 : index
      %16 = vector.load %arg6[%c0_14, %c0_15] : memref<16x128xf32, #tpu.memory_space<vmem>>, vector<16x128xf32>
      tpu.vector_store %arg6[%c0_14, %c0_15], %15 {strides = array<i32>} : memref<16x128xf32, #tpu.memory_space<vmem>>, vector<16x128xf32>,
    } else {
    }
    return
  }
  func.func @transform_0(%arg0: i32, %arg1: i32, %arg2: i32) -> (i32, i32) {
    %c0_i32 = arith.constant 0 : i32
    return %arg0, %arg2 : i32, i32
  }
  func.func @transform_1(%arg0: i32, %arg1: i32, %arg2: i32) -> (i32, i32) {
    %c0_i32 = arith.constant 0 : i32
    return %arg2, %arg1 : i32, i32
  }
  func.func @transform_2(%arg0: i32, %arg1: i32, %arg2: i32) -> (i32, i32) {
    %c0_i32 = arith.constant 0 : i32
    %c0_i32_0 = arith.constant 0 : i32
    return %c0_i32, %arg1 : i32, i32
  }
  func.func @transform_3(%arg0: i32, %arg1: i32, %arg2: i32) -> (i32, i32) {
    %c0_i32 = arith.constant 0 : i32
    return %arg0, %arg1 : i32, i32
  }
}

</mosaic_0001>

<bundles_post_ra>
// kernel: _lambda_.15
= control target key start
LH: loop header
LB: loop body
LE: loop exit
PB: predicated region body
PF: predicated region fallthrough
CT: control target
= control target key end

     0   :  { %s394_s6 = smov 0   ;;  %s445_s0 = inlined_call_operand.vmem [shape: bf16[2,5,384], index: 0, kind: input, shape index: {}]   ;;  %s446_s1 = inlined_call_operand.vmem [shape: bf16[2,5,128], index: 1, kind: output, shape index: {}]  }
   0x1 LB: > { %s342_s7 = sadd.s32 4294967295, %s380_s6   ;;  %p346_p0 = scmp.ge.s32.totalorder %s380_s6, 1  ;;  %s380_s6 = sphi %s394_s6, %s11_s6  }
   0x2   : > { %p87_p1 = scmp.lt.s32.totalorder %s380_s6, 3 }
   0x4   : > { %p88_p2 = pnand %p346_p0, %p87_p1 }
   0x5   : > { %p106_p3 = scmp.lt.s32.totalorder (!%p88_p2), %s342_s7, 1  ;;  %s382_s12 = smov (!%p88_p2), 64  }
   0x6   : > { %91 = sbr.rel (%p88_p2) target bundleno = 652 (0x28c), region = 24 }
   0xb   : > { %s448_s7 = smov (!%p106_p3, %s342_s7), 1  ;;  %vm119_vm0 = vcmask 523264   ;;  %vm140_vm1 = vcmask 36864   ;;  %vm155_vm2 = vcmask 1041408   ;;  %vm156_vm3 = vcmask 1042432  }
   0xc   : > { %s355_s8 = smul.u32 12, %s448_s7  ;;  %v383_v19 = vmov 65535   ;;  %vm151_vm4 = vcmask 39936   ;;  %s348_s13 = sshll.u32 %s448_s7, 2  ;;  %vm191_vm9 = vcmask 518144  }
   0xd   : > { %v157_v20 = vsel %vm155_vm2, 4294967295, %v383_v19  ;;  %s433_s16 = scalar_lea.vmem %s446_s1, %s348_s13  ;;  %vm192_vm10 = vsmask.f32 2304 }
   0xe   : > { %s408_s11 = scalar_lea.vmem %s445_s0, %s355_s8  ;;  %v158_v21 = vsel %vm156_vm3, %v157_v20, 0  ;;  %vm193_vm11 = vmand %vm191_vm9, %vm192_vm10  ;;  %v194_v57 = vld [vmem:[%s433_s16] sm:$0x7] }
   0xf   : > { %v198_v0 = vld [vmem:[%s408_s11 + $0x4] sm:$0x7]  ;;  %v197_v4 = vld [vmem:[%s408_s11] sm:$0x7]  ;;  %v118_v17 = vld [vmem:[%s408_s11 + $0x8] sm:$0x7] }
  0x10   : > { %v117_v1 = vld [vmem:[%s408_s11 + $0x4] sm:$0x7]  ;;  %v206_v2 = vunpack.c.l.b16 %v198_v0  ;;  %v201_v6 = vunpack.c.l.b16 %v197_v4  ;;  %v116_v7 = vld [vmem:[%s408_s11] sm:$0x7]  ;;  %v160_v24 = vand.u32 %v158_v21, %v118_v17  ;;  %v199_v31 = vld [vmem:[%s408_s11 + $0x8] sm:$0x7] }
  0x11   : > { %v124_v3 = vsel %vm119_vm0, %v117_v1, 0  ;;  %v241_v32 = vunpack.c.l.b16 %v199_v31 }
  0x12   : > { %133 = vmatpush.bf16.xpose.msra.mxu0 %v124_v3  ;;  %v207_v5 = vpack.c.b16 %v206_v2, %v206_v2  ;;  %v202_v8 = vpack.c.b16 %v201_v6, %v201_v6  ;;  %169 = vmatpush.bf16.msra.mxu1 %v160_v24 }
  0x13   : > { %v242_v33 = vpack.c.b16 %v241_v32, %v241_v32 }
  0x14   : > { %208 = vrot.lane.b32.xlu0 %v207_v5, %s382_s12 }
  0x19   : > { %349 = vmatmul.msk.bf16.vlgmr.msra.gmra.mxu0 %vm119_vm0, %v116_v7 }
  0x1c   : > { %203 = vrot.lane.b32.xlu0 %v202_v8, %s382_s12 }
  0x86   : > { %v209_v9 = vpop.permute.xlu0 %208 }
  0x87   : > { %v214_v10 = vsel %vm119_vm0, %v209_v9, 0 }
  0x88   : > { %223 = vmatpush.bf16.xpose.msra.mxu2 %v214_v10 }
  0x8e   : > { %v204_v11 = vpop.permute.xlu0 %203 }
  0x8f   : > { %351 = vmatmul.msk.bf16.vlgmr.msra.gmra.mxu2 %vm119_vm0, %v204_v11  ;;  %vm284_vm0 = vcmask 1042944  }
  0x96   : > { %v135_v12 = vpop.f32.mrf.mxu0 }
  0x97   : > { %v139_v13 = vmul.f32 0.125, %v135_v12 }
  0x99   : > { %v141_v14 = vsel %vm140_vm1, %v139_v13, -inf }
  0x9a   : > { %142 = vmax.xlane.f32.xlu2 %v141_v14 }
  0x9e   : > { %v137_v15 = vpop.f32.mrf.mxu0 }
 0x10d   : > { %v143_v16 = vpop.xlane.xlu2 %142 }
 0x10e   : > { %v144_v18 = vsub.f32 %v139_v13, %v143_v16 }
 0x110   : > { %v145_v23 = vmul.f32 1.442695, %v144_v18 }
 0x112   : > { %v225_v22 = vpop.f32.mrf.mxu2  ;;  %366 = vpow2.f32 %v145_v23 }
 0x113   : > { %v229_v25 = vmul.f32 0.125, %v225_v22 }
 0x115   : > { %v230_v26 = vsel %vm140_vm1, %v229_v25, -inf }
 0x116   : > { %231 = vmax.xlane.f32.xlu1 %v230_v26 }
 0x118   : > { %v367_v27 = vpop.eup %366 }
 0x119   : > { %v147_v29 = vsel %vm140_vm1, %v367_v27, 0.0  ;;  %v150_v30 = vpack.c.bf16 %v367_v27, %v367_v27 }
 0x11a   : > { %v227_v28 = vpop.f32.mrf.mxu2  ;;  %148 = vadd.xlane.f32.xlu0 %v147_v29 }
 0x11b   : > { %350 = vmatmul.msk.bf16.vlgmr.msra.gmra.mxu1 %vm151_vm4, %v150_v30 }
 0x12f   : > { %243 = vrot.lane.b32.xlu1 %v242_v33, %s382_s12 }
 0x189   : > { %v232_v34 = vpop.xlane.xlu1 %231 }
 0x18a   : > { %v233_v35 = vsub.f32 %v229_v25, %v232_v34 }
 0x18c   : > { %v234_v36 = vmul.f32 1.442695, %v233_v35 }
 0x18d   : > { %v149_v44 = vpop.xlane.xlu0 %148 }
 0x18e   : > { %368 = vpow2.f32 %v234_v36  ;;  %vm180_vm5 = vweird.f32 %v149_v44  ;;  %v186_v49 = vand.u32 2147483648, %v149_v44  ;;  %v184_v51 = vand.u32 2147483647, %v149_v44 }
 0x18f   : > { %370 = vrcp.f32 %v149_v44 }
 0x190   : > { %v187_v52 = vor.u32 1.1754944e-38, %v186_v49  ;;  %vm185_vm8 = vcmp.eq.f32.partialorder %v184_v51, 8.507059e+37 }
 0x194   : > { %v369_v37 = vpop.eup %368 }
 0x195   : > { %v236_v38 = vsel %vm140_vm1, %v369_v37, 0.0  ;;  %v239_v43 = vpack.c.bf16 %v369_v37, %v369_v37  ;;  %v371_v45 = vpop.eup %370  ;;  %vm285_vm1 = vmand %vm284_vm0, %vm192_vm10 }
 0x196   : > { %237 = vadd.xlane.f32.xlu2 %v236_v38  ;;  %v176_v46 = vmul.f32 %v371_v45, %v149_v44  ;;  %vm181_vm6 = vweird.f32 %v371_v45 }
 0x197   : > { %vm182_vm7 = vmor %vm180_vm5, %vm181_vm6 }
 0x198   : > { %v171_v39 = vpop.f32.mrf.mxu1  ;;  %v177_v47 = vsub.f32 1.0, %v176_v46 }
 0x19a   : > { %v178_v48 = vmul.f32 %v371_v45, %v177_v47 }
 0x19c   : > { %v179_v50 = vadd.f32 %v371_v45, %v178_v48 }
 0x19e   : > { %v183_v53 = vsel %vm182_vm7, %v371_v45, %v179_v50 }
 0x19f   : > { %v188_v54 = vsel %vm185_vm8, %v187_v52, %v183_v53 }
 0x1a0   : > { %v173_v42 = vpop.f32.mrf.mxu1  ;;  %v189_v55 = vmul.f32 %v188_v54, %v171_v39 }
 0x1a1   : > { %v244_v40 = vpop.permute.xlu1 %243 }
 0x1a2   : > { %v249_v41 = vand.u32 %v244_v40, %v158_v21  ;;  %v190_v56 = vpack.c.bf16 %v189_v55, %v189_v55 }
 0x1a4   : > { %258 = vmatpush.bf16.msra.mxu3 %v249_v41  ;;  %v195_v58 = vsel %vm193_vm11, %v190_v56, %v194_v57 }
 0x1a5   : > { %196 = vst [vmem:[%s433_s16] sm:$0x7] %v195_v58 }
 0x1a7   : > { %352 = vmatmul.msk.bf16.vlgmr.msra.gmra.mxu3 %vm151_vm4, %v239_v43 }
 0x1ac   : > { %v286_v10 = vld [vmem:[%s433_s16] sm:$0x7] }
 0x209   : > { %v238_v59 = vpop.xlane.xlu2 %237 }
 0x20a   : > { %372 = vrcp.f32 %v238_v59  ;;  %v275_v1 = vand.u32 2147483648, %v238_v59  ;;  %vm269_vm13 = vweird.f32 %v238_v59  ;;  %v273_v2 = vand.u32 2147483647, %v238_v59 }
 0x20c   : > { %v276_v4 = vor.u32 1.1754944e-38, %v275_v1  ;;  %vm274_vm15 = vcmp.eq.f32.partialorder %v273_v2, 8.507059e+37 }
 0x210   : > { %v373_v60 = vpop.eup %372 }
 0x211   : > { %v265_v61 = vmul.f32 %v373_v60, %v238_v59  ;;  %vm270_vm12 = vweird.f32 %v373_v60 }
 0x212   : > { %vm271_vm14 = vmor %vm269_vm13, %vm270_vm12 }
 0x213   : > { %v266_v62 = vsub.f32 1.0, %v265_v61 }
 0x215   : > { %v267_v63 = vmul.f32 %v373_v60, %v266_v62 }
 0x217   : > { %v268_v0 = vadd.f32 %v373_v60, %v267_v63 }
 0x219   : > { %v272_v3 = vsel %vm271_vm14, %v373_v60, %v268_v0 }
 0x21a   : > { %v277_v6 = vsel %vm274_vm15, %v276_v4, %v272_v3 }
 0x22a   : > { %v260_v5 = vpop.f32.mrf.mxu3 }
 0x22b   : > { %v278_v7 = vmul.f32 %v277_v6, %v260_v5 }
 0x22d   : > { %v279_v8 = vpack.c.bf16 %v278_v7, %v278_v7 }
 0x22f   : > { %281 = vrot.lane.b32.xlu2 %v279_v8, %s382_s12 }
 0x232   : > { %v262_v9 = vpop.f32.mrf.mxu3 }
 0x289   : > { %v282_v11 = vpop.permute.xlu2 %281 }
 0x28a   : > { %v287_v12 = vsel %vm285_vm1, %v282_v11, %v286_v10 }
 0x28b   : > { %288 = vst [vmem:[%s433_s16] sm:$0x7] %v287_v12 }
 0x28c PF: > { %s11_s6 = sadd.s32 1, %s380_s6  }
 0x28d   : > { %p8_p4 = scmp.ge.s32.totalorder %s11_s6, 4  }
 0x28f   :  { %10 = sbr.rel (!%p8_p4) target bundleno = 1 (0x1), region = 54 }

// kernel: _lambda_.13
= control target key start
LH: loop header
LB: loop body
LE: loop exit
PB: predicated region body
PF: predicated region fallthrough
CT: control target
= control target key end

     0   :  { %s354_s15 = smov 0   ;;  %s386_s0 = inlined_call_operand.vmem [shape: f32[2,5,128], index: 0, kind: input, shape index: {}]   ;;  %s387_s1 = inlined_call_operand.vmem [shape: f32[5,128], index: 1, kind: input, shape index: {}]   ;;  %s388_s2 = inlined_call_operand.vmem [shape: f32[1,128], index: 2, kind: input, shape index: {}]   ;;  %s389_s3 = inlined_call_operand.vmem [shape: f32[1,128], index: 3, kind: input, shape index: {}]   ;;  %s390_s4 = inlined_call_operand.vmem [shape: bf16[2,5,128], index: 4, kind: output, shape index: {}]  }
   0x1 LB: > { %s296_s16 = sadd.s32 4294967295, %s326_s15   ;;  %p300_p0 = scmp.ge.s32.totalorder %s326_s15, 1  ;;  %s326_s15 = sphi %s354_s15, %s14_s15  }
   0x2   : > { %p161_p1 = scmp.lt.s32.totalorder %s326_s15, 3 }
   0x4   : > { %p162_p2 = pnand %p300_p0, %p161_p1 }
   0x5   : > { %p185_p3 = scmp.lt.s32.totalorder (!%p162_p2), %s296_s16, 1 }
   0x6   : > { %165 = sbr.rel (%p162_p2) target bundleno = 289 (0x121), region = 36 }
   0xb   : > { %s392_s16 = smov (!%p185_p3, %s296_s16), 1  ;;  %v194_v0 = vld [vmem:[%s387_s1] sm:$0x1f]  ;;  %vm196_vm0 = vcmask 1044480   ;;  %v328_v4 = vmov 128.0   ;;  %vm237_vm5 = vcmask 1042432  }
   0xc   : > { %s301_s17 = sshll.u32 %s392_s16, 3  ;;  %316 = vrcp.f32 %v328_v4  ;;  %v314_v25 = vld [vmem:[%s388_s2] ss:$0 sm:$0xff]  ;;  %s302_s25 = sshll.u32 %s392_s16, 2  ;;  %vm238_vm6 = vsmask.f32 2304 }
   0xd   : > { %s188_s22 = scalar_lea.vmem %s386_s0, %s301_s17  ;;  %v315_v27 = vld [vmem:[%s389_s3] ss:$0 sm:$0xff]  ;;  %s192_s30 = scalar_lea.vmem %s390_s4, %s302_s25  ;;  %vm239_vm7 = vmand %vm237_vm5, %vm238_vm6 }
   0xe   : > { %v193_v1 = vld [vmem:[%s188_s22] sm:$0x1f] }
   0xf   : > { %v195_v2 = vadd.f32 %v194_v0, %v193_v1  ;;  %v240_v31 = vld [vmem:[%s192_s30] sm:$0x7] }
  0x11   : > { %v197_v3 = vsel %vm196_vm0, %v195_v2, 0.0 }
  0x12   : > { %198 = vadd.xlane.f32.xlu0 %v197_v3  ;;  %v317_v5 = vpop.eup %316 }
  0x13   : > { %v201_v6 = vmul.f32 128.0, %v317_v5  ;;  %vm205_vm1 = vweird.f32 %v317_v5 }
  0x15   : > { %v202_v7 = vsub.f32 1.0, %v201_v6 }
  0x17   : > { %v203_v8 = vmul.f32 %v317_v5, %v202_v7 }
  0x19   : > { %v204_v9 = vadd.f32 %v317_v5, %v203_v8 }
  0x1b   : > { %v206_v10 = vsel %vm205_vm1, %v317_v5, %v204_v9 }
  0x85   : > { %v199_v11 = vpop.xlane.xlu0 %198 }
  0x86   : > { %v207_v12 = vmul.f32 %v206_v10, %v199_v11 }
  0x88   : > { %v208_v13 = vsub.f32 %v195_v2, %v207_v12 }
  0x8a   : > { %v209_v14 = vmul.f32 %v208_v13, %v208_v13 }
  0x8c   : > { %v210_v15 = vsel %vm196_vm0, %v209_v14, 0.0 }
  0x8d   : > { %211 = vadd.xlane.f32.xlu0 %v210_v15 }
 0x100   : > { %v212_v16 = vpop.xlane.xlu0 %211 }
 0x101   : > { %v213_v17 = vmul.f32 %v212_v16, %v206_v10 }
 0x103   : > { %v214_v18 = vadd.f32 1e-05, %v213_v17 }
 0x105   : > { %318 = vrsqrt.f32 %v214_v18  ;;  %vm221_vm3 = vweird.f32 %v214_v18 }
 0x10b   : > { %v319_v19 = vpop.eup %318 }
 0x10c   : > { %v216_v20 = vmul.f32 %v319_v19, %v214_v18  ;;  %vm222_vm2 = vweird.f32 %v319_v19 }
 0x10d   : > { %vm223_vm4 = vmor %vm221_vm3, %vm222_vm2 }
 0x10e   : > { %v217_v21 = vmul.f32 %v319_v19, %v216_v20 }
 0x110   : > { %v218_v22 = vmul.f32 0.5, %v217_v21 }
 0x112   : > { %v219_v23 = vsub.f32 1.5, %v218_v22 }
 0x114   : > { %v220_v24 = vmul.f32 %v319_v19, %v219_v23 }
 0x116   : > { %v224_v26 = vsel %vm223_vm4, %v319_v19, %v220_v24 }
 0x117   : > { %v225_v28 = vmul.f32 %v224_v26, %v208_v13 }
 0x119   : > { %v230_v29 = vmul.f32 %v314_v25, %v225_v28 }
 0x11b   : > { %v235_v30 = vadd.f32 %v315_v27, %v230_v29 }
 0x11d   : > { %v236_v32 = vpack.c.bf16 %v235_v30, %v235_v30 }
 0x11f   : > { %v241_v33 = vsel %vm239_vm7, %v236_v32, %v240_v31 }
 0x120   : > { %242 = vst [vmem:[%s192_s30] sm:$0x7] %v241_v33 }
 0x121 PF: > { %s14_s15 = sadd.s32 1, %s326_s15  }
 0x122   : > { %p11_p4 = scmp.ge.s32.totalorder %s14_s15, 4  }
 0x124   :  { %13 = sbr.rel (!%p11_p4) target bundleno = 1 (0x1), region = 66 }

// kernel: _lambda_.14
= control target key start
LH: loop header
LB: loop body
LE: loop exit
PB: predicated region body
PF: predicated region fallthrough
CT: control target
= control target key end

     0   :  { %10 = vsyncpa [#allocation4], 0  ;;  %s942_s18 = smov 0   ;;  %s944_s19 = smov 0   ;;  %s1013_s0 = inlined_call_operand.vmem [shape: bf16[2,5,128], index: 0, kind: input, shape index: {}]   ;;  %s1014_s1 = inlined_call_operand.vmem [shape: f32[1,128], index: 1, kind: input, shape index: {}]   ;;  %s1015_s2 = inlined_call_operand.vmem [shape: f32[1,128], index: 2, kind: input, shape index: {}]   ;;  %s1016_s3 = inlined_call_operand.hbm [shape: bf16[128,384], index: 3, kind: input, shape index: {}]   ;;  %s1017_s4 = inlined_call_operand.vmem [shape: f32[1,384], index: 4, kind: input, shape index: {}]   ;;  %s1018_s5 = inlined_call_operand.vmem [shape: bf16[2,5,384], index: 5, kind: output, shape index: {}]  }
   0x1   :  { %s946_s20 = smov 0  }
   0x2 LB: > { %s673_s21 = sadd.s32 4294967295, %s906_s20   ;;  %s28_s22 = sadd.s32 1, %s902_s19  ;;  %s906_s20 = sphi %s946_s20, %s16_s20   ;;  %s902_s19 = sphi %s944_s19, %s1022_s19   ;;  %s898_s18 = sphi %s942_s18, %s1021_s18  }
   0x3   : > { %p30_p0 = scmp.ge.s32.totalorder %s28_s22, 2  ;;  %p675_p1 = scmp.ge.s32.totalorder %s906_s20, 1 }
   0x4   : > { %p181_p2 = scmp.lt.s32.totalorder %s906_s20, 3  ;;  %p814_p4 = scmp.eq.s32.totalorder %s673_s21, 0 }
   0x5   : > { %s1024_s22 = smov (%p30_p0, %s28_s22), 0  ;;  %s201_s25 = sshll.u32 %s1016_s3, 4  ;;  %s202_s25 = int_to_ptr.hbm [resolvable:$true] %s201_s25 }
   0x6   : > { %p182_p3 = pnand %p675_p1, %p181_p2  ;;  %s908_s26 = smov [#allocation3]  }
   0x7   : > { %s203_s27 = sshll.u32 %s908_s26, 4  ;;  %s909_s28 = smov 192   ;;  %s204_s27 = int_to_ptr.vmem [resolvable:$true] %s203_s27 }
   0x8   : > { %p810_p5 = pneg %p182_p3  ;;  %s910_s29 = smov 12  }
   0x9   : > { %234 = sbr.rel (%p182_p3) target bundleno = 443 (0x1bb), region = 40 }
   0xa   : > { %p811_p6 = pnand %p814_p4, %p810_p5 }
   0xc   : > { %813 = dma.hbm_to_vmem [thread:$0]  (!%p811_p6), %s202_s25, 3072, %s204_s27, [#allocation4], %s909_s28, %s909_s28, %s910_s29  }
   0xe   : > { %893 = dma.done.wait (%p814_p4), [#allocation4], 3072  }
   0xf   : > { %895 = vsyncadd (%p814_p4), [#allocation4], 4294964224  ;;  %p270_p7 = scmp.lt.s32.totalorder %s898_s18, 1  ;;  %vm296_vm0 = vcmask 1044480   ;;  %v911_v3 = vmov 128.0   ;;  %vm337_vm5 = vcmask 1042432  }
  0x10   : > { %846 = vrcp.f32 %v911_v3  ;;  %v769_v15 = vld [vmem:[#allocation3 + $0xa8] sm:$0xf]  ;;  %v803_v16 = vld [vmem:[#allocation3 + $0xb0] sm:$0xf0]  ;;  %v802_v17 = vld [vmem:[#allocation3 + $0xac] sm:$0xf] }
  0x11   : > { %s1026_s18 = smov (!%p270_p7, %s898_s18), 1  ;;  %v770_v18 = vor.u32 %v803_v16, %v769_v15  ;;  %v771_v19 = vld [vmem:[#allocation3 + $0xb4] sm:$0xf0]  ;;  %v777_v20 = vld [vmem:[#allocation3 + $0xb0] sm:$0xf]  ;;  %vm556_vm8 = vcmask 1046532  }
  0x12   : > { %s681_s30 = sshll.u32 %s1026_s18, 2  ;;  %v804_v21 = vld [vmem:[#allocation3 + $0xb8] sm:$0xf0]  ;;  %v774_v22 = vor.u32 %v802_v17, %v771_v19  ;;  %v757_v24 = vld [vmem:[#allocation3 + $0x90] sm:$0xf]  ;;  %s805_s15 = smul.u32 12, %s1026_s18 }
  0x13   : > { %s273_s8 = scalar_lea.vmem %s1013_s0, %s681_s30  ;;  %v778_v23 = vor.u32 %v804_v21, %v777_v20  ;;  %512 = vmatpush.bf16.msra.mxu0 %v770_v18  ;;  %v800_v25 = vld [vmem:[#allocation3 + $0x98] sm:$0xf0]  ;;  %v799_v26 = vld [vmem:[#allocation3 + $0x94] sm:$0xf]  ;;  %v759_v28 = vld [vmem:[#allocation3 + $0x9c] sm:$0xf0] }
  0x14   : > { %v294_v0 = vld [vmem:[%s273_s8] sm:$0x7]  ;;  %525 = vmatpush.bf16.msra.mxu1 %v774_v22  ;;  %v758_v27 = vor.u32 %v800_v25, %v757_v24  ;;  %v765_v29 = vld [vmem:[#allocation3 + $0x98] sm:$0xf]  ;;  %v801_v30 = vld [vmem:[#allocation3 + $0xa0] sm:$0xf0]  ;;  %v762_v31 = vor.u32 %v799_v26, %v759_v28  ;;  %s288_s21 = scalar_lea.vmem %s1018_s5, %s805_s15 }
  0x15   : > { %v295_v1 = vunpack.c.l.bf16 %v294_v0  ;;  %538 = vmatpush.bf16.msra.mxu2 %v778_v23  ;;  %v766_v32 = vor.u32 %v801_v30, %v765_v29  ;;  %v745_v33 = vld [vmem:[#allocation3 + $0x78] sm:$0xf]  ;;  %v797_v34 = vld [vmem:[#allocation3 + $0x80] sm:$0xf0]  ;;  %v796_v35 = vld [vmem:[#allocation3 + $0x7c] sm:$0xf] }
  0x16   : > { %v847_v4 = vpop.eup %846  ;;  %v746_v36 = vor.u32 %v797_v34, %v745_v33  ;;  %v747_v37 = vld [vmem:[#allocation3 + $0x84] sm:$0xf0]  ;;  %v753_v38 = vld [vmem:[#allocation3 + $0x80] sm:$0xf]  ;;  %v798_v39 = vld [vmem:[#allocation3 + $0x88] sm:$0xf0] }
  0x17   : > { %v297_v2 = vsel %vm296_vm0, %v295_v1, 0.0  ;;  %v301_v5 = vmul.f32 128.0, %v847_v4  ;;  %vm305_vm1 = vweird.f32 %v847_v4  ;;  %513 = vmatpush.bf16.msra.mxu0 %v758_v27  ;;  %v750_v40 = vor.u32 %v796_v35, %v747_v37  ;;  %v733_v42 = vld [vmem:[#allocation3 + $0x60] sm:$0xf]  ;;  %v794_v43 = vld [vmem:[#allocation3 + $0x68] sm:$0xf0] }
  0x18   : > { %298 = vadd.xlane.f32.xlu0 %v297_v2  ;;  %526 = vmatpush.bf16.msra.mxu1 %v762_v31  ;;  %v754_v41 = vor.u32 %v798_v39, %v753_v38  ;;  %v793_v44 = vld [vmem:[#allocation3 + $0x64] sm:$0xf]  ;;  %v734_v45 = vor.u32 %v794_v43, %v733_v42  ;;  %v735_v46 = vld [vmem:[#allocation3 + $0x6c] sm:$0xf0]  ;;  %v741_v47 = vld [vmem:[#allocation3 + $0x68] sm:$0xf] }
  0x19   : > { %v302_v6 = vsub.f32 1.0, %v301_v5  ;;  %539 = vmatpush.bf16.msra.mxu2 %v766_v32  ;;  %v795_v48 = vld [vmem:[#allocation3 + $0x70] sm:$0xf0]  ;;  %v738_v49 = vor.u32 %v793_v44, %v735_v46  ;;  %v721_v51 = vld [vmem:[#allocation3 + $0x48] sm:$0xf] }
  0x1a   : > { %v742_v50 = vor.u32 %v795_v48, %v741_v47  ;;  %v791_v52 = vld [vmem:[#allocation3 + $0x50] sm:$0xf0]  ;;  %v790_v53 = vld [vmem:[#allocation3 + $0x4c] sm:$0xf]  ;;  %v723_v55 = vld [vmem:[#allocation3 + $0x54] sm:$0xf0] }
  0x1b   : > { %v303_v7 = vmul.f32 %v847_v4, %v302_v6  ;;  %514 = vmatpush.bf16.msra.mxu0 %v746_v36  ;;  %v722_v54 = vor.u32 %v791_v52, %v721_v51  ;;  %v729_v56 = vld [vmem:[#allocation3 + $0x50] sm:$0xf]  ;;  %v792_v57 = vld [vmem:[#allocation3 + $0x58] sm:$0xf0]  ;;  %v726_v58 = vor.u32 %v790_v53, %v723_v55  ;;  %v787_v62 = vld [vmem:[#allocation3 + $0x34] sm:$0xf] }
  0x1c   : > { %527 = vmatpush.bf16.msra.mxu1 %v750_v40  ;;  %v730_v59 = vor.u32 %v792_v57, %v729_v56  ;;  %v709_v60 = vld [vmem:[#allocation3 + $0x30] sm:$0xf]  ;;  %v788_v61 = vld [vmem:[#allocation3 + $0x38] sm:$0xf0]  ;;  %v711_v0 = vld [vmem:[#allocation3 + $0x3c] sm:$0xf0] }
  0x1d   : > { %v304_v8 = vadd.f32 %v847_v4, %v303_v7  ;;  %540 = vmatpush.bf16.msra.mxu2 %v754_v41  ;;  %v710_v63 = vor.u32 %v788_v61, %v709_v60  ;;  %v789_v2 = vld [vmem:[#allocation3 + $0x40] sm:$0xf0]  ;;  %v714_v3 = vor.u32 %v787_v62, %v711_v0  ;;  %v697_v5 = vld [vmem:[#allocation3 + $0x18] sm:$0xf]  ;;  %v784_v7 = vld [vmem:[#allocation3 + $0x1c] sm:$0xf] }
  0x1e   : > { %v785_v6 = vld [vmem:[#allocation3 + $0x20] sm:$0xf0]  ;;  %v685_v17 = vld [vmem:[#allocation3] sm:$0xf]  ;;  %v782_v18 = vld [vmem:[#allocation3 + $0x8] sm:$0xf0] }
  0x1f   : > { %v971_v9 = vsel %vm305_vm1, %v847_v4, %v304_v8  ;;  %515 = vmatpush.bf16.msra.mxu0 %v734_v45  ;;  %v698_v8 = vor.u32 %v785_v6, %v697_v5  ;;  %v781_v19 = vld [vmem:[#allocation3 + $0x4] sm:$0xf]  ;;  %v686_v21 = vor.u32 %v782_v18, %v685_v17  ;;  %v687_v22 = vld [vmem:[#allocation3 + $0xc] sm:$0xf0]  ;;  %v693_v23 = vld [vmem:[#allocation3 + $0x8] sm:$0xf] }
  0x20   : > { %528 = vmatpush.bf16.msra.mxu1 %v738_v49  ;;  %v783_v24 = vld [vmem:[#allocation3 + $0x10] sm:$0xf0]  ;;  %v690_v25 = vor.u32 %v781_v19, %v687_v22  ;;  %v844_v33 = vld [vmem:[%s1014_s1] ss:$0 sm:$0xff]  ;;  %vm338_vm6 = vsmask.f32 2304 }
  0x21   : > { %541 = vmatpush.bf16.msra.mxu2 %v742_v50  ;;  %v694_v26 = vor.u32 %v783_v24, %v693_v23  ;;  %v845_v35 = vld [vmem:[%s1015_s2] ss:$0 sm:$0xff]  ;;  %vm987_vm7 = vmand %vm337_vm5, %vm338_vm6  ;;  %vm557_vm9 = vsmask.f32 6400 }
  0x22   : > { %v340_v40 = vld [vmem:[#allocation2] sm:$0x7]  ;;  %vm558_vm10 = vmand %vm556_vm8, %vm557_vm9 }
  0x23   : > { %516 = vmatpush.bf16.msra.mxu0 %v722_v54  ;;  %vm559_vm11 = vmor %vm558_vm10, %vm987_vm7  ;;  %v560_v50 = vld [vmem:[%s288_s21] sm:$0x77] }
  0x24   : > { %529 = vmatpush.bf16.msra.mxu1 %v726_v58  ;;  %v563_v58 = vld [vmem:[%s288_s21 + $0x8] sm:$0x7] }
  0x25   : > { %542 = vmatpush.bf16.msra.mxu2 %v730_v59 }
  0x27   : > { %517 = vmatpush.bf16.msra.mxu0 %v710_v63 }
  0x28   : > { %530 = vmatpush.bf16.msra.mxu1 %v714_v3 }
  0x2b   : > { %518 = vmatpush.bf16.msra.mxu0 %v698_v8 }
  0x2f   : > { %519 = vmatpush.bf16.msra.mxu0 %v686_v21 }
  0x8b   : > { %v299_v10 = vpop.xlane.xlu0 %298 }
  0x8c   : > { %v307_v11 = vmul.f32 %v971_v9, %v299_v10  ;;  %v699_v10 = vld [vmem:[#allocation3 + $0x24] sm:$0xf0] }
  0x8d   : > { %v702_v15 = vor.u32 %v784_v7, %v699_v10 }
  0x8e   : > { %v974_v12 = vsub.f32 %v295_v1, %v307_v11  ;;  %v717_v1 = vld [vmem:[#allocation3 + $0x38] sm:$0xf]  ;;  %v705_v11 = vld [vmem:[#allocation3 + $0x20] sm:$0xf] }
  0x8f   : > { %v718_v4 = vor.u32 %v789_v2, %v717_v1  ;;  %531 = vmatpush.bf16.msra.mxu1 %v702_v15 }
  0x90   : > { %v309_v13 = vmul.f32 %v974_v12, %v974_v12 }
  0x91   : > { %543 = vmatpush.bf16.msra.mxu2 %v718_v4 }
  0x92   : > { %v310_v14 = vsel %vm296_vm0, %v309_v13, 0.0  ;;  %v786_v13 = vld [vmem:[#allocation3 + $0x28] sm:$0xf0] }
  0x93   : > { %311 = vadd.xlane.f32.xlu0 %v310_v14  ;;  %v706_v16 = vor.u32 %v786_v13, %v705_v11  ;;  %532 = vmatpush.bf16.msra.mxu1 %v690_v25 }
  0x95   : > { %544 = vmatpush.bf16.msra.mxu2 %v706_v16 }
  0x99   : > { %545 = vmatpush.bf16.msra.mxu2 %v694_v26 }
 0x106   : > { %v312_v14 = vpop.xlane.xlu0 %311 }
 0x107   : > { %v313_v20 = vmul.f32 %v312_v14, %v971_v9 }
 0x109   : > { %v314_v27 = vadd.f32 1e-05, %v313_v20 }
 0x10b   : > { %848 = vrsqrt.f32 %v314_v27  ;;  %vm321_vm3 = vweird.f32 %v314_v27 }
 0x111   : > { %v849_v28 = vpop.eup %848 }
 0x112   : > { %v316_v29 = vmul.f32 %v849_v28, %v314_v27  ;;  %vm322_vm2 = vweird.f32 %v849_v28 }
 0x113   : > { %vm323_vm4 = vmor %vm321_vm3, %vm322_vm2 }
 0x114   : > { %v317_v30 = vmul.f32 %v849_v28, %v316_v29 }
 0x116   : > { %v318_v31 = vmul.f32 0.5, %v317_v30 }
 0x118   : > { %v319_v32 = vsub.f32 1.5, %v318_v31 }
 0x11a   : > { %v320_v9 = vmul.f32 %v849_v28, %v319_v32 }
 0x11c   : > { %v324_v34 = vsel %vm323_vm4, %v849_v28, %v320_v9 }
 0x11d   : > { %v325_v36 = vmul.f32 %v324_v34, %v974_v12  ;;  %v376_v12 = vld [vmem:[%s1017_s4] sm:$0x7] }
 0x11e   : > { %v378_v44 = vperm.slane %v376_v12, 0  ;;  %v379_v45 = vperm.slane %v376_v12, 1  ;;  %v380_v52 = vperm.slane %v376_v12, 2 }
 0x11f   : > { %v330_v37 = vmul.f32 %v844_v33, %v325_v36 }
 0x121   : > { %v335_v38 = vadd.f32 %v845_v35, %v330_v37 }
 0x123   : > { %v336_v41 = vpack.c.bf16 %v335_v38, %v335_v38 }
 0x125   : > { %v341_v42 = vsel %vm987_vm7, %v336_v41, %v340_v40 }
 0x126   : > { %342 = vst [vmem:[#allocation2] sm:$0x7] %v341_v42 }
 0x12d   : > { %v343_v43 = vld [vmem:[#allocation2] sm:$0x7] }
 0x12e   : > { %520 = vmatmul.bf16.vlgmr.msra.gmra.mxu0 %v343_v43  ;;  %533 = vmatmul.bf16.vlgmr.msra.gmra.mxu1 %v343_v43 }
 0x12f   : > { %546 = vmatmul.bf16.vlgmr.msra.gmra.mxu2 %v343_v43 }
 0x1ab   : > { %v521_v46 = vpop.f32.mrf.mxu0  ;;  %v534_v47 = vpop.f32.mrf.mxu1 }
 0x1ac   : > { %v522_v48 = vadd.f32 %v521_v46, %v378_v44  ;;  %v535_v49 = vadd.f32 %v534_v47, %v379_v45 }
 0x1ae   : > { %v551_v51 = vpack.c.bf16 %v535_v49, %v522_v48 }
 0x1b0   : > { %v561_v53 = vsel %vm559_vm11, %v551_v51, %v560_v50 }
 0x1b1   : > { %562 = vst [vmem:[%s288_s21] sm:$0x77] %v561_v53 }
 0x1b2   : > { %v547_v54 = vpop.f32.mrf.mxu2 }
 0x1b3   : > { %v548_v55 = vadd.f32 %v547_v54, %v380_v52  ;;  %v523_v56 = vpop.f32.mrf.mxu0  ;;  %v536_v57 = vpop.f32.mrf.mxu1 }
 0x1b5   : > { %v552_v59 = vpack.c.bf16 %v548_v55, %v548_v55 }
 0x1b7   : > { %v564_v60 = vsel %vm987_vm7, %v552_v59, %v563_v58 }
 0x1b8   : > { %565 = vst [vmem:[%s288_s21 + $0x8] sm:$0x7] %v564_v60 }
 0x1ba   : > { %v549_v61 = vpop.f32.mrf.mxu2 }
 0x1bb PF: > { %s16_s20 = sadd.s32 1, %s906_s20   ;;  %s1021_s18 = smov %s902_s19 }
 0x1bc   : > { %p13_p8 = scmp.ge.s32.totalorder %s16_s20, 4   ;;  %s1022_s19 = smov %s1024_s22 }
 0x1be   :  { %15 = sbr.rel (!%p13_p8) target bundleno = 2 (0x2), region = 83 }
 0x1c3   :  { %596 = vsyncpa [#allocation4], 1 }
 0x1c4   :  { %598 = vsyncpa [#allocation4 + $0x1], 1 }

// kernel: _lambda_.12
= control target key start
LH: loop header
LB: loop body
LE: loop exit
PB: predicated region body
PF: predicated region fallthrough
CT: control target
= control target key end

     0   :  { %s1031_s1 = inlined_call_operand.vmem [shape: bf16[768,128], index: 1, kind: input, shape index: {}]   ;;  %s1032_s0 = inlined_call_operand.vmem [shape: bf16[16,768], index: 0, kind: input, shape index: {}]   ;;  %s1033_s2 = inlined_call_operand.vmem [shape: f32[1,128], index: 2, kind: input, shape index: {}]   ;;  %s1034_s3 = inlined_call_operand.vmem [shape: bf16[16,128], index: 3, kind: output, shape index: {}]  }
   0x1   :  { %v778_v0 = vld [vmem:[%s1031_s1 + $0x38] sm:$0xff]  ;;  %v777_v4 = vld [vmem:[%s1031_s1 + $0x30] sm:$0xff]  ;;  %v776_v8 = vld [vmem:[%s1031_s1 + $0x28] sm:$0xff] }
   0x2   :  { %v786_v1 = vld [vmem:[%s1031_s1 + $0x78] sm:$0xff]  ;;  %442 = vmatpush.bf16.msra.mxu0 %v778_v0  ;;  %v785_v5 = vld [vmem:[%s1031_s1 + $0x70] sm:$0xff]  ;;  %v784_v9 = vld [vmem:[%s1031_s1 + $0x68] sm:$0xff] }
   0x3   :  { %v794_v2 = vld [vmem:[%s1031_s1 + $0xb8] sm:$0xff]  ;;  %456 = vmatpush.bf16.msra.mxu1 %v786_v1  ;;  %v793_v6 = vld [vmem:[%s1031_s1 + $0xb0] sm:$0xff]  ;;  %v792_v10 = vld [vmem:[%s1031_s1 + $0xa8] sm:$0xff] }
   0x4   :  { %v802_v3 = vld [vmem:[%s1031_s1 + $0xf8] sm:$0xff]  ;;  %470 = vmatpush.bf16.msra.mxu2 %v794_v2  ;;  %v801_v7 = vld [vmem:[%s1031_s1 + $0xf0] sm:$0xff]  ;;  %v800_v11 = vld [vmem:[%s1031_s1 + $0xe8] sm:$0xff] }
   0x5   :  { %484 = vmatpush.bf16.msra.mxu3 %v802_v3  ;;  %v775_v12 = vld [vmem:[%s1031_s1 + $0x20] sm:$0xff]  ;;  %v774_v16 = vld [vmem:[%s1031_s1 + $0x18] sm:$0xff]  ;;  %v773_v20 = vld [vmem:[%s1031_s1 + $0x10] sm:$0xff] }
   0x6   :  { %443 = vmatpush.bf16.msra.mxu0 %v777_v4  ;;  %v783_v13 = vld [vmem:[%s1031_s1 + $0x60] sm:$0xff]  ;;  %v782_v17 = vld [vmem:[%s1031_s1 + $0x58] sm:$0xff]  ;;  %v781_v21 = vld [vmem:[%s1031_s1 + $0x50] sm:$0xff] }
   0x7   :  { %457 = vmatpush.bf16.msra.mxu1 %v785_v5  ;;  %v791_v14 = vld [vmem:[%s1031_s1 + $0xa0] sm:$0xff]  ;;  %v790_v18 = vld [vmem:[%s1031_s1 + $0x98] sm:$0xff]  ;;  %v789_v22 = vld [vmem:[%s1031_s1 + $0x90] sm:$0xff] }
   0x8   :  { %471 = vmatpush.bf16.msra.mxu2 %v793_v6  ;;  %v799_v15 = vld [vmem:[%s1031_s1 + $0xe0] sm:$0xff]  ;;  %v798_v19 = vld [vmem:[%s1031_s1 + $0xd8] sm:$0xff]  ;;  %v797_v23 = vld [vmem:[%s1031_s1 + $0xd0] sm:$0xff] }
   0x9   :  { %485 = vmatpush.bf16.msra.mxu3 %v801_v7  ;;  %v772_v24 = vld [vmem:[%s1031_s1 + $0x8] sm:$0xff]  ;;  %v771_v28 = vld [vmem:[%s1031_s1] sm:$0xff]  ;;  %v810_v31 = vld [vmem:[%s1031_s1 + $0x138] sm:$0xff] }
   0xa   :  { %444 = vmatpush.bf16.msra.mxu0 %v776_v8  ;;  %v780_v25 = vld [vmem:[%s1031_s1 + $0x48] sm:$0xff]  ;;  %v779_v29 = vld [vmem:[%s1031_s1 + $0x40] sm:$0xff]  ;;  %v768_v33 = vld [vmem:[%s1032_s0 + $0x14] sm:$0xf0] }
   0xb   :  { %458 = vmatpush.bf16.msra.mxu1 %v784_v9  ;;  %v788_v26 = vld [vmem:[%s1031_s1 + $0x88] sm:$0xff]  ;;  %v787_v30 = vld [vmem:[%s1031_s1 + $0x80] sm:$0xff]  ;;  %v553_v35 = vld [vmem:[%s1032_s0 + $0x18] sm:$0xf0] }
   0xc   :  { %472 = vmatpush.bf16.msra.mxu2 %v792_v10  ;;  %v796_v27 = vld [vmem:[%s1031_s1 + $0xc8] sm:$0xff]  ;;  %v551_v32 = vld [vmem:[%s1032_s0] sm:$0xf]  ;;  %v765_v34 = vld [vmem:[%s1032_s0 + $0x4] sm:$0xf] }
   0xd   :  { %486 = vmatpush.bf16.msra.mxu3 %v800_v11  ;;  %v818_v36 = vld [vmem:[%s1031_s1 + $0x178] sm:$0xff]  ;;  %v559_v37 = vld [vmem:[%s1032_s0 + $0x8] sm:$0xf]  ;;  %v769_v38 = vld [vmem:[%s1032_s0 + $0x1c] sm:$0xf0]  ;;  %v552_v42 = vor.u32 %v768_v33, %v551_v32  ;;  %v556_v43 = vor.u32 %v765_v34, %v553_v35 }
   0xe   :  { %445 = vmatpush.bf16.msra.mxu0 %v775_v12  ;;  %v795_v39 = vld [vmem:[%s1031_s1 + $0xc0] sm:$0xff]  ;;  %v766_v40 = vld [vmem:[%s1032_s0 + $0xc] sm:$0xf]  ;;  %v560_v44 = vor.u32 %v769_v38, %v559_v37  ;;  %v809_v45 = vld [vmem:[%s1031_s1 + $0x130] sm:$0xff] }
   0xf   :  { %459 = vmatpush.bf16.msra.mxu1 %v783_v13  ;;  %v561_v41 = vld [vmem:[%s1032_s0 + $0x20] sm:$0xf0]  ;;  %v817_v47 = vld [vmem:[%s1031_s1 + $0x170] sm:$0xff]  ;;  %v808_v48 = vld [vmem:[%s1031_s1 + $0x128] sm:$0xff] }
  0x10   :  { %473 = vmatpush.bf16.msra.mxu2 %v791_v14  ;;  %v564_v46 = vor.u32 %v766_v40, %v561_v41  ;;  %v816_v49 = vld [vmem:[%s1031_s1 + $0x168] sm:$0xff]  ;;  %v807_v50 = vld [vmem:[%s1031_s1 + $0x120] sm:$0xff]  ;;  %v806_v52 = vld [vmem:[%s1031_s1 + $0x118] sm:$0xff] }
  0x11   :  { %487 = vmatpush.bf16.msra.mxu3 %v799_v15  ;;  %v815_v51 = vld [vmem:[%s1031_s1 + $0x160] sm:$0xff]  ;;  %v814_v53 = vld [vmem:[%s1031_s1 + $0x158] sm:$0xff]  ;;  %v805_v54 = vld [vmem:[%s1031_s1 + $0x110] sm:$0xff] }
  0x12   :  { %446 = vmatpush.bf16.msra.mxu0 %v774_v16  ;;  %v813_v55 = vld [vmem:[%s1031_s1 + $0x150] sm:$0xff]  ;;  %v804_v56 = vld [vmem:[%s1031_s1 + $0x108] sm:$0xff]  ;;  %v803_v58 = vld [vmem:[%s1031_s1 + $0x100] sm:$0xff] }
  0x13   :  { %460 = vmatpush.bf16.msra.mxu1 %v782_v17  ;;  %v812_v57 = vld [vmem:[%s1031_s1 + $0x148] sm:$0xff]  ;;  %v567_v59 = vld [vmem:[%s1032_s0 + $0x10] sm:$0xf]  ;;  %v811_v61 = vld [vmem:[%s1031_s1 + $0x140] sm:$0xff] }
  0x14   :  { %474 = vmatpush.bf16.msra.mxu2 %v790_v18  ;;  %v770_v60 = vld [vmem:[%s1032_s0 + $0x24] sm:$0xf0]  ;;  %v767_v62 = vld [vmem:[%s1032_s0 + $0x14] sm:$0xf]  ;;  %v569_v63 = vld [vmem:[%s1032_s0 + $0x28] sm:$0xf0] }
  0x15   :  { %488 = vmatpush.bf16.msra.mxu3 %v798_v19  ;;  %v568_v0 = vor.u32 %v770_v60, %v567_v59  ;;  %v572_v1 = vor.u32 %v767_v62, %v569_v63 }
  0x16   :  { %447 = vmatpush.bf16.msra.mxu0 %v773_v20 }
  0x17   :  { %461 = vmatpush.bf16.msra.mxu1 %v781_v21  ;;  %v824_v21 = vld [vmem:[%s1033_s2] ss:$0 sm:$0xff] }
  0x18   :  { %475 = vmatpush.bf16.msra.mxu2 %v789_v22 }
  0x19   :  { %489 = vmatpush.bf16.msra.mxu3 %v797_v23 }
  0x1a   :  { %448 = vmatpush.bf16.msra.mxu0 %v772_v24 }
  0x1b   :  { %462 = vmatpush.bf16.msra.mxu1 %v780_v25 }
  0x1c   :  { %476 = vmatpush.bf16.msra.mxu2 %v788_v26 }
  0x1d   :  { %490 = vmatpush.bf16.msra.mxu3 %v796_v27 }
  0x1e   :  { %449 = vmatpush.bf16.msra.mxu0 %v771_v28 }
  0x1f   :  { %463 = vmatpush.bf16.msra.mxu1 %v779_v29 }
  0x20   :  { %477 = vmatpush.bf16.msra.mxu2 %v787_v30 }
  0x21   :  { %491 = vmatpush.bf16.msra.mxu3 %v795_v39  ;;  %450 = vmatmul.bf16.vlgmr.msra.gmra.mxu0 %v552_v42 }
  0x22   :  { %498 = vmatpush.bf16.msrb.mxu0 %v810_v31  ;;  %464 = vmatmul.bf16.vlgmr.msra.gmra.mxu1 %v556_v43 }
  0x23   :  { %512 = vmatpush.bf16.msrb.mxu1 %v818_v36  ;;  %478 = vmatmul.bf16.vlgmr.msra.gmra.mxu2 %v560_v44 }
  0x24   :  { %492 = vmatmul.bf16.vlgmr.msra.gmra.mxu3 %v564_v46 }
  0x26   :  { %499 = vmatpush.bf16.msrb.mxu0 %v809_v45 }
  0x27   :  { %513 = vmatpush.bf16.msrb.mxu1 %v817_v47 }
  0x2a   :  { %500 = vmatpush.bf16.msrb.mxu0 %v808_v48 }
  0x2b   :  { %514 = vmatpush.bf16.msrb.mxu1 %v816_v49 }
  0x2e   :  { %501 = vmatpush.bf16.msrb.mxu0 %v807_v50 }
  0x2f   :  { %515 = vmatpush.bf16.msrb.mxu1 %v815_v51 }
  0x32   :  { %502 = vmatpush.bf16.msrb.mxu0 %v806_v52 }
  0x33   :  { %516 = vmatpush.bf16.msrb.mxu1 %v814_v53 }
  0x36   :  { %503 = vmatpush.bf16.msrb.mxu0 %v805_v54 }
  0x37   :  { %517 = vmatpush.bf16.msrb.mxu1 %v813_v55 }
  0x3a   :  { %504 = vmatpush.bf16.msrb.mxu0 %v804_v56 }
  0x3b   :  { %518 = vmatpush.bf16.msrb.mxu1 %v812_v57 }
  0x3e   :  { %505 = vmatpush.bf16.msrb.mxu0 %v803_v58 }
  0x3f   :  { %519 = vmatpush.bf16.msrb.mxu1 %v811_v61 }
  0x41   :  { %506 = vmatmul.bf16.vlgmr.msrb.gmra.mxu0 %v568_v0 }
  0x42   :  { %520 = vmatmul.bf16.vlgmr.msrb.gmra.mxu1 %v572_v1 }
  0x9e   :  { %v451_v2 = vpop.f32.mrf.mxu0 }
  0x9f   :  { %v465_v3 = vpop.f32.mrf.mxu1 }
  0xa0   :  { %v466_v8 = vadd.f32 %v465_v3, %v451_v2 }
  0xa6   :  { %v479_v4 = vpop.f32.mrf.mxu2  ;;  %v453_v5 = vpop.f32.mrf.mxu0 }
  0xa7   :  { %v467_v6 = vpop.f32.mrf.mxu1  ;;  %v493_v7 = vpop.f32.mrf.mxu3  ;;  %v480_v9 = vadd.f32 %v479_v4, %v466_v8 }
  0xa8   :  { %v468_v10 = vadd.f32 %v467_v6, %v453_v5 }
  0xa9   :  { %v494_v14 = vadd.f32 %v493_v7, %v480_v9 }
  0xae   :  { %v481_v11 = vpop.f32.mrf.mxu2 }
  0xaf   :  { %v482_v15 = vadd.f32 %v481_v11, %v468_v10  ;;  %v495_v16 = vpop.f32.mrf.mxu3 }
  0xb1   :  { %v496_v18 = vadd.f32 %v495_v16, %v482_v15 }
  0xbe   :  { %v507_v12 = vpop.f32.mrf.mxu0 }
  0xbf   :  { %v521_v13 = vpop.f32.mrf.mxu1  ;;  %v508_v17 = vadd.f32 %v507_v12, %v494_v14 }
  0xc1   :  { %v522_v20 = vadd.f32 %v521_v13, %v508_v17 }
  0xc3   :  { %v539_v25 = vadd.f32 %v824_v21, %v522_v20 }
  0xc6   :  { %v509_v19 = vpop.f32.mrf.mxu0 }
  0xc7   :  { %v510_v22 = vadd.f32 %v509_v19, %v496_v18  ;;  %v523_v23 = vpop.f32.mrf.mxu1 }
  0xc9   :  { %v524_v24 = vadd.f32 %v523_v23, %v510_v22 }
  0xcb   :  { %v540_v26 = vadd.f32 %v824_v21, %v524_v24 }
  0xcd   :  { %v822_v27 = vpack.c.bf16 %v540_v26, %v539_v25 }
  0xcf   :  { %823 = vst [vmem:[%s1034_s3] sm:$0xff] %v822_v27  }

// kernel: _lambda_.16
= control target key start
LH: loop header
LB: loop body
LE: loop exit
PB: predicated region body
PF: predicated region fallthrough
CT: control target
= control target key end

     0   :  { %s459_s15 = smov 0   ;;  %s506_s0 = inlined_call_operand.vmem [shape: bf16[2,5,128], index: 0, kind: input, shape index: {}]   ;;  %s507_s1 = inlined_call_operand.vmem [shape: bf16[128,128], index: 1, kind: input, shape index: {}]   ;;  %s508_s2 = inlined_call_operand.vmem [shape: f32[1,128], index: 2, kind: input, shape index: {}]   ;;  %s509_s3 = inlined_call_operand.vmem [shape: bf16[2,5,128], index: 3, kind: input, shape index: {}, may-alias: {3,4}]   ;;  %s510_s4 = inlined_call_operand.vmem [shape: bf16[2,5,128], index: 4, kind: output, shape index: {}, may-alias: {3,4}]  }
   0x1 LB: > { %s367_s16 = sadd.s32 4294967295, %s432_s15   ;;  %p371_p0 = scmp.ge.s32.totalorder %s432_s15, 1  ;;  %s432_s15 = sphi %s459_s15, %s14_s15  }
   0x2   : > { %p170_p1 = scmp.lt.s32.totalorder %s432_s15, 3 }
   0x4   : > { %p171_p2 = pnand %p371_p0, %p170_p1 }
   0x5   : > { %p198_p3 = scmp.lt.s32.totalorder (!%p171_p2), %s367_s16, 1 }
   0x6   : > { %174 = sbr.rel (%p171_p2) target bundleno = 177 (0xb1), region = 36 }
   0xb   : > { %v416_v0 = vld [vmem:[%s507_s1 + $0x38] sm:$0xff]  ;;  %v415_v1 = vld [vmem:[%s507_s1 + $0x30] sm:$0xff]  ;;  %v414_v2 = vld [vmem:[%s507_s1 + $0x28] sm:$0xff]  ;;  %s512_s16 = smov (!%p198_p3, %s367_s16), 1  ;;  %vm296_vm0 = vcmask 1042432  }
   0xc   : > { %279 = vmatpush.bf16.msra.mxu0 %v416_v0  ;;  %v413_v3 = vld [vmem:[%s507_s1 + $0x20] sm:$0xff]  ;;  %v412_v4 = vld [vmem:[%s507_s1 + $0x18] sm:$0xff]  ;;  %v411_v5 = vld [vmem:[%s507_s1 + $0x10] sm:$0xff]  ;;  %s372_s5 = sshll.u32 %s512_s16, 2  ;;  %vm297_vm1 = vsmask.f32 2304 }
   0xd   : > { %v410_v6 = vld [vmem:[%s507_s1 + $0x8] sm:$0xff]  ;;  %v409_v7 = vld [vmem:[%s507_s1] sm:$0xff]  ;;  %s201_s10 = scalar_lea.vmem %s506_s0, %s372_s5  ;;  %s205_s13 = scalar_lea.vmem %s509_s3, %s372_s5  ;;  %vm298_vm2 = vmand %vm296_vm0, %vm297_vm1 }
   0xe   : > { %v210_v8 = vld [vmem:[%s201_s10] sm:$0x7]  ;;  %s209_s19 = scalar_lea.vmem %s510_s4, %s372_s5 }
   0xf   : > { %v292_v9 = vld [vmem:[%s205_s13] sm:$0x7] }
  0x10   : > { %280 = vmatpush.bf16.msra.mxu0 %v415_v1  ;;  %v425_v10 = vld [vmem:[%s508_s2] ss:$0 sm:$0xff]  ;;  %v293_v11 = vunpack.c.l.bf16 %v292_v9 }
  0x11   : > { %v299_v15 = vld [vmem:[%s209_s19] sm:$0x7] }
  0x14   : > { %281 = vmatpush.bf16.msra.mxu0 %v414_v2 }
  0x18   : > { %282 = vmatpush.bf16.msra.mxu0 %v413_v3 }
  0x1c   : > { %283 = vmatpush.bf16.msra.mxu0 %v412_v4 }
  0x20   : > { %284 = vmatpush.bf16.msra.mxu0 %v411_v5 }
  0x24   : > { %285 = vmatpush.bf16.msra.mxu0 %v410_v6 }
  0x28   : > { %286 = vmatpush.bf16.msra.mxu0 %v409_v7 }
  0x2b   : > { %287 = vmatmul.bf16.vlgmr.msra.gmra.mxu0 %v210_v8 }
  0xa8   : > { %v288_v12 = vpop.f32.mrf.mxu0 }
  0xa9   : > { %v289_v13 = vadd.f32 %v425_v10, %v288_v12 }
  0xab   : > { %v294_v14 = vadd.f32 %v293_v11, %v289_v13 }
  0xad   : > { %v295_v16 = vpack.c.bf16 %v294_v14, %v294_v14 }
  0xaf   : > { %v300_v17 = vsel %vm298_vm2, %v295_v16, %v299_v15 }
  0xb0   : > { %301 = vst [vmem:[%s209_s19] sm:$0x7] %v300_v17  ;;  %v290_v18 = vpop.f32.mrf.mxu0 }
  0xb1 PF: > { %s14_s15 = sadd.s32 1, %s432_s15  }
  0xb2   : > { %p11_p4 = scmp.ge.s32.totalorder %s14_s15, 4  }
  0xb4   :  { %13 = sbr.rel (!%p11_p4) target bundleno = 1 (0x1), region = 69 }

// kernel: _lambda_.20
= control target key start
LH: loop header
LB: loop body
LE: loop exit
PB: predicated region body
PF: predicated region fallthrough
CT: control target
= control target key end

     0   :  { %9 = vsyncpa [#allocation3], 0  ;;  %s540_s15 = smov 0   ;;  %s566_s0 = inlined_call_operand.vmem [shape: bf16[2,5,128], index: 0, kind: input, shape index: {}]   ;;  %s567_s1 = inlined_call_operand.hbm [shape: bf16[128,128], index: 1, kind: input, shape index: {}]   ;;  %s568_s2 = inlined_call_operand.vmem [shape: f32[1,128], index: 2, kind: input, shape index: {}]   ;;  %s569_s3 = inlined_call_operand.vmem [shape: bf16[2,5,128], index: 3, kind: input, shape index: {}, may-alias: {3,4}]   ;;  %s570_s4 = inlined_call_operand.vmem [shape: bf16[2,5,128], index: 4, kind: output, shape index: {}, may-alias: {3,4}]  }
   0x1 LB: > { %s151_s18 = sshll.u32 %s567_s1, 4  ;;  %s396_s19 = sadd.s32 4294967295, %s510_s15   ;;  %s510_s15 = sphi %s540_s15, %s15_s15   ;;  %s152_s18 = int_to_ptr.hbm [resolvable:$true] %s151_s18 }
   0x2   : > { %p398_p0 = scmp.ge.s32.totalorder %s510_s15, 1  ;;  %p140_p1 = scmp.lt.s32.totalorder %s510_s15, 3 }
   0x3   : > { %p456_p2 = scmp.eq.s32.totalorder %s396_s19, 0  ;;  %s512_s20 = smov [#allocation2]  }
   0x4   : > { %p141_p3 = pnand %p398_p0, %p140_p1  ;;  %s153_s21 = sshll.u32 %s512_s20, 4  ;;  %s154_s21 = int_to_ptr.vmem [resolvable:$true] %s153_s21 }
   0x5   : > { %s513_s22 = smov 64   ;;  %s514_s23 = smov 4  }
   0x6   : > { %p452_p4 = pneg %p141_p3  ;;  %186 = sbr.rel (%p141_p3) target bundleno = 178 (0xb2), region = 36 }
   0x8   : > { %p453_p5 = pnand %p456_p2, %p452_p4 }
   0xa   : > { %455 = dma.hbm_to_vmem [thread:$0]  (!%p453_p5), %s152_s18, 1024, %s154_s21, [#allocation3], %s513_s22, %s513_s22, %s514_s23  }
   0xb   : > { %505 = dma.done.wait (%p456_p2), [#allocation3], 1024  }
   0xc   : > { %507 = vsyncadd (%p456_p2), [#allocation3], 4294966272  ;;  %v447_v0 = vld [vmem:[#allocation2 + $0x38] sm:$0xff]  ;;  %v446_v1 = vld [vmem:[#allocation2 + $0x30] sm:$0xff]  ;;  %p215_p6 = scmp.lt.s32.totalorder %s396_s19, 1  ;;  %vm313_vm0 = vcmask 1042432  }
   0xd   : > { %296 = vmatpush.bf16.msra.mxu0 %v447_v0  ;;  %v445_v2 = vld [vmem:[#allocation2 + $0x28] sm:$0xff]  ;;  %v444_v3 = vld [vmem:[#allocation2 + $0x20] sm:$0xff]  ;;  %v443_v4 = vld [vmem:[#allocation2 + $0x18] sm:$0xff]  ;;  %vm314_vm1 = vsmask.f32 2304 }
   0xe   : > { %v442_v5 = vld [vmem:[#allocation2 + $0x10] sm:$0xff]  ;;  %s572_s19 = smov (!%p215_p6, %s396_s19), 1  ;;  %v441_v6 = vld [vmem:[#allocation2 + $0x8] sm:$0xff]  ;;  %v440_v7 = vld [vmem:[#allocation2] sm:$0xff] }
   0xf   : > { %s403_s24 = sshll.u32 %s572_s19, 2  ;;  %v469_v10 = vld [vmem:[%s568_s2] ss:$0 sm:$0xff]  ;;  %vm315_vm2 = vmand %vm313_vm0, %vm314_vm1 }
  0x10   : > { %s218_s27 = scalar_lea.vmem %s566_s0, %s403_s24  ;;  %s222_s30 = scalar_lea.vmem %s569_s3, %s403_s24 }
  0x11   : > { %297 = vmatpush.bf16.msra.mxu0 %v446_v1  ;;  %v227_v8 = vld [vmem:[%s218_s27] sm:$0x7]  ;;  %s226_s9 = scalar_lea.vmem %s570_s4, %s403_s24 }
  0x12   : > { %v309_v9 = vld [vmem:[%s222_s30] sm:$0x7] }
  0x13   : > { %v310_v11 = vunpack.c.l.bf16 %v309_v9  ;;  %v316_v15 = vld [vmem:[%s226_s9] sm:$0x7] }
  0x15   : > { %298 = vmatpush.bf16.msra.mxu0 %v445_v2 }
  0x19   : > { %299 = vmatpush.bf16.msra.mxu0 %v444_v3 }
  0x1d   : > { %300 = vmatpush.bf16.msra.mxu0 %v443_v4 }
  0x21   : > { %301 = vmatpush.bf16.msra.mxu0 %v442_v5 }
  0x25   : > { %302 = vmatpush.bf16.msra.mxu0 %v441_v6 }
  0x29   : > { %303 = vmatpush.bf16.msra.mxu0 %v440_v7 }
  0x2c   : > { %304 = vmatmul.bf16.vlgmr.msra.gmra.mxu0 %v227_v8 }
  0xa9   : > { %v305_v12 = vpop.f32.mrf.mxu0 }
  0xaa   : > { %v306_v13 = vadd.f32 %v469_v10, %v305_v12 }
  0xac   : > { %v311_v14 = vadd.f32 %v310_v11, %v306_v13 }
  0xae   : > { %v312_v16 = vpack.c.bf16 %v311_v14, %v311_v14 }
  0xb0   : > { %v317_v17 = vsel %vm315_vm2, %v312_v16, %v316_v15 }
  0xb1   : > { %318 = vst [vmem:[%s226_s9] sm:$0x7] %v317_v17  ;;  %v307_v18 = vpop.f32.mrf.mxu0 }
  0xb2 PF: > { %s15_s15 = sadd.s32 1, %s510_s15  }
  0xb3   : > { %p12_p7 = scmp.ge.s32.totalorder %s15_s15, 4  }
  0xb5   :  { %14 = sbr.rel (!%p12_p7) target bundleno = 1 (0x1), region = 74 }
  0xba   :  { %338 = vsyncpa [#allocation3], 1 }
  0xbb   :  { %340 = vsyncpa [#allocation3 + $0x1], 1 }

// kernel: _lambda_.21
= control target key start
LH: loop header
LB: loop body
LE: loop exit
PB: predicated region body
PF: predicated region fallthrough
CT: control target
= control target key end

     0   :  { %12 = vsyncpa [#allocation5], 0  ;;  %s1685_s24 = smov 0   ;;  %s1687_s25 = smov 0   ;;  %s1979_s0 = inlined_call_operand.vmem [shape: bf16[2,5,128], index: 0, kind: input, shape index: {}, may-alias: {0,7}]   ;;  %s1980_s1 = inlined_call_operand.vmem [shape: f32[1,128], index: 1, kind: input, shape index: {}]   ;;  %s1981_s2 = inlined_call_operand.vmem [shape: f32[1,128], index: 2, kind: input, shape index: {}]   ;;  %s1982_s3 = inlined_call_operand.vmem [shape: bf16[128,512], index: 3, kind: input, shape index: {}]   ;;  %s1983_s4 = inlined_call_operand.vmem [shape: f32[1,512], index: 4, kind: input, shape index: {}]   ;;  %s1984_s5 = inlined_call_operand.hbm [shape: bf16[512,128], index: 5, kind: input, shape index: {}]   ;;  %s1985_s6 = inlined_call_operand.vmem [shape: f32[1,128], index: 6, kind: input, shape index: {}]   ;;  %s1986_s7 = inlined_call_operand.vmem [shape: bf16[2,5,128], index: 7, kind: output, shape index: {}, may-alias: {0,7}]  }
   0x1   :  { %s1689_s26 = smov 0  }
   0x2 LB: > { %s1183_s27 = sadd.s32 4294967295, %s1638_s26   ;;  %s30_s28 = sadd.s32 1, %s1634_s25  ;;  %s1638_s26 = sphi %s1689_s26, %s18_s26   ;;  %s1634_s25 = sphi %s1687_s25, %s1990_s25   ;;  %s1630_s24 = sphi %s1685_s24, %s1989_s24  }
   0x3   : > { %p32_p0 = scmp.ge.s32.totalorder %s30_s28, 2  ;;  %p1185_p1 = scmp.ge.s32.totalorder %s1638_s26, 1 }
   0x4   : > { %p228_p2 = scmp.lt.s32.totalorder %s1638_s26, 3  ;;  %p1528_p4 = scmp.eq.s32.totalorder %s1183_s27, 0 }
   0x5   : > { %s1992_s28 = smov (%p32_p0, %s30_s28), 0  ;;  %s265_s8 = sshll.u32 %s1984_s5, 4  ;;  %s266_s8 = int_to_ptr.hbm [resolvable:$true] %s265_s8 }
   0x6   : > { %p229_p3 = pnand %p1185_p1, %p228_p2  ;;  %s1640_s9 = smov [#allocation4]  }
   0x7   : > { %s267_s10 = sshll.u32 %s1640_s9, 4  ;;  %s1641_s11 = smov 64   ;;  %s268_s10 = int_to_ptr.vmem [resolvable:$true] %s267_s10 }
   0x8   : > { %p1524_p5 = pneg %p229_p3  ;;  %s1642_s12 = smov 4  }
   0x9   : > { %293 = sbr.rel (%p229_p3) target bundleno = 625 (0x271), region = 48 }
   0xa   : > { %p1525_p6 = pnand %p1528_p4, %p1524_p5 }
   0xc   : > { %1527 = dma.hbm_to_vmem [thread:$0]  (!%p1525_p6), %s266_s8, 4096, %s268_s10, [#allocation5], %s1641_s11, %s1641_s11, %s1642_s12  }
   0xe   : > { %1625 = dma.done.wait (%p1528_p4), [#allocation5], 4096  }
   0xf   : > { %1627 = vsyncadd (%p1528_p4), [#allocation5], 4294963200  ;;  %p333_p7 = scmp.lt.s32.totalorder %s1630_s24, 1  ;;  %vm359_vm0 = vcmask 1044480   ;;  %v1643_v3 = vmov 128.0   ;;  %vm400_vm5 = vcmask 1042432  }
  0x10   : > { %1562 = vrcp.f32 %v1643_v3  ;;  %v1308_v15 = vld [vmem:[%s1982_s3 + $0xe0] sm:$0xf]  ;;  %v1486_v16 = vld [vmem:[%s1982_s3 + $0xec] sm:$0xf0]  ;;  %v1484_v17 = vld [vmem:[%s1982_s3 + $0xe4] sm:$0xf] }
  0x11   : > { %s1994_s24 = smov (!%p333_p7, %s1630_s24), 1  ;;  %v1309_v18 = vor.u32 %v1486_v16, %v1308_v15  ;;  %v1310_v19 = vld [vmem:[%s1982_s3 + $0xf0] sm:$0xf0]  ;;  %v1316_v20 = vld [vmem:[%s1982_s3 + $0xe8] sm:$0xf] }
  0x12   : > { %s1192_s13 = sshll.u32 %s1994_s24, 2  ;;  %v1487_v21 = vld [vmem:[%s1982_s3 + $0xf4] sm:$0xf0]  ;;  %v1313_v22 = vor.u32 %v1484_v17, %v1310_v19  ;;  %v1485_v24 = vld [vmem:[%s1982_s3 + $0xec] sm:$0xf] }
  0x13   : > { %s1715_s16 = scalar_lea.vmem %s1979_s0, %s1192_s13  ;;  %v1317_v23 = vor.u32 %v1487_v21, %v1316_v20  ;;  %v1318_v25 = vld [vmem:[%s1982_s3 + $0xf8] sm:$0xf0]  ;;  %610 = vmatpush.bf16.msra.mxu0 %v1309_v18  ;;  %v1292_v27 = vld [vmem:[%s1982_s3 + $0xc0] sm:$0xf]  ;;  %v1482_v28 = vld [vmem:[%s1982_s3 + $0xcc] sm:$0xf0]  ;;  %s352_s19 = scalar_lea.vmem %s1986_s7, %s1192_s13 }
  0x14   : > { %v357_v0 = vld [vmem:[%s1715_s16] sm:$0x7]  ;;  %v1321_v26 = vor.u32 %v1485_v24, %v1318_v25  ;;  %623 = vmatpush.bf16.msra.mxu1 %v1313_v22  ;;  %v1480_v29 = vld [vmem:[%s1982_s3 + $0xc4] sm:$0xf]  ;;  %v1293_v30 = vor.u32 %v1482_v28, %v1292_v27  ;;  %v1294_v31 = vld [vmem:[%s1982_s3 + $0xd0] sm:$0xf0] }
  0x15   : > { %v358_v1 = vunpack.c.l.bf16 %v357_v0  ;;  %636 = vmatpush.bf16.msra.mxu2 %v1317_v23  ;;  %v1300_v32 = vld [vmem:[%s1982_s3 + $0xc8] sm:$0xf]  ;;  %v1483_v33 = vld [vmem:[%s1982_s3 + $0xd4] sm:$0xf0]  ;;  %v1297_v34 = vor.u32 %v1480_v29, %v1294_v31  ;;  %v1481_v36 = vld [vmem:[%s1982_s3 + $0xcc] sm:$0xf] }
  0x16   : > { %v1563_v4 = vpop.eup %1562  ;;  %649 = vmatpush.bf16.msra.mxu3 %v1321_v26  ;;  %v1301_v35 = vor.u32 %v1483_v33, %v1300_v32  ;;  %v1302_v37 = vld [vmem:[%s1982_s3 + $0xd8] sm:$0xf0]  ;;  %v1276_v39 = vld [vmem:[%s1982_s3 + $0xa0] sm:$0xf]  ;;  %v1478_v40 = vld [vmem:[%s1982_s3 + $0xac] sm:$0xf0] }
  0x17   : > { %v360_v2 = vsel %vm359_vm0, %v358_v1, 0.0  ;;  %v364_v5 = vmul.f32 128.0, %v1563_v4  ;;  %vm368_vm1 = vweird.f32 %v1563_v4  ;;  %611 = vmatpush.bf16.msra.mxu0 %v1293_v30  ;;  %v1305_v38 = vor.u32 %v1481_v36, %v1302_v37  ;;  %v1476_v41 = vld [vmem:[%s1982_s3 + $0xa4] sm:$0xf]  ;;  %v1278_v43 = vld [vmem:[%s1982_s3 + $0xb0] sm:$0xf0] }
  0x18   : > { %361 = vadd.xlane.f32.xlu0 %v360_v2  ;;  %624 = vmatpush.bf16.msra.mxu1 %v1297_v34  ;;  %v1277_v42 = vor.u32 %v1478_v40, %v1276_v39  ;;  %v1284_v44 = vld [vmem:[%s1982_s3 + $0xa8] sm:$0xf]  ;;  %v1479_v45 = vld [vmem:[%s1982_s3 + $0xb4] sm:$0xf0]  ;;  %v1281_v46 = vor.u32 %v1476_v41, %v1278_v43  ;;  %v1477_v48 = vld [vmem:[%s1982_s3 + $0xac] sm:$0xf] }
  0x19   : > { %v365_v6 = vsub.f32 1.0, %v364_v5  ;;  %637 = vmatpush.bf16.msra.mxu2 %v1301_v35  ;;  %v1285_v47 = vor.u32 %v1479_v45, %v1284_v44  ;;  %v1286_v49 = vld [vmem:[%s1982_s3 + $0xb8] sm:$0xf0]  ;;  %v1260_v51 = vld [vmem:[%s1982_s3 + $0x80] sm:$0xf] }
  0x1a   : > { %650 = vmatpush.bf16.msra.mxu3 %v1305_v38  ;;  %v1289_v50 = vor.u32 %v1477_v48, %v1286_v49  ;;  %v1474_v52 = vld [vmem:[%s1982_s3 + $0x8c] sm:$0xf0]  ;;  %v1472_v53 = vld [vmem:[%s1982_s3 + $0x84] sm:$0xf]  ;;  %v1262_v55 = vld [vmem:[%s1982_s3 + $0x90] sm:$0xf0] }
  0x1b   : > { %v366_v7 = vmul.f32 %v1563_v4, %v365_v6  ;;  %612 = vmatpush.bf16.msra.mxu0 %v1277_v42  ;;  %v1261_v54 = vor.u32 %v1474_v52, %v1260_v51  ;;  %v1268_v56 = vld [vmem:[%s1982_s3 + $0x88] sm:$0xf]  ;;  %v1475_v57 = vld [vmem:[%s1982_s3 + $0x94] sm:$0xf0]  ;;  %v1265_v58 = vor.u32 %v1472_v53, %v1262_v55  ;;  %v1473_v60 = vld [vmem:[%s1982_s3 + $0x8c] sm:$0xf] }
  0x1c   : > { %625 = vmatpush.bf16.msra.mxu1 %v1281_v46  ;;  %v1269_v59 = vor.u32 %v1475_v57, %v1268_v56  ;;  %v1270_v61 = vld [vmem:[%s1982_s3 + $0x98] sm:$0xf0]  ;;  %v1244_v63 = vld [vmem:[%s1982_s3 + $0x60] sm:$0xf]  ;;  %v1470_v0 = vld [vmem:[%s1982_s3 + $0x6c] sm:$0xf0] }
  0x1d   : > { %v367_v8 = vadd.f32 %v1563_v4, %v366_v7  ;;  %638 = vmatpush.bf16.msra.mxu2 %v1285_v47  ;;  %v1273_v62 = vor.u32 %v1473_v60, %v1270_v61  ;;  %v1245_v2 = vor.u32 %v1470_v0, %v1244_v63  ;;  %v1246_v3 = vld [vmem:[%s1982_s3 + $0x70] sm:$0xf0]  ;;  %v1471_v5 = vld [vmem:[%s1982_s3 + $0x74] sm:$0xf0]  ;;  %v1464_v15 = vld [vmem:[%s1982_s3 + $0x44] sm:$0xf] }
  0x1e   : > { %651 = vmatpush.bf16.msra.mxu3 %v1289_v50  ;;  %v1230_v17 = vld [vmem:[%s1982_s3 + $0x50] sm:$0xf0]  ;;  %v1236_v18 = vld [vmem:[%s1982_s3 + $0x48] sm:$0xf]  ;;  %v1467_v19 = vld [vmem:[%s1982_s3 + $0x54] sm:$0xf0] }
  0x1f   : > { %v1719_v9 = vsel %vm368_vm1, %v1563_v4, %v367_v8  ;;  %613 = vmatpush.bf16.msra.mxu0 %v1261_v54  ;;  %v1252_v4 = vld [vmem:[%s1982_s3 + $0x68] sm:$0xf]  ;;  %v1469_v8 = vld [vmem:[%s1982_s3 + $0x6c] sm:$0xf]  ;;  %v1233_v20 = vor.u32 %v1464_v15, %v1230_v17  ;;  %v1237_v21 = vor.u32 %v1467_v19, %v1236_v18  ;;  %v1238_v23 = vld [vmem:[%s1982_s3 + $0x58] sm:$0xf0] }
  0x20   : > { %626 = vmatpush.bf16.msra.mxu1 %v1265_v58  ;;  %v1253_v7 = vor.u32 %v1471_v5, %v1252_v4  ;;  %v1465_v22 = vld [vmem:[%s1982_s3 + $0x4c] sm:$0xf]  ;;  %v1212_v25 = vld [vmem:[%s1982_s3 + $0x20] sm:$0xf]  ;;  %v1462_v26 = vld [vmem:[%s1982_s3 + $0x2c] sm:$0xf0] }
  0x21   : > { %639 = vmatpush.bf16.msra.mxu2 %v1269_v59  ;;  %v1241_v24 = vor.u32 %v1465_v22, %v1238_v23  ;;  %v1460_v27 = vld [vmem:[%s1982_s3 + $0x24] sm:$0xf]  ;;  %v1213_v28 = vor.u32 %v1462_v26, %v1212_v25  ;;  %v1214_v29 = vld [vmem:[%s1982_s3 + $0x30] sm:$0xf0]  ;;  %v1220_v30 = vld [vmem:[%s1982_s3 + $0x28] sm:$0xf] }
  0x22   : > { %652 = vmatpush.bf16.msra.mxu3 %v1273_v62  ;;  %v1463_v31 = vld [vmem:[%s1982_s3 + $0x34] sm:$0xf0]  ;;  %v1217_v33 = vor.u32 %v1460_v27, %v1214_v29  ;;  %v1461_v35 = vld [vmem:[%s1982_s3 + $0x2c] sm:$0xf]  ;;  %v1222_v36 = vld [vmem:[%s1982_s3 + $0x38] sm:$0xf0] }
  0x23   : > { %614 = vmatpush.bf16.msra.mxu0 %v1245_v2  ;;  %v1221_v34 = vor.u32 %v1463_v31, %v1220_v30  ;;  %v1196_v37 = vld [vmem:[%s1982_s3] sm:$0xf]  ;;  %v1225_v39 = vor.u32 %v1461_v35, %v1222_v36  ;;  %v1458_v40 = vld [vmem:[%s1982_s3 + $0xc] sm:$0xf0]  ;;  %v1456_v41 = vld [vmem:[%s1982_s3 + $0x4] sm:$0xf] }
  0x24   : > { %v1198_v42 = vld [vmem:[%s1982_s3 + $0x10] sm:$0xf0]  ;;  %v1197_v43 = vor.u32 %v1458_v40, %v1196_v37  ;;  %v1459_v45 = vld [vmem:[%s1982_s3 + $0x14] sm:$0xf0]  ;;  %v1457_v46 = vld [vmem:[%s1982_s3 + $0xc] sm:$0xf] }
  0x25   : > { %640 = vmatpush.bf16.msra.mxu2 %v1253_v7  ;;  %v1201_v44 = vor.u32 %v1456_v41, %v1198_v42  ;;  %v1206_v49 = vld [vmem:[%s1982_s3 + $0x18] sm:$0xf0]  ;;  %v1559_v57 = vld [vmem:[%s1980_s1] ss:$0 sm:$0xff]  ;;  %vm401_vm6 = vsmask.f32 2304 }
  0x26   : > { %v1209_v50 = vor.u32 %v1457_v46, %v1206_v49  ;;  %v1560_v59 = vld [vmem:[%s1981_s2] ss:$0 sm:$0xff]  ;;  %vm1927_vm7 = vmand %vm400_vm5, %vm401_vm6  ;;  %v1503_v4 = vld [vmem:[#allocation4 + $0x78] sm:$0xff] }
  0x27   : > { %v403_v0 = vld [vmem:[#allocation2] sm:$0x7]  ;;  %v1511_v7 = vld [vmem:[#allocation4 + $0xb8] sm:$0xff]  ;;  %v1492_v15 = vld [vmem:[#allocation4 + $0x20] sm:$0xff] }
  0x28   : > { %v1494_v5 = vld [vmem:[#allocation4 + $0x30] sm:$0xff]  ;;  %v1509_v17 = vld [vmem:[#allocation4 + $0xa8] sm:$0xff]  ;;  %v1491_v19 = vld [vmem:[#allocation4 + $0x18] sm:$0xff] }
  0x29   : > { %641 = vmatpush.bf16.msra.mxu2 %v1237_v21  ;;  %v1517_v18 = vld [vmem:[#allocation4 + $0xe8] sm:$0xff]  ;;  %v440_v21 = vld [vmem:[%s1983_s4] sm:$0xf]  ;;  %v1508_v22 = vld [vmem:[#allocation4 + $0xa0] sm:$0xff] }
  0x2a   : > { %v1516_v23 = vld [vmem:[#allocation4 + $0xe0] sm:$0xff]  ;;  %v1498_v25 = vld [vmem:[#allocation4 + $0x50] sm:$0xff]  ;;  %v442_v26 = vperm.slane %v440_v21, 0  ;;  %v443_v27 = vperm.slane %v440_v21, 1  ;;  %v1515_v29 = vld [vmem:[#allocation4 + $0xd8] sm:$0xff]  ;;  %v444_v40 = vperm.slane %v440_v21, 2 }
  0x2b   : > { %v1506_v36 = vld [vmem:[#allocation4 + $0x90] sm:$0xff]  ;;  %v445_v41 = vperm.slane %v440_v21, 3  ;;  %v1488_v42 = vld [vmem:[#allocation4] sm:$0xff]  ;;  %v1513_v46 = vld [vmem:[#allocation4 + $0xc8] sm:$0xff] }
  0x2c   : > { %v1514_v37 = vld [vmem:[#allocation4 + $0xd0] sm:$0xff] }
  0x2d   : > { %642 = vmatpush.bf16.msra.mxu2 %v1221_v34 }
  0x8b   : > { %v362_v10 = vpop.xlane.xlu0 %361 }
  0x8c   : > { %v370_v11 = vmul.f32 %v1719_v9, %v362_v10  ;;  %v1254_v10 = vld [vmem:[%s1982_s3 + $0x78] sm:$0xf0] }
  0x8e   : > { %v1722_v12 = vsub.f32 %v358_v1, %v370_v11  ;;  %v1468_v1 = vld [vmem:[%s1982_s3 + $0x64] sm:$0xf]  ;;  %v1257_v11 = vor.u32 %v1469_v8, %v1254_v10  ;;  %v1493_v10 = vld [vmem:[#allocation4 + $0x28] sm:$0xff] }
  0x8f   : > { %v1249_v6 = vor.u32 %v1468_v1, %v1246_v3  ;;  %v1519_v8 = vld [vmem:[#allocation4 + $0xf8] sm:$0xff] }
  0x90   : > { %v372_v13 = vmul.f32 %v1722_v12, %v1722_v12  ;;  %653 = vmatpush.bf16.msra.mxu3 %v1257_v11  ;;  %v1501_v11 = vld [vmem:[#allocation4 + $0x68] sm:$0xff] }
  0x91   : > { %627 = vmatpush.bf16.msra.mxu1 %v1249_v6  ;;  %v1502_v6 = vld [vmem:[#allocation4 + $0x70] sm:$0xff] }
  0x92   : > { %v373_v14 = vsel %vm359_vm0, %v372_v13, 0.0  ;;  %v1228_v13 = vld [vmem:[%s1982_s3 + $0x40] sm:$0xf] }
  0x93   : > { %374 = vadd.xlane.f32.xlu0 %v373_v14  ;;  %v1466_v14 = vld [vmem:[%s1982_s3 + $0x4c] sm:$0xf0] }
  0x94   : > { %v1229_v16 = vor.u32 %v1466_v14, %v1228_v13  ;;  %654 = vmatpush.bf16.msra.mxu3 %v1241_v24  ;;  %v1510_v13 = vld [vmem:[#allocation4 + $0xb0] sm:$0xff] }
  0x95   : > { %628 = vmatpush.bf16.msra.mxu1 %v1233_v20  ;;  %v1518_v14 = vld [vmem:[#allocation4 + $0xf0] sm:$0xff]  ;;  %v1499_v20 = vld [vmem:[#allocation4 + $0x58] sm:$0xff] }
  0x96   : > { %615 = vmatpush.bf16.msra.mxu0 %v1229_v16  ;;  %v1500_v16 = vld [vmem:[#allocation4 + $0x60] sm:$0xff]  ;;  %v1490_v24 = vld [vmem:[#allocation4 + $0x10] sm:$0xff] }
  0x98   : > { %655 = vmatpush.bf16.msra.mxu3 %v1225_v39 }
  0x99   : > { %629 = vmatpush.bf16.msra.mxu1 %v1217_v33  ;;  %v1497_v33 = vld [vmem:[#allocation4 + $0x48] sm:$0xff] }
  0x9a   : > { %616 = vmatpush.bf16.msra.mxu0 %v1213_v28  ;;  %v1507_v28 = vld [vmem:[#allocation4 + $0x98] sm:$0xff] }
  0x9c   : > { %656 = vmatpush.bf16.msra.mxu3 %v1209_v50 }
  0x9d   : > { %630 = vmatpush.bf16.msra.mxu1 %v1201_v44 }
  0x9e   : > { %617 = vmatpush.bf16.msra.mxu0 %v1197_v43  ;;  %v1496_v43 = vld [vmem:[#allocation4 + $0x40] sm:$0xff] }
  0xa0   : > { %1046 = vmatpush.bf16.msrb.mxu3 %v1519_v8 }
  0xa1   : > { %1020 = vmatpush.bf16.msrb.mxu1 %v1503_v4 }
  0xa4   : > { %1047 = vmatpush.bf16.msrb.mxu3 %v1518_v14 }
  0xa5   : > { %1021 = vmatpush.bf16.msrb.mxu1 %v1502_v6 }
  0xa8   : > { %1048 = vmatpush.bf16.msrb.mxu3 %v1517_v18 }
  0xa9   : > { %1022 = vmatpush.bf16.msrb.mxu1 %v1501_v11 }
  0xac   : > { %1049 = vmatpush.bf16.msrb.mxu3 %v1516_v23 }
  0xad   : > { %1023 = vmatpush.bf16.msrb.mxu1 %v1500_v16 }
  0xb0   : > { %1050 = vmatpush.bf16.msrb.mxu3 %v1515_v29 }
  0xb1   : > { %1024 = vmatpush.bf16.msrb.mxu1 %v1499_v20 }
  0xb4   : > { %1051 = vmatpush.bf16.msrb.mxu3 %v1514_v37 }
  0xb5   : > { %1025 = vmatpush.bf16.msrb.mxu1 %v1498_v25 }
  0xb8   : > { %1052 = vmatpush.bf16.msrb.mxu3 %v1513_v46 }
  0xb9   : > { %1026 = vmatpush.bf16.msrb.mxu1 %v1497_v33 }
  0xbd   : > { %1027 = vmatpush.bf16.msrb.mxu1 %v1496_v43 }
 0x106   : > { %v375_v32 = vpop.xlane.xlu0 %374 }
 0x107   : > { %v376_v38 = vmul.f32 %v375_v32, %v1719_v9  ;;  %v1204_v9 = vld [vmem:[%s1982_s3 + $0x8] sm:$0xf]  ;;  %v1489_v32 = vld [vmem:[#allocation4 + $0x8] sm:$0xff] }
 0x108   : > { %v1205_v48 = vor.u32 %v1459_v45, %v1204_v9  ;;  %v1505_v45 = vld [vmem:[#allocation4 + $0x88] sm:$0xff] }
 0x109   : > { %v377_v47 = vadd.f32 1e-05, %v376_v38 }
 0x10a   : > { %643 = vmatpush.bf16.msra.mxu2 %v1205_v48 }
 0x10b   : > { %1564 = vrsqrt.f32 %v377_v47  ;;  %vm384_vm3 = vweird.f32 %v377_v47 }
 0x10e   : > { %1033 = vmatpush.bf16.msrb.mxu2 %v1511_v7 }
 0x111   : > { %v1565_v51 = vpop.eup %1564 }
 0x112   : > { %v379_v52 = vmul.f32 %v1565_v51, %v377_v47  ;;  %vm385_vm2 = vweird.f32 %v1565_v51  ;;  %1034 = vmatpush.bf16.msrb.mxu2 %v1510_v13 }
 0x113   : > { %vm386_vm4 = vmor %vm384_vm3, %vm385_vm2 }
 0x114   : > { %v380_v53 = vmul.f32 %v1565_v51, %v379_v52 }
 0x116   : > { %v381_v54 = vmul.f32 0.5, %v380_v53  ;;  %1035 = vmatpush.bf16.msrb.mxu2 %v1509_v17 }
 0x118   : > { %v382_v55 = vsub.f32 1.5, %v381_v54 }
 0x11a   : > { %v383_v56 = vmul.f32 %v1565_v51, %v382_v55  ;;  %1036 = vmatpush.bf16.msrb.mxu2 %v1508_v22  ;;  %v1504_v55 = vld [vmem:[#allocation4 + $0x80] sm:$0xff] }
 0x11c   : > { %v387_v58 = vsel %vm386_vm4, %v1565_v51, %v383_v56  ;;  %v1512_v56 = vld [vmem:[#allocation4 + $0xc0] sm:$0xff] }
 0x11d   : > { %v388_v60 = vmul.f32 %v387_v58, %v1722_v12  ;;  %v1495_v12 = vld [vmem:[#allocation4 + $0x38] sm:$0xff]  ;;  %1053 = vmatpush.bf16.msrb.mxu3 %v1512_v56  ;;  %v1644_v56 = vmov 0.0  }
 0x11e   : > { %1007 = vmatpush.bf16.msrb.mxu0 %v1495_v12  ;;  %1037 = vmatpush.bf16.msrb.mxu2 %v1507_v28  ;;  %406 = vst [vmem:[#allocation3] sm:$0x1f] %v1644_v56 }
 0x11f   : > { %v393_v61 = vmul.f32 %v1559_v57, %v388_v60 }
 0x121   : > { %v398_v62 = vadd.f32 %v1560_v59, %v393_v61 }
 0x122   : > { %1008 = vmatpush.bf16.msrb.mxu0 %v1494_v5  ;;  %1038 = vmatpush.bf16.msrb.mxu2 %v1506_v36 }
 0x123   : > { %v399_v1 = vpack.c.bf16 %v398_v62, %v398_v62 }
 0x125   : > { %v404_v2 = vsel %vm1927_vm7, %v399_v1, %v403_v0 }
 0x126   : > { %405 = vst [vmem:[#allocation2] sm:$0x7] %v404_v2  ;;  %1009 = vmatpush.bf16.msrb.mxu0 %v1493_v10  ;;  %1039 = vmatpush.bf16.msrb.mxu2 %v1505_v45 }
 0x12a   : > { %1010 = vmatpush.bf16.msrb.mxu0 %v1492_v15  ;;  %1040 = vmatpush.bf16.msrb.mxu2 %v1504_v55 }
 0x12d   : > { %v407_v3 = vld [vmem:[#allocation2] sm:$0x7] }
 0x12e   : > { %618 = vmatmul.bf16.vlgmr.msra.gmra.mxu0 %v407_v3  ;;  %631 = vmatmul.bf16.vlgmr.msra.gmra.mxu1 %v407_v3 }
 0x12f   : > { %644 = vmatmul.bf16.vlgmr.msra.gmra.mxu2 %v407_v3  ;;  %657 = vmatmul.bf16.vlgmr.msra.gmra.mxu3 %v407_v3 }
 0x130   : > { %1011 = vmatpush.bf16.msrb.mxu0 %v1491_v19 }
 0x134   : > { %1012 = vmatpush.bf16.msrb.mxu0 %v1490_v24 }
 0x138   : > { %1013 = vmatpush.bf16.msrb.mxu0 %v1489_v32 }
 0x13c   : > { %1014 = vmatpush.bf16.msrb.mxu0 %v1488_v42 }
 0x1ab   : > { %v619_v30 = vpop.f32.mrf.mxu0  ;;  %v632_v31 = vpop.f32.mrf.mxu1 }
 0x1ac   : > { %v1936_v34 = vadd.f32 %v619_v30, %v442_v26  ;;  %v1938_v35 = vadd.f32 %v632_v31, %v443_v27 }
 0x1ae   : > { %v1322_v38 = vmul.f32 -1.702, %v1936_v34  ;;  %v1323_v39 = vmul.f32 -1.702, %v1938_v35 }
 0x1b0   : > { %v670_v44 = vmul.f32 1.442695, %v1322_v38  ;;  %v672_v9 = vmul.f32 1.442695, %v1323_v39 }
 0x1b2   : > { %1566 = vpow2.f32 %v670_v44  ;;  %v645_v47 = vpop.f32.mrf.mxu2  ;;  %v658_v48 = vpop.f32.mrf.mxu3 }
 0x1b3   : > { %1568 = vpow2.f32 %v672_v9  ;;  %v1942_v49 = vadd.f32 %v645_v47, %v444_v40  ;;  %v1944_v50 = vadd.f32 %v658_v48, %v445_v41  ;;  %v621_v51 = vpop.f32.mrf.mxu0  ;;  %v634_v52 = vpop.f32.mrf.mxu1 }
 0x1b5   : > { %v1324_v53 = vmul.f32 -1.702, %v1942_v49  ;;  %v1325_v54 = vmul.f32 -1.702, %v1944_v50 }
 0x1b7   : > { %v674_v57 = vmul.f32 1.442695, %v1324_v53  ;;  %v676_v58 = vmul.f32 1.442695, %v1325_v54 }
 0x1b8   : > { %v1567_v59 = vpop.eup %1566 }
 0x1b9   : > { %v1569_v60 = vpop.eup %1568  ;;  %v678_v61 = vadd.f32 1.0, %v1567_v59  ;;  %1570 = vpow2.f32 %v674_v57 }
 0x1ba   : > { %v679_v62 = vadd.f32 1.0, %v1569_v60  ;;  %1572 = vpow2.f32 %v676_v58  ;;  %v647_v0 = vpop.f32.mrf.mxu2  ;;  %v660_v1 = vpop.f32.mrf.mxu3 }
 0x1bb   : > { %1574 = vrcp.f32 %v678_v61  ;;  %v691_v11 = vand.u32 2147483647, %v678_v61  ;;  %v693_v13 = vand.u32 2147483648, %v678_v61  ;;  %vm687_vm10 = vweird.f32 %v678_v61  ;;  %v746_v0 = vld [vmem:[#allocation3] sm:$0x1f] }
 0x1bc   : > { %1576 = vrcp.f32 %v679_v62  ;;  %v706_v16 = vand.u32 2147483647, %v679_v62  ;;  %v708_v17 = vand.u32 2147483648, %v679_v62  ;;  %vm702_vm12 = vweird.f32 %v679_v62 }
 0x1bd   : > { %v694_v21 = vor.u32 1.1754944e-38, %v693_v13  ;;  %vm692_vm13 = vcmp.eq.f32.partialorder %v691_v11, 8.507059e+37  ;;  %v1077_v11 = vld [vmem:[%s352_s19] sm:$0x7] }
 0x1be   : > { %vm707_vm15 = vcmp.eq.f32.partialorder %v706_v16, 8.507059e+37  ;;  %v709_v26 = vor.u32 1.1754944e-38, %v708_v17 }
 0x1bf   : > { %v1571_v2 = vpop.eup %1570 }
 0x1c0   : > { %v1573_v3 = vpop.eup %1572  ;;  %v680_v12 = vadd.f32 1.0, %v1571_v2 }
 0x1c1   : > { %v1575_v4 = vpop.eup %1574  ;;  %v1948_v5 = vadd.f32 1.0, %v1573_v3 }
 0x1c2   : > { %v1577_v6 = vpop.eup %1576  ;;  %v683_v7 = vmul.f32 %v1575_v4, %v678_v61  ;;  %1578 = vrcp.f32 %v680_v12  ;;  %vm688_vm8 = vweird.f32 %v1575_v4  ;;  %v721_v33 = vand.u32 2147483647, %v680_v12 }
 0x1c3   : > { %v698_v8 = vmul.f32 %v1577_v6, %v679_v62  ;;  %1580 = vrcp.f32 %v1948_v5  ;;  %vm703_vm9 = vweird.f32 %v1577_v6  ;;  %vm689_vm11 = vmor %vm687_vm10, %vm688_vm8  ;;  %v723_v36 = vand.u32 2147483648, %v680_v12 }
 0x1c4   : > { %v684_v10 = vsub.f32 1.0, %v683_v7  ;;  %vm704_vm14 = vmor %vm702_vm12, %vm703_vm9  ;;  %vm717_vm1 = vweird.f32 %v680_v12  ;;  %v736_v41 = vand.u32 2147483647, %v1948_v5  ;;  %v738_v42 = vand.u32 2147483648, %v1948_v5 }
 0x1c5   : > { %v699_v14 = vsub.f32 1.0, %v698_v8  ;;  %vm722_vm4 = vcmp.eq.f32.partialorder %v721_v33, 8.507059e+37  ;;  %vm732_vm5 = vweird.f32 %v1948_v5 }
 0x1c6   : > { %v685_v15 = vmul.f32 %v1575_v4, %v684_v10  ;;  %v739_v47 = vor.u32 1.1754944e-38, %v738_v42  ;;  %vm737_vm8 = vcmp.eq.f32.partialorder %v736_v41, 8.507059e+37 }
 0x1c7   : > { %v700_v18 = vmul.f32 %v1577_v6, %v699_v14 }
 0x1c8   : > { %v1579_v19 = vpop.eup %1578  ;;  %v686_v20 = vadd.f32 %v1575_v4, %v685_v15 }
 0x1c9   : > { %v701_v22 = vadd.f32 %v1577_v6, %v700_v18  ;;  %v713_v23 = vmul.f32 %v1579_v19, %v680_v12  ;;  %v1581_v24 = vpop.eup %1580  ;;  %vm718_vm0 = vweird.f32 %v1579_v19  ;;  %v1070_v12 = vld [vmem:[%s1715_s16] sm:$0x7] }
 0x1ca   : > { %v690_v25 = vsel %vm689_vm11, %v1575_v4, %v686_v20  ;;  %v728_v30 = vmul.f32 %v1581_v24, %v1948_v5  ;;  %vm733_vm2 = vweird.f32 %v1581_v24  ;;  %vm719_vm3 = vmor %vm717_vm1, %vm718_vm0  ;;  %v1561_v5 = vld [vmem:[%s1985_s6] ss:$0 sm:$0xff] }
 0x1cb   : > { %v695_v27 = vsel %vm692_vm13, %v694_v21, %v690_v25  ;;  %v705_v28 = vsel %vm704_vm14, %v1577_v6, %v701_v22  ;;  %v714_v29 = vsub.f32 1.0, %v713_v23  ;;  %vm734_vm6 = vmor %vm732_vm5, %vm733_vm2  ;;  %v1071_v6 = vunpack.c.l.bf16 %v1070_v12 }
 0x1cc   : > { %v742_v31 = vmul.f32 %v695_v27, %v1936_v34  ;;  %v710_v32 = vsel %vm707_vm15, %v709_v26, %v705_v28  ;;  %v729_v39 = vsub.f32 1.0, %v728_v30  ;;  %v724_v34 = vor.u32 1.1754944e-38, %v723_v36 }
 0x1cd   : > { %v743_v37 = vmul.f32 %v710_v32, %v1938_v35  ;;  %v715_v38 = vmul.f32 %v1579_v19, %v714_v29 }
 0x1ce   : > { %v747_v40 = vpack.c.bf16 %v742_v31, %v742_v31  ;;  %v730_v9 = vmul.f32 %v1581_v24, %v729_v39 }
 0x1cf   : > { %v748_v43 = vpack.c.bf16 %v743_v37, %v743_v37  ;;  %v716_v44 = vadd.f32 %v1579_v19, %v715_v38 }
 0x1d0   : > { %1015 = vmatmul.bf16.vlgmr.msrb.gmra.mxu0 %v747_v40  ;;  %v731_v46 = vadd.f32 %v1581_v24, %v730_v9 }
 0x1d1   : > { %v720_v45 = vsel %vm719_vm3, %v1579_v19, %v716_v44  ;;  %1028 = vmatmul.bf16.vlgmr.msrb.gmra.mxu1 %v748_v43 }
 0x1d2   : > { %v725_v35 = vsel %vm722_vm4, %v724_v34, %v720_v45  ;;  %v735_v51 = vsel %vm734_vm6, %v1581_v24, %v731_v46 }
 0x1d3   : > { %v744_v48 = vmul.f32 %v725_v35, %v1942_v49  ;;  %v740_v52 = vsel %vm737_vm8, %v739_v47, %v735_v51 }
 0x1d4   : > { %v745_v54 = vmul.f32 %v740_v52, %v1944_v50 }
 0x1d5   : > { %v749_v53 = vpack.c.bf16 %v744_v48, %v744_v48 }
 0x1d6   : > { %v750_v55 = vpack.c.bf16 %v745_v54, %v745_v54 }
 0x1d7   : > { %1041 = vmatmul.bf16.vlgmr.msrb.gmra.mxu2 %v749_v53 }
 0x1d8   : > { %1054 = vmatmul.bf16.vlgmr.msrb.gmra.mxu3 %v750_v55 }
 0x24d   : > { %v1016_v57 = vpop.f32.mrf.mxu0 }
 0x24e   : > { %v1029_v58 = vpop.f32.mrf.mxu1 }
 0x24f   : > { %v1030_v61 = vadd.f32 %v1029_v58, %v1016_v57 }
 0x255   : > { %v1018_v59 = vpop.f32.mrf.mxu0 }
 0x256   : > { %v1031_v60 = vpop.f32.mrf.mxu1 }
 0x25a   : > { %v1042_v62 = vpop.f32.mrf.mxu2 }
 0x25b   : > { %v1043_v49 = vadd.f32 %v1042_v62, %v1030_v61  ;;  %v1055_v1 = vpop.f32.mrf.mxu3 }
 0x25d   : > { %v1056_v2 = vadd.f32 %v1055_v1, %v1043_v49 }
 0x25f   : > { %v1059_v3 = vadd.f32 %v1056_v2, %v746_v0 }
 0x261   : > { %1060 = vst [vmem:[#allocation3] sm:$0x1f] %v1059_v3 }
 0x262   : > { %v1044_v50 = vpop.f32.mrf.mxu2 }
 0x263   : > { %v1057_v4 = vpop.f32.mrf.mxu3 }
 0x268   : > { %v1064_v7 = vld [vmem:[#allocation3] sm:$0x1f] }
 0x269   : > { %v1069_v8 = vadd.f32 %v1561_v5, %v1064_v7 }
 0x26b   : > { %v1072_v10 = vadd.f32 %v1071_v6, %v1069_v8 }
 0x26d   : > { %v1073_v13 = vpack.c.bf16 %v1072_v10, %v1072_v10 }
 0x26f   : > { %v1078_v14 = vsel %vm1927_vm7, %v1073_v13, %v1077_v11 }
 0x270   : > { %1079 = vst [vmem:[%s352_s19] sm:$0x7] %v1078_v14 }
 0x271 PF: > { %s18_s26 = sadd.s32 1, %s1638_s26   ;;  %s1989_s24 = smov %s1634_s25 }
 0x272   : > { %p15_p8 = scmp.ge.s32.totalorder %s18_s26, 4   ;;  %s1990_s25 = smov %s1992_s28 }
 0x274   :  { %17 = sbr.rel (!%p15_p8) target bundleno = 2 (0x2), region = 98 }
 0x279   :  { %1099 = vsyncpa [#allocation5], 1 }
 0x27a   :  { %1101 = vsyncpa [#allocation5 + $0x1], 1 }

// kernel: _lambda_.17
= control target key start
LH: loop header
LB: loop body
LE: loop exit
PB: predicated region body
PF: predicated region fallthrough
CT: control target
= control target key end

     0   :  { %s1631_s24 = smov 0   ;;  %s1633_s25 = smov 0   ;;  %s2017_s0 = inlined_call_operand.vmem [shape: bf16[2,5,128], index: 0, kind: input, shape index: {}, may-alias: {0,7}]   ;;  %s2018_s1 = inlined_call_operand.vmem [shape: f32[1,128], index: 1, kind: input, shape index: {}]   ;;  %s2019_s2 = inlined_call_operand.vmem [shape: f32[1,128], index: 2, kind: input, shape index: {}]   ;;  %s2020_s3 = inlined_call_operand.vmem [shape: bf16[128,512], index: 3, kind: input, shape index: {}]   ;;  %s2021_s4 = inlined_call_operand.vmem [shape: f32[1,512], index: 4, kind: input, shape index: {}]   ;;  %s2022_s5 = inlined_call_operand.vmem [shape: bf16[512,128], index: 5, kind: input, shape index: {}]   ;;  %s2023_s6 = inlined_call_operand.vmem [shape: f32[1,128], index: 6, kind: input, shape index: {}]   ;;  %s2024_s7 = inlined_call_operand.vmem [shape: bf16[2,5,128], index: 7, kind: output, shape index: {}, may-alias: {0,7}]  }
   0x1   :  { %s1635_s26 = smov 0  }
   0x2 LB: > { %s29_s27 = sadd.s32 1, %s1583_s25  ;;  %p1187_p0 = scmp.ge.s32.totalorder %s1587_s26, 1  ;;  %s1587_s26 = sphi %s1635_s26, %s17_s26   ;;  %s1583_s25 = sphi %s1633_s25, %s2028_s25   ;;  %s1579_s24 = sphi %s1631_s24, %s2027_s24  }
   0x3   : > { %p31_p1 = scmp.ge.s32.totalorder %s29_s27, 2  ;;  %p280_p2 = scmp.lt.s32.totalorder %s1587_s26, 3 }
   0x5   : > { %s2030_s27 = smov (%p31_p1, %s29_s27), 0  ;;  %p281_p3 = pnand %p1187_p0, %p280_p2 }
   0x6   : > { %p324_p4 = scmp.lt.s32.totalorder (!%p281_p3), %s1579_s24, 1 }
   0x7   : > { %284 = sbr.rel (%p281_p3) target bundleno = 620 (0x26c), region = 48 }
   0xc   : > { %s2032_s24 = smov (!%p324_p4, %s1579_s24), 1  ;;  %vm355_vm0 = vcmask 1044480   ;;  %v1589_v3 = vmov 128.0   ;;  %v1304_v15 = vld [vmem:[%s2020_s3 + $0xe0] sm:$0xf]  ;;  %vm396_vm5 = vcmask 1042432  }
   0xd   : > { %s1188_s28 = sshll.u32 %s2032_s24, 2  ;;  %1545 = vrcp.f32 %v1589_v3  ;;  %v1482_v16 = vld [vmem:[%s2020_s3 + $0xec] sm:$0xf0]  ;;  %v1480_v17 = vld [vmem:[%s2020_s3 + $0xe4] sm:$0xf] }
   0xe   : > { %s1657_s8 = scalar_lea.vmem %s2017_s0, %s1188_s28  ;;  %v1305_v18 = vor.u32 %v1482_v16, %v1304_v15  ;;  %v1306_v19 = vld [vmem:[%s2020_s3 + $0xf0] sm:$0xf0]  ;;  %v1312_v20 = vld [vmem:[%s2020_s3 + $0xe8] sm:$0xf]  ;;  %v1483_v21 = vld [vmem:[%s2020_s3 + $0xf4] sm:$0xf0]  ;;  %s348_s29 = scalar_lea.vmem %s2024_s7, %s1188_s28 }
   0xf   : > { %v353_v0 = vld [vmem:[%s1657_s8] sm:$0x7]  ;;  %v1309_v22 = vor.u32 %v1480_v17, %v1306_v19  ;;  %v1313_v23 = vor.u32 %v1483_v21, %v1312_v20  ;;  %v1481_v24 = vld [vmem:[%s2020_s3 + $0xec] sm:$0xf]  ;;  %v1314_v25 = vld [vmem:[%s2020_s3 + $0xf8] sm:$0xf0] }
  0x10   : > { %v354_v1 = vunpack.c.l.bf16 %v353_v0  ;;  %606 = vmatpush.bf16.msra.mxu0 %v1305_v18  ;;  %v1317_v26 = vor.u32 %v1481_v24, %v1314_v25  ;;  %v1288_v27 = vld [vmem:[%s2020_s3 + $0xc0] sm:$0xf]  ;;  %v1478_v28 = vld [vmem:[%s2020_s3 + $0xcc] sm:$0xf0]  ;;  %v1476_v29 = vld [vmem:[%s2020_s3 + $0xc4] sm:$0xf] }
  0x11   : > { %619 = vmatpush.bf16.msra.mxu1 %v1309_v22  ;;  %632 = vmatpush.bf16.msra.mxu2 %v1313_v23  ;;  %v1289_v30 = vor.u32 %v1478_v28, %v1288_v27  ;;  %v1290_v31 = vld [vmem:[%s2020_s3 + $0xd0] sm:$0xf0]  ;;  %v1296_v32 = vld [vmem:[%s2020_s3 + $0xc8] sm:$0xf]  ;;  %v1479_v33 = vld [vmem:[%s2020_s3 + $0xd4] sm:$0xf0] }
  0x12   : > { %v356_v2 = vsel %vm355_vm0, %v354_v1, 0.0  ;;  %645 = vmatpush.bf16.msra.mxu3 %v1317_v26  ;;  %v1293_v34 = vor.u32 %v1476_v29, %v1290_v31  ;;  %v1297_v35 = vor.u32 %v1479_v33, %v1296_v32  ;;  %v1477_v36 = vld [vmem:[%s2020_s3 + $0xcc] sm:$0xf]  ;;  %v1298_v37 = vld [vmem:[%s2020_s3 + $0xd8] sm:$0xf0] }
  0x13   : > { %357 = vadd.xlane.f32.xlu0 %v356_v2  ;;  %v1546_v4 = vpop.eup %1545  ;;  %v1301_v38 = vor.u32 %v1477_v36, %v1298_v37  ;;  %v1272_v39 = vld [vmem:[%s2020_s3 + $0xa0] sm:$0xf]  ;;  %v1474_v40 = vld [vmem:[%s2020_s3 + $0xac] sm:$0xf0]  ;;  %v1472_v41 = vld [vmem:[%s2020_s3 + $0xa4] sm:$0xf] }
  0x14   : > { %v360_v5 = vmul.f32 128.0, %v1546_v4  ;;  %vm364_vm1 = vweird.f32 %v1546_v4  ;;  %607 = vmatpush.bf16.msra.mxu0 %v1289_v30  ;;  %v1273_v42 = vor.u32 %v1474_v40, %v1272_v39  ;;  %v1274_v43 = vld [vmem:[%s2020_s3 + $0xb0] sm:$0xf0]  ;;  %v1280_v44 = vld [vmem:[%s2020_s3 + $0xa8] sm:$0xf] }
  0x15   : > { %620 = vmatpush.bf16.msra.mxu1 %v1293_v34  ;;  %633 = vmatpush.bf16.msra.mxu2 %v1297_v35  ;;  %v1475_v45 = vld [vmem:[%s2020_s3 + $0xb4] sm:$0xf0]  ;;  %v1277_v46 = vor.u32 %v1472_v41, %v1274_v43  ;;  %v1473_v48 = vld [vmem:[%s2020_s3 + $0xac] sm:$0xf]  ;;  %v1282_v49 = vld [vmem:[%s2020_s3 + $0xb8] sm:$0xf0] }
  0x16   : > { %v361_v6 = vsub.f32 1.0, %v360_v5  ;;  %646 = vmatpush.bf16.msra.mxu3 %v1301_v38  ;;  %v1281_v47 = vor.u32 %v1475_v45, %v1280_v44  ;;  %v1285_v50 = vor.u32 %v1473_v48, %v1282_v49  ;;  %v1256_v51 = vld [vmem:[%s2020_s3 + $0x80] sm:$0xf]  ;;  %v1470_v52 = vld [vmem:[%s2020_s3 + $0x8c] sm:$0xf0] }
  0x17   : > { %v1468_v53 = vld [vmem:[%s2020_s3 + $0x84] sm:$0xf]  ;;  %v1257_v54 = vor.u32 %v1470_v52, %v1256_v51  ;;  %v1258_v55 = vld [vmem:[%s2020_s3 + $0x90] sm:$0xf0]  ;;  %v1264_v56 = vld [vmem:[%s2020_s3 + $0x88] sm:$0xf] }
  0x18   : > { %v362_v7 = vmul.f32 %v1546_v4, %v361_v6  ;;  %608 = vmatpush.bf16.msra.mxu0 %v1273_v42  ;;  %v1471_v57 = vld [vmem:[%s2020_s3 + $0x94] sm:$0xf0]  ;;  %v1261_v58 = vor.u32 %v1468_v53, %v1258_v55  ;;  %v1469_v60 = vld [vmem:[%s2020_s3 + $0x8c] sm:$0xf]  ;;  %v1266_v61 = vld [vmem:[%s2020_s3 + $0x98] sm:$0xf0] }
  0x19   : > { %621 = vmatpush.bf16.msra.mxu1 %v1277_v46  ;;  %634 = vmatpush.bf16.msra.mxu2 %v1281_v47  ;;  %v1265_v59 = vor.u32 %v1471_v57, %v1264_v56  ;;  %v1269_v62 = vor.u32 %v1469_v60, %v1266_v61  ;;  %v1240_v63 = vld [vmem:[%s2020_s3 + $0x60] sm:$0xf]  ;;  %v1466_v0 = vld [vmem:[%s2020_s3 + $0x6c] sm:$0xf0]  ;;  %v1242_v3 = vld [vmem:[%s2020_s3 + $0x70] sm:$0xf0] }
  0x1a   : > { %v363_v8 = vadd.f32 %v1546_v4, %v362_v7  ;;  %647 = vmatpush.bf16.msra.mxu3 %v1285_v50  ;;  %v1241_v2 = vor.u32 %v1466_v0, %v1240_v63  ;;  %v1467_v5 = vld [vmem:[%s2020_s3 + $0x74] sm:$0xf0]  ;;  %v1460_v15 = vld [vmem:[%s2020_s3 + $0x44] sm:$0xf]  ;;  %v1226_v17 = vld [vmem:[%s2020_s3 + $0x50] sm:$0xf0] }
  0x1b   : > { %v1232_v18 = vld [vmem:[%s2020_s3 + $0x48] sm:$0xf]  ;;  %v1463_v19 = vld [vmem:[%s2020_s3 + $0x54] sm:$0xf0]  ;;  %v1229_v20 = vor.u32 %v1460_v15, %v1226_v17  ;;  %v1461_v22 = vld [vmem:[%s2020_s3 + $0x4c] sm:$0xf] }
  0x1c   : > { %v1661_v9 = vsel %vm364_vm1, %v1546_v4, %v363_v8  ;;  %609 = vmatpush.bf16.msra.mxu0 %v1257_v54  ;;  %v1248_v4 = vld [vmem:[%s2020_s3 + $0x68] sm:$0xf]  ;;  %v1465_v8 = vld [vmem:[%s2020_s3 + $0x6c] sm:$0xf]  ;;  %v1233_v21 = vor.u32 %v1463_v19, %v1232_v18  ;;  %v1234_v23 = vld [vmem:[%s2020_s3 + $0x58] sm:$0xf0] }
  0x1d   : > { %622 = vmatpush.bf16.msra.mxu1 %v1261_v58  ;;  %635 = vmatpush.bf16.msra.mxu2 %v1265_v59  ;;  %v1249_v7 = vor.u32 %v1467_v5, %v1248_v4  ;;  %v1237_v24 = vor.u32 %v1461_v22, %v1234_v23  ;;  %v1208_v25 = vld [vmem:[%s2020_s3 + $0x20] sm:$0xf]  ;;  %v1458_v26 = vld [vmem:[%s2020_s3 + $0x2c] sm:$0xf0]  ;;  %v1456_v27 = vld [vmem:[%s2020_s3 + $0x24] sm:$0xf] }
  0x1e   : > { %648 = vmatpush.bf16.msra.mxu3 %v1269_v62  ;;  %v1209_v28 = vor.u32 %v1458_v26, %v1208_v25  ;;  %v1210_v29 = vld [vmem:[%s2020_s3 + $0x30] sm:$0xf0]  ;;  %v1216_v30 = vld [vmem:[%s2020_s3 + $0x28] sm:$0xf]  ;;  %v1459_v31 = vld [vmem:[%s2020_s3 + $0x34] sm:$0xf0] }
  0x1f   : > { %v1213_v33 = vor.u32 %v1456_v27, %v1210_v29  ;;  %v1217_v34 = vor.u32 %v1459_v31, %v1216_v30  ;;  %v1457_v35 = vld [vmem:[%s2020_s3 + $0x2c] sm:$0xf]  ;;  %v1218_v36 = vld [vmem:[%s2020_s3 + $0x38] sm:$0xf0]  ;;  %v1192_v37 = vld [vmem:[%s2020_s3] sm:$0xf] }
  0x20   : > { %610 = vmatpush.bf16.msra.mxu0 %v1241_v2  ;;  %v1221_v39 = vor.u32 %v1457_v35, %v1218_v36  ;;  %v1454_v40 = vld [vmem:[%s2020_s3 + $0xc] sm:$0xf0]  ;;  %v1452_v41 = vld [vmem:[%s2020_s3 + $0x4] sm:$0xf]  ;;  %v1194_v42 = vld [vmem:[%s2020_s3 + $0x10] sm:$0xf0] }
  0x21   : > { %636 = vmatpush.bf16.msra.mxu2 %v1249_v7  ;;  %v1193_v43 = vor.u32 %v1454_v40, %v1192_v37  ;;  %v1197_v44 = vor.u32 %v1452_v41, %v1194_v42  ;;  %v1455_v45 = vld [vmem:[%s2020_s3 + $0x14] sm:$0xf0]  ;;  %v1453_v46 = vld [vmem:[%s2020_s3 + $0xc] sm:$0xf]  ;;  %v1202_v49 = vld [vmem:[%s2020_s3 + $0x18] sm:$0xf0] }
  0x22   : > { %v1205_v50 = vor.u32 %v1453_v46, %v1202_v49  ;;  %v1542_v57 = vld [vmem:[%s2018_s1] ss:$0 sm:$0xff]  ;;  %vm397_vm6 = vsmask.f32 2304  ;;  %v1499_v4 = vld [vmem:[%s2022_s5 + $0x78] sm:$0xff]  ;;  %v1490_v5 = vld [vmem:[%s2022_s5 + $0x30] sm:$0xff] }
  0x23   : > { %v1543_v59 = vld [vmem:[%s2019_s2] ss:$0 sm:$0xff]  ;;  %vm1869_vm7 = vmand %vm396_vm5, %vm397_vm6  ;;  %v1507_v7 = vld [vmem:[%s2022_s5 + $0xb8] sm:$0xff] }
  0x24   : > { %v399_v0 = vld [vmem:[#allocation2] sm:$0x7]  ;;  %v1505_v17 = vld [vmem:[%s2022_s5 + $0xa8] sm:$0xff]  ;;  %v1487_v19 = vld [vmem:[%s2022_s5 + $0x18] sm:$0xff] }
  0x25   : > { %637 = vmatpush.bf16.msra.mxu2 %v1233_v21  ;;  %v1488_v15 = vld [vmem:[%s2022_s5 + $0x20] sm:$0xff]  ;;  %v1513_v18 = vld [vmem:[%s2022_s5 + $0xe8] sm:$0xff]  ;;  %v1494_v25 = vld [vmem:[%s2022_s5 + $0x50] sm:$0xff] }
  0x26   : > { %v436_v21 = vld [vmem:[%s2021_s4] sm:$0xf]  ;;  %v1511_v29 = vld [vmem:[%s2022_s5 + $0xd8] sm:$0xff]  ;;  %v1502_v36 = vld [vmem:[%s2022_s5 + $0x90] sm:$0xff] }
  0x27   : > { %v1504_v22 = vld [vmem:[%s2022_s5 + $0xa0] sm:$0xff]  ;;  %v438_v26 = vperm.slane %v436_v21, 0  ;;  %v439_v27 = vperm.slane %v436_v21, 1  ;;  %v1510_v37 = vld [vmem:[%s2022_s5 + $0xd0] sm:$0xff]  ;;  %v440_v40 = vperm.slane %v436_v21, 2  ;;  %v441_v41 = vperm.slane %v436_v21, 3 }
  0x28   : > { %v1512_v23 = vld [vmem:[%s2022_s5 + $0xe0] sm:$0xff]  ;;  %v1509_v46 = vld [vmem:[%s2022_s5 + $0xc8] sm:$0xff] }
  0x29   : > { %638 = vmatpush.bf16.msra.mxu2 %v1217_v34  ;;  %v1484_v42 = vld [vmem:[%s2022_s5] sm:$0xff] }
  0x86   : > { %v358_v10 = vpop.xlane.xlu0 %357 }
  0x87   : > { %v366_v11 = vmul.f32 %v1661_v9, %v358_v10  ;;  %v1250_v10 = vld [vmem:[%s2020_s3 + $0x78] sm:$0xf0] }
  0x89   : > { %v1664_v12 = vsub.f32 %v354_v1, %v366_v11  ;;  %v1464_v1 = vld [vmem:[%s2020_s3 + $0x64] sm:$0xf]  ;;  %v1253_v11 = vor.u32 %v1465_v8, %v1250_v10  ;;  %v1515_v8 = vld [vmem:[%s2022_s5 + $0xf8] sm:$0xff]  ;;  %v1489_v10 = vld [vmem:[%s2022_s5 + $0x28] sm:$0xff] }
  0x8a   : > { %v1245_v6 = vor.u32 %v1464_v1, %v1242_v3 }
  0x8b   : > { %v368_v13 = vmul.f32 %v1664_v12, %v1664_v12  ;;  %649 = vmatpush.bf16.msra.mxu3 %v1253_v11  ;;  %v1497_v11 = vld [vmem:[%s2022_s5 + $0x68] sm:$0xff] }
  0x8c   : > { %623 = vmatpush.bf16.msra.mxu1 %v1245_v6  ;;  %v1498_v6 = vld [vmem:[%s2022_s5 + $0x70] sm:$0xff] }
  0x8d   : > { %v369_v14 = vsel %vm355_vm0, %v368_v13, 0.0  ;;  %v1224_v13 = vld [vmem:[%s2020_s3 + $0x40] sm:$0xf] }
  0x8e   : > { %370 = vadd.xlane.f32.xlu0 %v369_v14  ;;  %v1462_v14 = vld [vmem:[%s2020_s3 + $0x4c] sm:$0xf0] }
  0x8f   : > { %v1225_v16 = vor.u32 %v1462_v14, %v1224_v13  ;;  %650 = vmatpush.bf16.msra.mxu3 %v1237_v24  ;;  %v1506_v13 = vld [vmem:[%s2022_s5 + $0xb0] sm:$0xff] }
  0x90   : > { %624 = vmatpush.bf16.msra.mxu1 %v1229_v20  ;;  %v1514_v14 = vld [vmem:[%s2022_s5 + $0xf0] sm:$0xff]  ;;  %v1495_v20 = vld [vmem:[%s2022_s5 + $0x58] sm:$0xff] }
  0x91   : > { %611 = vmatpush.bf16.msra.mxu0 %v1225_v16  ;;  %v1496_v16 = vld [vmem:[%s2022_s5 + $0x60] sm:$0xff]  ;;  %v1486_v24 = vld [vmem:[%s2022_s5 + $0x10] sm:$0xff] }
  0x93   : > { %651 = vmatpush.bf16.msra.mxu3 %v1221_v39 }
  0x94   : > { %625 = vmatpush.bf16.msra.mxu1 %v1213_v33  ;;  %v1493_v33 = vld [vmem:[%s2022_s5 + $0x48] sm:$0xff] }
  0x95   : > { %612 = vmatpush.bf16.msra.mxu0 %v1209_v28  ;;  %v1503_v28 = vld [vmem:[%s2022_s5 + $0x98] sm:$0xff] }
  0x97   : > { %652 = vmatpush.bf16.msra.mxu3 %v1205_v50 }
  0x98   : > { %626 = vmatpush.bf16.msra.mxu1 %v1197_v44 }
  0x99   : > { %613 = vmatpush.bf16.msra.mxu0 %v1193_v43  ;;  %v1492_v43 = vld [vmem:[%s2022_s5 + $0x40] sm:$0xff] }
  0x9b   : > { %1042 = vmatpush.bf16.msrb.mxu3 %v1515_v8 }
  0x9c   : > { %1016 = vmatpush.bf16.msrb.mxu1 %v1499_v4 }
  0x9f   : > { %1043 = vmatpush.bf16.msrb.mxu3 %v1514_v14 }
  0xa0   : > { %1017 = vmatpush.bf16.msrb.mxu1 %v1498_v6 }
  0xa3   : > { %1044 = vmatpush.bf16.msrb.mxu3 %v1513_v18 }
  0xa4   : > { %1018 = vmatpush.bf16.msrb.mxu1 %v1497_v11 }
  0xa7   : > { %1045 = vmatpush.bf16.msrb.mxu3 %v1512_v23 }
  0xa8   : > { %1019 = vmatpush.bf16.msrb.mxu1 %v1496_v16 }
  0xab   : > { %1046 = vmatpush.bf16.msrb.mxu3 %v1511_v29 }
  0xac   : > { %1020 = vmatpush.bf16.msrb.mxu1 %v1495_v20 }
  0xaf   : > { %1047 = vmatpush.bf16.msrb.mxu3 %v1510_v37 }
  0xb0   : > { %1021 = vmatpush.bf16.msrb.mxu1 %v1494_v25 }
  0xb3   : > { %1048 = vmatpush.bf16.msrb.mxu3 %v1509_v46 }
  0xb4   : > { %1022 = vmatpush.bf16.msrb.mxu1 %v1493_v33 }
  0xb8   : > { %1023 = vmatpush.bf16.msrb.mxu1 %v1492_v43 }
 0x101   : > { %v371_v32 = vpop.xlane.xlu0 %370 }
 0x102   : > { %v372_v38 = vmul.f32 %v371_v32, %v1661_v9  ;;  %v1200_v9 = vld [vmem:[%s2020_s3 + $0x8] sm:$0xf] }
 0x103   : > { %v1201_v48 = vor.u32 %v1455_v45, %v1200_v9  ;;  %v1485_v32 = vld [vmem:[%s2022_s5 + $0x8] sm:$0xff] }
 0x104   : > { %v373_v47 = vadd.f32 1e-05, %v372_v38  ;;  %v1501_v45 = vld [vmem:[%s2022_s5 + $0x88] sm:$0xff] }
 0x105   : > { %639 = vmatpush.bf16.msra.mxu2 %v1201_v48 }
 0x106   : > { %1547 = vrsqrt.f32 %v373_v47  ;;  %vm380_vm3 = vweird.f32 %v373_v47 }
 0x109   : > { %1029 = vmatpush.bf16.msrb.mxu2 %v1507_v7 }
 0x10c   : > { %v1548_v51 = vpop.eup %1547 }
 0x10d   : > { %v375_v52 = vmul.f32 %v1548_v51, %v373_v47  ;;  %vm381_vm2 = vweird.f32 %v1548_v51  ;;  %1030 = vmatpush.bf16.msrb.mxu2 %v1506_v13 }
 0x10e   : > { %vm382_vm4 = vmor %vm380_vm3, %vm381_vm2 }
 0x10f   : > { %v376_v53 = vmul.f32 %v1548_v51, %v375_v52 }
 0x111   : > { %v377_v54 = vmul.f32 0.5, %v376_v53  ;;  %1031 = vmatpush.bf16.msrb.mxu2 %v1505_v17 }
 0x113   : > { %v378_v55 = vsub.f32 1.5, %v377_v54 }
 0x115   : > { %v379_v56 = vmul.f32 %v1548_v51, %v378_v55  ;;  %1032 = vmatpush.bf16.msrb.mxu2 %v1504_v22  ;;  %v1500_v55 = vld [vmem:[%s2022_s5 + $0x80] sm:$0xff] }
 0x117   : > { %v383_v58 = vsel %vm382_vm4, %v1548_v51, %v379_v56  ;;  %v1508_v56 = vld [vmem:[%s2022_s5 + $0xc0] sm:$0xff] }
 0x118   : > { %v384_v60 = vmul.f32 %v383_v58, %v1664_v12  ;;  %v1491_v12 = vld [vmem:[%s2022_s5 + $0x38] sm:$0xff]  ;;  %1049 = vmatpush.bf16.msrb.mxu3 %v1508_v56  ;;  %v1590_v56 = vmov 0.0  }
 0x119   : > { %1003 = vmatpush.bf16.msrb.mxu0 %v1491_v12  ;;  %1033 = vmatpush.bf16.msrb.mxu2 %v1503_v28  ;;  %402 = vst [vmem:[#allocation3] sm:$0x1f] %v1590_v56 }
 0x11a   : > { %v389_v61 = vmul.f32 %v1542_v57, %v384_v60 }
 0x11c   : > { %v394_v62 = vadd.f32 %v1543_v59, %v389_v61 }
 0x11d   : > { %1004 = vmatpush.bf16.msrb.mxu0 %v1490_v5  ;;  %1034 = vmatpush.bf16.msrb.mxu2 %v1502_v36 }
 0x11e   : > { %v395_v1 = vpack.c.bf16 %v394_v62, %v394_v62 }
 0x120   : > { %v400_v2 = vsel %vm1869_vm7, %v395_v1, %v399_v0 }
 0x121   : > { %401 = vst [vmem:[#allocation2] sm:$0x7] %v400_v2  ;;  %1005 = vmatpush.bf16.msrb.mxu0 %v1489_v10  ;;  %1035 = vmatpush.bf16.msrb.mxu2 %v1501_v45 }
 0x125   : > { %1006 = vmatpush.bf16.msrb.mxu0 %v1488_v15  ;;  %1036 = vmatpush.bf16.msrb.mxu2 %v1500_v55 }
 0x128   : > { %v403_v3 = vld [vmem:[#allocation2] sm:$0x7] }
 0x129   : > { %614 = vmatmul.bf16.vlgmr.msra.gmra.mxu0 %v403_v3  ;;  %627 = vmatmul.bf16.vlgmr.msra.gmra.mxu1 %v403_v3 }
 0x12a   : > { %640 = vmatmul.bf16.vlgmr.msra.gmra.mxu2 %v403_v3  ;;  %653 = vmatmul.bf16.vlgmr.msra.gmra.mxu3 %v403_v3 }
 0x12b   : > { %1007 = vmatpush.bf16.msrb.mxu0 %v1487_v19 }
 0x12f   : > { %1008 = vmatpush.bf16.msrb.mxu0 %v1486_v24 }
 0x133   : > { %1009 = vmatpush.bf16.msrb.mxu0 %v1485_v32 }
 0x137   : > { %1010 = vmatpush.bf16.msrb.mxu0 %v1484_v42 }
 0x1a6   : > { %v615_v30 = vpop.f32.mrf.mxu0  ;;  %v628_v31 = vpop.f32.mrf.mxu1 }
 0x1a7   : > { %v1950_v34 = vadd.f32 %v615_v30, %v438_v26  ;;  %v1952_v35 = vadd.f32 %v628_v31, %v439_v27 }
 0x1a9   : > { %v1318_v38 = vmul.f32 -1.702, %v1950_v34  ;;  %v1319_v39 = vmul.f32 -1.702, %v1952_v35 }
 0x1ab   : > { %v666_v44 = vmul.f32 1.442695, %v1318_v38  ;;  %v668_v9 = vmul.f32 1.442695, %v1319_v39 }
 0x1ad   : > { %1549 = vpow2.f32 %v666_v44  ;;  %v641_v47 = vpop.f32.mrf.mxu2  ;;  %v654_v48 = vpop.f32.mrf.mxu3 }
 0x1ae   : > { %1551 = vpow2.f32 %v668_v9  ;;  %v1974_v49 = vadd.f32 %v641_v47, %v440_v40  ;;  %v1976_v50 = vadd.f32 %v654_v48, %v441_v41  ;;  %v617_v51 = vpop.f32.mrf.mxu0  ;;  %v630_v52 = vpop.f32.mrf.mxu1 }
 0x1b0   : > { %v1320_v53 = vmul.f32 -1.702, %v1974_v49  ;;  %v1321_v54 = vmul.f32 -1.702, %v1976_v50 }
 0x1b2   : > { %v670_v57 = vmul.f32 1.442695, %v1320_v53  ;;  %v672_v58 = vmul.f32 1.442695, %v1321_v54 }
 0x1b3   : > { %v1550_v59 = vpop.eup %1549 }
 0x1b4   : > { %v1552_v60 = vpop.eup %1551  ;;  %v674_v61 = vadd.f32 1.0, %v1550_v59  ;;  %1553 = vpow2.f32 %v670_v57 }
 0x1b5   : > { %v675_v62 = vadd.f32 1.0, %v1552_v60  ;;  %1555 = vpow2.f32 %v672_v58  ;;  %v643_v0 = vpop.f32.mrf.mxu2  ;;  %v656_v1 = vpop.f32.mrf.mxu3 }
 0x1b6   : > { %1557 = vrcp.f32 %v674_v61  ;;  %v687_v11 = vand.u32 2147483647, %v674_v61  ;;  %v689_v13 = vand.u32 2147483648, %v674_v61  ;;  %vm683_vm10 = vweird.f32 %v674_v61  ;;  %v742_v0 = vld [vmem:[#allocation3] sm:$0x1f] }
 0x1b7   : > { %1559 = vrcp.f32 %v675_v62  ;;  %v702_v16 = vand.u32 2147483647, %v675_v62  ;;  %v704_v17 = vand.u32 2147483648, %v675_v62  ;;  %vm698_vm12 = vweird.f32 %v675_v62 }
 0x1b8   : > { %v690_v21 = vor.u32 1.1754944e-38, %v689_v13  ;;  %vm688_vm13 = vcmp.eq.f32.partialorder %v687_v11, 8.507059e+37  ;;  %v1073_v11 = vld [vmem:[%s348_s29] sm:$0x7] }
 0x1b9   : > { %vm703_vm15 = vcmp.eq.f32.partialorder %v702_v16, 8.507059e+37  ;;  %v705_v26 = vor.u32 1.1754944e-38, %v704_v17 }
 0x1ba   : > { %v1554_v2 = vpop.eup %1553 }
 0x1bb   : > { %v1556_v3 = vpop.eup %1555  ;;  %v676_v12 = vadd.f32 1.0, %v1554_v2 }
 0x1bc   : > { %v1558_v4 = vpop.eup %1557  ;;  %v1986_v5 = vadd.f32 1.0, %v1556_v3 }
 0x1bd   : > { %v1560_v6 = vpop.eup %1559  ;;  %v679_v7 = vmul.f32 %v1558_v4, %v674_v61  ;;  %1561 = vrcp.f32 %v676_v12  ;;  %vm684_vm8 = vweird.f32 %v1558_v4  ;;  %v717_v33 = vand.u32 2147483647, %v676_v12 }
 0x1be   : > { %v694_v8 = vmul.f32 %v1560_v6, %v675_v62  ;;  %1563 = vrcp.f32 %v1986_v5  ;;  %vm699_vm9 = vweird.f32 %v1560_v6  ;;  %vm685_vm11 = vmor %vm683_vm10, %vm684_vm8  ;;  %v719_v36 = vand.u32 2147483648, %v676_v12 }
 0x1bf   : > { %v680_v10 = vsub.f32 1.0, %v679_v7  ;;  %vm700_vm14 = vmor %vm698_vm12, %vm699_vm9  ;;  %vm713_vm1 = vweird.f32 %v676_v12  ;;  %v732_v41 = vand.u32 2147483647, %v1986_v5  ;;  %v734_v42 = vand.u32 2147483648, %v1986_v5 }
 0x1c0   : > { %v695_v14 = vsub.f32 1.0, %v694_v8  ;;  %vm718_vm4 = vcmp.eq.f32.partialorder %v717_v33, 8.507059e+37  ;;  %vm728_vm5 = vweird.f32 %v1986_v5 }
 0x1c1   : > { %v681_v15 = vmul.f32 %v1558_v4, %v680_v10  ;;  %v735_v47 = vor.u32 1.1754944e-38, %v734_v42  ;;  %vm733_vm8 = vcmp.eq.f32.partialorder %v732_v41, 8.507059e+37 }
 0x1c2   : > { %v696_v18 = vmul.f32 %v1560_v6, %v695_v14 }
 0x1c3   : > { %v1562_v19 = vpop.eup %1561  ;;  %v682_v20 = vadd.f32 %v1558_v4, %v681_v15 }
 0x1c4   : > { %v697_v22 = vadd.f32 %v1560_v6, %v696_v18  ;;  %v709_v23 = vmul.f32 %v1562_v19, %v676_v12  ;;  %v1564_v24 = vpop.eup %1563  ;;  %vm714_vm0 = vweird.f32 %v1562_v19  ;;  %v1066_v12 = vld [vmem:[%s1657_s8] sm:$0x7] }
 0x1c5   : > { %v686_v25 = vsel %vm685_vm11, %v1558_v4, %v682_v20  ;;  %v724_v30 = vmul.f32 %v1564_v24, %v1986_v5  ;;  %vm729_vm2 = vweird.f32 %v1564_v24  ;;  %vm715_vm3 = vmor %vm713_vm1, %vm714_vm0  ;;  %v1544_v5 = vld [vmem:[%s2023_s6] ss:$0 sm:$0xff] }
 0x1c6   : > { %v691_v27 = vsel %vm688_vm13, %v690_v21, %v686_v25  ;;  %v701_v28 = vsel %vm700_vm14, %v1560_v6, %v697_v22  ;;  %v710_v29 = vsub.f32 1.0, %v709_v23  ;;  %vm730_vm6 = vmor %vm728_vm5, %vm729_vm2  ;;  %v1067_v6 = vunpack.c.l.bf16 %v1066_v12 }
 0x1c7   : > { %v738_v31 = vmul.f32 %v691_v27, %v1950_v34  ;;  %v706_v32 = vsel %vm703_vm15, %v705_v26, %v701_v28  ;;  %v725_v39 = vsub.f32 1.0, %v724_v30  ;;  %v720_v34 = vor.u32 1.1754944e-38, %v719_v36 }
 0x1c8   : > { %v739_v37 = vmul.f32 %v706_v32, %v1952_v35  ;;  %v711_v38 = vmul.f32 %v1562_v19, %v710_v29 }
 0x1c9   : > { %v743_v40 = vpack.c.bf16 %v738_v31, %v738_v31  ;;  %v726_v9 = vmul.f32 %v1564_v24, %v725_v39 }
 0x1ca   : > { %v744_v43 = vpack.c.bf16 %v739_v37, %v739_v37  ;;  %v712_v44 = vadd.f32 %v1562_v19, %v711_v38 }
 0x1cb   : > { %1011 = vmatmul.bf16.vlgmr.msrb.gmra.mxu0 %v743_v40  ;;  %v727_v46 = vadd.f32 %v1564_v24, %v726_v9 }
 0x1cc   : > { %v716_v45 = vsel %vm715_vm3, %v1562_v19, %v712_v44  ;;  %1024 = vmatmul.bf16.vlgmr.msrb.gmra.mxu1 %v744_v43 }
 0x1cd   : > { %v721_v35 = vsel %vm718_vm4, %v720_v34, %v716_v45  ;;  %v731_v51 = vsel %vm730_vm6, %v1564_v24, %v727_v46 }
 0x1ce   : > { %v740_v48 = vmul.f32 %v721_v35, %v1974_v49  ;;  %v736_v52 = vsel %vm733_vm8, %v735_v47, %v731_v51 }
 0x1cf   : > { %v741_v54 = vmul.f32 %v736_v52, %v1976_v50 }
 0x1d0   : > { %v745_v53 = vpack.c.bf16 %v740_v48, %v740_v48 }
 0x1d1   : > { %v746_v55 = vpack.c.bf16 %v741_v54, %v741_v54 }
 0x1d2   : > { %1037 = vmatmul.bf16.vlgmr.msrb.gmra.mxu2 %v745_v53 }
 0x1d3   : > { %1050 = vmatmul.bf16.vlgmr.msrb.gmra.mxu3 %v746_v55 }
 0x248   : > { %v1012_v57 = vpop.f32.mrf.mxu0 }
 0x249   : > { %v1025_v58 = vpop.f32.mrf.mxu1 }
 0x24a   : > { %v1026_v61 = vadd.f32 %v1025_v58, %v1012_v57 }
 0x250   : > { %v1014_v59 = vpop.f32.mrf.mxu0 }
 0x251   : > { %v1027_v60 = vpop.f32.mrf.mxu1 }
 0x255   : > { %v1038_v62 = vpop.f32.mrf.mxu2 }
 0x256   : > { %v1039_v49 = vadd.f32 %v1038_v62, %v1026_v61  ;;  %v1051_v1 = vpop.f32.mrf.mxu3 }
 0x258   : > { %v1052_v2 = vadd.f32 %v1051_v1, %v1039_v49 }
 0x25a   : > { %v1055_v3 = vadd.f32 %v1052_v2, %v742_v0 }
 0x25c   : > { %1056 = vst [vmem:[#allocation3] sm:$0x1f] %v1055_v3 }
 0x25d   : > { %v1040_v50 = vpop.f32.mrf.mxu2 }
 0x25e   : > { %v1053_v4 = vpop.f32.mrf.mxu3 }
 0x263   : > { %v1060_v7 = vld [vmem:[#allocation3] sm:$0x1f] }
 0x264   : > { %v1065_v8 = vadd.f32 %v1544_v5, %v1060_v7 }
 0x266   : > { %v1068_v10 = vadd.f32 %v1067_v6, %v1065_v8 }
 0x268   : > { %v1069_v13 = vpack.c.bf16 %v1068_v10, %v1068_v10 }
 0x26a   : > { %v1074_v14 = vsel %vm1869_vm7, %v1069_v13, %v1073_v11 }
 0x26b   : > { %1075 = vst [vmem:[%s348_s29] sm:$0x7] %v1074_v14 }
 0x26c PF: > { %s17_s26 = sadd.s32 1, %s1587_s26   ;;  %s2027_s24 = smov %s1583_s25 }
 0x26d   : > { %p14_p5 = scmp.ge.s32.totalorder %s17_s26, 4   ;;  %s2028_s25 = smov %s2030_s27 }
 0x26f   :  { %16 = sbr.rel (!%p14_p5) target bundleno = 2 (0x2), region = 95 }

// kernel: _lambda_.22
= control target key start
LH: loop header
LB: loop body
LE: loop exit
PB: predicated region body
PF: predicated region fallthrough
CT: control target
= control target key end

     0   :  { %9 = vsyncpa [#allocation3], 0  ;;  %s235_s18 = smov [#allocation2]   ;;  %s236_s20 = smov 64   ;;  %s281_s0 = inlined_call_operand.vmem [shape: bf16[2,128], index: 0, kind: input, shape index: {}]   ;;  %s282_s1 = inlined_call_operand.vmem [shape: f32[1,128], index: 1, kind: input, shape index: {}]   ;;  %s283_s2 = inlined_call_operand.vmem [shape: f32[1,128], index: 2, kind: input, shape index: {}]   ;;  %s284_s3 = inlined_call_operand.hbm [shape: bf16[128,128], index: 3, kind: input, shape index: {}]   ;;  %s285_s4 = inlined_call_operand.vmem [shape: f32[2,128], index: 4, kind: output, shape index: {}]  }
   0x1   :  { %s20_s17 = sshll.u32 %s284_s3, 4  ;;  %s22_s19 = sshll.u32 %s235_s18, 4  ;;  %s21_s17 = int_to_ptr.hbm [resolvable:$true] %s20_s17  ;;  %s23_s19 = int_to_ptr.vmem [resolvable:$true] %s22_s19 }
   0x2   :  { %s237_s21 = smov 4  }
   0x3   :  { %28 = dma.hbm_to_vmem [thread:$0]  %s21_s17, 1024, %s23_s19, [#allocation3], %s236_s20, %s236_s20, %s237_s21  }
   0x4   :  { %233 = dma.done.wait [#allocation3], 1024  }
   0x5   :  { %234 = vsyncadd [#allocation3], 4294966272  ;;  %vm35_vm0 = vcmask 1041408   ;;  %v33_v0 = vld [vmem:[%s281_s0] sm:$0x1]  ;;  %v238_v3 = vmov 128.0  }
   0x6   :  { %v34_v1 = vunpack.c.l.bf16 %v33_v0  ;;  %205 = vrcp.f32 %v238_v3  ;;  %v198_v4 = vld [vmem:[#allocation2 + $0x38] sm:$0xff]  ;;  %v197_v16 = vld [vmem:[#allocation2 + $0x30] sm:$0xff]  ;;  %v196_v17 = vld [vmem:[#allocation2 + $0x28] sm:$0xff] }
   0x7   :  { %140 = vmatpush.bf16.msra.mxu0 %v198_v4  ;;  %v195_v18 = vld [vmem:[#allocation2 + $0x20] sm:$0xff]  ;;  %v194_v19 = vld [vmem:[#allocation2 + $0x18] sm:$0xff]  ;;  %v193_v20 = vld [vmem:[#allocation2 + $0x10] sm:$0xff] }
   0x8   :  { %v36_v2 = vsel %vm35_vm0, %v34_v1, 0.0  ;;  %v192_v21 = vld [vmem:[#allocation2 + $0x8] sm:$0xff]  ;;  %v191_v22 = vld [vmem:[#allocation2] sm:$0xff] }
   0x9   :  { %37 = vadd.xlane.f32.xlu0 %v36_v2  ;;  %v203_v32 = vld [vmem:[%s282_s1] ss:$0 sm:$0xff] }
   0xa   :  { %v204_v35 = vld [vmem:[%s283_s2] ss:$0 sm:$0xff] }
   0xb   :  { %141 = vmatpush.bf16.msra.mxu0 %v197_v16 }
   0xc   :  { %v206_v5 = vpop.eup %205 }
   0xd   :  { %v40_v6 = vmul.f32 128.0, %v206_v5  ;;  %vm44_vm1 = vweird.f32 %v206_v5 }
   0xf   :  { %v41_v7 = vsub.f32 1.0, %v40_v6  ;;  %142 = vmatpush.bf16.msra.mxu0 %v196_v17 }
  0x11   :  { %v42_v8 = vmul.f32 %v206_v5, %v41_v7 }
  0x13   :  { %v43_v9 = vadd.f32 %v206_v5, %v42_v8  ;;  %143 = vmatpush.bf16.msra.mxu0 %v195_v18 }
  0x15   :  { %v45_v10 = vsel %vm44_vm1, %v206_v5, %v43_v9 }
  0x17   :  { %144 = vmatpush.bf16.msra.mxu0 %v194_v19 }
  0x1b   :  { %145 = vmatpush.bf16.msra.mxu0 %v193_v20 }
  0x1f   :  { %146 = vmatpush.bf16.msra.mxu0 %v192_v21 }
  0x23   :  { %147 = vmatpush.bf16.msra.mxu0 %v191_v22 }
  0x7c   :  { %v38_v11 = vpop.xlane.xlu0 %37 }
  0x7d   :  { %v46_v12 = vmul.f32 %v45_v10, %v38_v11 }
  0x7f   :  { %v47_v13 = vsub.f32 %v34_v1, %v46_v12 }
  0x81   :  { %v48_v14 = vmul.f32 %v47_v13, %v47_v13 }
  0x83   :  { %v49_v15 = vsel %vm35_vm0, %v48_v14, 0.0 }
  0x84   :  { %50 = vadd.xlane.f32.xlu0 %v49_v15 }
  0xf7   :  { %v51_v23 = vpop.xlane.xlu0 %50 }
  0xf8   :  { %v52_v24 = vmul.f32 %v51_v23, %v45_v10 }
  0xfa   :  { %v53_v25 = vadd.f32 1e-05, %v52_v24 }
  0xfc   :  { %207 = vrsqrt.f32 %v53_v25  ;;  %vm60_vm3 = vweird.f32 %v53_v25 }
 0x102   :  { %v208_v26 = vpop.eup %207 }
 0x103   :  { %v55_v27 = vmul.f32 %v208_v26, %v53_v25  ;;  %vm61_vm2 = vweird.f32 %v208_v26 }
 0x104   :  { %vm62_vm4 = vmor %vm60_vm3, %vm61_vm2 }
 0x105   :  { %v56_v28 = vmul.f32 %v208_v26, %v55_v27 }
 0x107   :  { %v57_v29 = vmul.f32 0.5, %v56_v28 }
 0x109   :  { %v58_v30 = vsub.f32 1.5, %v57_v29 }
 0x10b   :  { %v59_v31 = vmul.f32 %v208_v26, %v58_v30 }
 0x10d   :  { %v63_v33 = vsel %vm62_vm4, %v208_v26, %v59_v31 }
 0x10e   :  { %v64_v34 = vmul.f32 %v63_v33, %v47_v13 }
 0x110   :  { %v69_v36 = vmul.f32 %v203_v32, %v64_v34 }
 0x112   :  { %v74_v37 = vadd.f32 %v204_v35, %v69_v36 }
 0x114   :  { %v75_v38 = vpack.c.bf16 %v74_v37, %v74_v37 }
 0x116   :  { %148 = vmatmul.bf16.vlgmr.msra.gmra.mxu0 %v75_v38 }
 0x193   :  { %v149_v39 = vpop.f32.mrf.mxu0 }
 0x194   :  { %153 = vst [vmem:[%s285_s4] sm:$0x3] %v149_v39 }
 0x19b   :  { %v151_v40 = vpop.f32.mrf.mxu0 }
 0x19c   :  { %158 = vsyncpa [#allocation3], 1 }

// kernel: _lambda_.23
= control target key start
LH: loop header
LB: loop body
LE: loop exit
PB: predicated region body
PF: predicated region fallthrough
CT: control target
= control target key end

     0   :  { %s231_s1 = inlined_call_operand.vmem [shape: bf16[128,128], index: 1, kind: input, shape index: {}]   ;;  %s232_s2 = inlined_call_operand.vmem [shape: f32[1,128], index: 2, kind: input, shape index: {}]   ;;  %s233_s0 = inlined_call_operand.vmem [shape: bf16[16,128], index: 0, kind: input, shape index: {}]   ;;  %s234_s3 = inlined_call_operand.vmem [shape: f32[16,128], index: 3, kind: output, shape index: {}]  }
   0x1   :  { %v173_v0 = vld [vmem:[%s231_s1 + $0x38] sm:$0xff]  ;;  %v172_v1 = vld [vmem:[%s231_s1 + $0x30] sm:$0xff]  ;;  %v171_v2 = vld [vmem:[%s231_s1 + $0x28] sm:$0xff] }
   0x2   :  { %94 = vmatpush.bf16.msra.mxu0 %v173_v0  ;;  %v170_v3 = vld [vmem:[%s231_s1 + $0x20] sm:$0xff]  ;;  %v169_v4 = vld [vmem:[%s231_s1 + $0x18] sm:$0xff]  ;;  %v168_v5 = vld [vmem:[%s231_s1 + $0x10] sm:$0xff] }
   0x3   :  { %v167_v6 = vld [vmem:[%s231_s1 + $0x8] sm:$0xff]  ;;  %v166_v7 = vld [vmem:[%s231_s1] sm:$0xff] }
   0x4   :  { %v165_v8 = vld [vmem:[%s233_s0] sm:$0xff] }
   0x5   :  { %v174_v9 = vld [vmem:[%s232_s2] ss:$0 sm:$0xff] }
   0x6   :  { %95 = vmatpush.bf16.msra.mxu0 %v172_v1 }
   0xa   :  { %96 = vmatpush.bf16.msra.mxu0 %v171_v2 }
   0xe   :  { %97 = vmatpush.bf16.msra.mxu0 %v170_v3 }
  0x12   :  { %98 = vmatpush.bf16.msra.mxu0 %v169_v4 }
  0x16   :  { %99 = vmatpush.bf16.msra.mxu0 %v168_v5 }
  0x1a   :  { %100 = vmatpush.bf16.msra.mxu0 %v167_v6 }
  0x1e   :  { %101 = vmatpush.bf16.msra.mxu0 %v166_v7 }
  0x21   :  { %102 = vmatmul.bf16.vlgmr.msra.gmra.mxu0 %v165_v8 }
  0x9e   :  { %v103_v10 = vpop.f32.mrf.mxu0 }
  0x9f   :  { %v121_v11 = vadd.f32 %v174_v9, %v103_v10 }
  0xa1   :  { %123 = vst [vmem:[%s234_s3] sm:$0xff] %v121_v11 }
  0xa6   :  { %v105_v12 = vpop.f32.mrf.mxu0 }
  0xa7   :  { %v122_v13 = vadd.f32 %v174_v9, %v105_v12 }
  0xa9   :  { %124 = vst [vmem:[%s234_s3 + $0x8] sm:$0xff] %v122_v13 }

</bundles_post_ra>
